<compile_context>
chip_gen: v7x
topology: tpu7x:2x2x1
jax: 0.10.0
libtpu: 0.0.40
codegen_flags: <defaults>
</compile_context>

<pallas_src>
import functools
import math

import jax
import jax.numpy as jnp
from jax.experimental import pallas as pl
from jax.experimental.pallas import tpu as pltpu

_LN_EPS = 1e-5                   # nn.LayerNorm default


def _device_limits():
    # v4/v5e/v6e: 128 MiB physical VMEM -> big row tiles + 64 MiB scoped limit.
    # v7x (64 MiB physical) or unknown backend: conservative 256 / 32 MiB.
    try:
        kind = jax.devices()[0].device_kind.lower()
    except Exception:
        kind = ""
    if any(t in kind for t in ("v4", "v5", "v6")):
        return 512, 64 * 1024 * 1024
    return 256, 32 * 1024 * 1024


_ROW_TILE, _VMEM_LIMIT = _device_limits()


def _row_tile(m, cap=None):
    # Block row dim must be a multiple of 8 or equal to the full dim.
    cap = _ROW_TILE if cap is None else cap
    return m if m <= cap else cap


# ----------------------------- in-kernel math helpers -----------------------------

def _gelu(y):
    # tanh-form GELU: one EUP tanh + ~5 VALU ops (replaces the erf polynomial).
    c = 0.7978845608028654  # sqrt(2/pi)
    return 0.5 * y * (1.0 + jnp.tanh(c * (y + 0.044715 * y * y * y)))


def _ln(x, g, b, eps):
    mu = jnp.mean(x, axis=-1, keepdims=True)
    var = jnp.mean(jnp.square(x - mu), axis=-1, keepdims=True)
    return (x - mu) * jax.lax.rsqrt(var + eps) * g + b


# ----------------------------- fused linear kernel -----------------------------
# y = [post_ln]( act( [pre_ln](x) @ W + bias ) ) + residual
# Tiled over rows (M); K and N are kept full per block (small channel dims).
# MXU runs in bf16 with f32 accumulation; weights arrive already in bf16.

def _make_fused_linear_kernel(*, pre_ln, post_ln, has_bias, has_residual,
                              activation, emit_norm, eps):
    def kernel(*refs):
        it = iter(refs)
        x_ref = next(it)
        if pre_ln:
            g1_ref, b1_ref = next(it), next(it)
        w_ref = next(it)
        if has_bias:
            bias_ref = next(it)
        if post_ln:
            g2_ref, b2_ref = next(it), next(it)
        if has_residual:
            res_ref = next(it)
        o_ref = next(it)
        n_ref = next(it) if emit_norm else None

        x = x_ref[...].astype(jnp.float32)
        if pre_ln:
            x = _ln(x, g1_ref[...], b1_ref[...], eps)
            if emit_norm:
                n_ref[...] = x.astype(n_ref.dtype)
        # bf16 MXU path, f32 accumulate.
        y = jnp.dot(x.astype(jnp.bfloat16), w_ref[...].astype(jnp.bfloat16),
                    preferred_element_type=jnp.float32)
        if has_bias:
            y = y + bias_ref[...].astype(jnp.float32)
        if activation == "gelu":
            y = _gelu(y)
        if post_ln:
            y = _ln(y, g2_ref[...], b2_ref[...], eps)
        if has_residual:
            y = y + res_ref[...].astype(jnp.float32)
        o_ref[...] = y.astype(o_ref.dtype)

    return kernel


def fused_linear(x, w, *, bias=None, pre_ln=None, post_ln=None, residual=None,
                 activation=None, emit_norm=False, eps=_LN_EPS):
    """Row-tiled fused (LN ->) matmul (-> bias -> GELU -> LN -> residual).

    x: (M, K); w: (K, N) [bf16].  Returns (M, N), or ((M, N), normalized_x) if emit_norm.
    """
    assert not emit_norm or pre_ln is not None
    M, K = x.shape
    N = w.shape[1]
    tm = _row_tile(M)

    def row_spec(cols):
        return pl.BlockSpec((tm, cols), lambda i: (i, 0))

    def full_spec(r, c):
        return pl.BlockSpec((r, c), lambda i: (0, 0))

    in_specs, args = [row_spec(K)], [x]
    if pre_ln is not None:
        in_specs += [full_spec(1, K), full_spec(1, K)]
        args += [pre_ln[0], pre_ln[1]]
    in_specs.append(full_spec(K, N))
    args.append(w)
    if bias is not None:
        in_specs.append(full_spec(1, N))
        args.append(bias)
    if post_ln is not None:
        in_specs += [full_spec(1, N), full_spec(1, N)]
        args += [post_ln[0], post_ln[1]]
    if residual is not None:
        in_specs.append(row_spec(N))
        args.append(residual)

    out_shape = jax.ShapeDtypeStruct((M, N), x.dtype)
    out_specs = row_spec(N)
    if emit_norm:
        out_shape = (out_shape, jax.ShapeDtypeStruct((M, K), x.dtype))
        out_specs = [out_specs, row_spec(K)]

    kernel = _make_fused_linear_kernel(
        pre_ln=pre_ln is not None, post_ln=post_ln is not None,
        has_bias=bias is not None, has_residual=residual is not None,
        activation=activation, emit_norm=emit_norm, eps=eps)

    bytes_accessed = (x.size * x.dtype.itemsize + w.size * w.dtype.itemsize
                      + M * N * x.dtype.itemsize
                      + (M * N * x.dtype.itemsize if residual is not None else 0)
                      + (M * K * x.dtype.itemsize if emit_norm else 0))
    cost = pl.CostEstimate(flops=int(2 * M * K * N),
                           transcendentals=int(M * N if activation else 0),
                           bytes_accessed=int(bytes_accessed))

    return pl.pallas_call(
        kernel,
        out_shape=out_shape,
        grid=(pl.cdiv(M, tm),),
        in_specs=in_specs,
        out_specs=out_specs,
        compiler_params=pltpu.CompilerParams(
            dimension_semantics=("parallel",),
            vmem_limit_bytes=_VMEM_LIMIT),
        cost_estimate=cost,
    )(*args)


# ----------------------------- attention kernels -----------------------------
# q / kv stay in (B, N, C) / (B, M, 2C) layout; heads are sliced inside the
# kernel.  Per-head results are concatenated so the output store is lane-dense.

def _attn_heads(q, k, v, num_heads, scale):
    # q: (Nq, C); k, v: (M, C).  Returns (Nq, C) f32.
    C = q.shape[-1]
    hd = C // num_heads
    qb = q.astype(jnp.bfloat16)
    kb = k.astype(jnp.bfloat16)
    vb = v.astype(jnp.bfloat16)
    outs = []
    for h in range(num_heads):
        sl = slice(h * hd, (h + 1) * hd)
        s = jax.lax.dot_general(qb[:, sl], kb[:, sl], (((1,), (1,)), ((), ())),
                                preferred_element_type=jnp.float32) * scale
        s = s - jnp.max(s, axis=-1, keepdims=True)
        e = jnp.exp(s)
        a = e * pl.reciprocal(jnp.sum(e, axis=-1, keepdims=True), approx=True)
        outs.append(jnp.dot(a.astype(jnp.bfloat16), vb[:, sl],
                            preferred_element_type=jnp.float32))
    return outs[0] if num_heads == 1 else jnp.concatenate(outs, axis=-1)


def _attn_kernel_split(q_ref, kv_ref, o_ref, *, num_heads, scale):
    C = q_ref.shape[-1]
    q = q_ref[0]
    kv = kv_ref[0]
    out = _attn_heads(q, kv[:, :C], kv[:, C:], num_heads, scale)
    o_ref[0] = out.astype(o_ref.dtype)           # single lane-dense store


def _attn_kernel_fused(qrow_ref, qkv_ref, o_ref, *, num_heads, scale):
    C = o_ref.shape[-1]
    q = qrow_ref[0][:, :C]                       # row-tiled qkv: take the q columns
    kv = qkv_ref[0]                              # full qkv: take k / v columns
    out = _attn_heads(q, kv[:, C:2 * C], kv[:, 2 * C:], num_heads, scale)
    o_ref[0] = out.astype(o_ref.dtype)


def attn_core_split(q, kv, num_heads, scale):
    # q: (B, N, C); kv: (B, M, 2C)  (sr_ratio > 1 path)
    B, N, C = q.shape
    M = kv.shape[1]
    tq = _row_tile(N)
    kernel = functools.partial(_attn_kernel_split, num_heads=num_heads, scale=scale)
    return pl.pallas_call(
        kernel,
        out_shape=jax.ShapeDtypeStruct((B, N, C), q.dtype),
        grid=(B, pl.cdiv(N, tq)),
        in_specs=[pl.BlockSpec((1, tq, C), lambda b, i: (b, i, 0)),
                  pl.BlockSpec((1, M, 2 * C), lambda b, i: (b, 0, 0))],
        out_specs=pl.BlockSpec((1, tq, C), lambda b, i: (b, i, 0)),
        compiler_params=pltpu.CompilerParams(
            dimension_semantics=("parallel", "parallel"),
            vmem_limit_bytes=_VMEM_LIMIT),
    )(q, kv)


def attn_core_fused(qkv, num_heads, scale):
    # qkv: (B, N, 3C) from the single LN-fused q/kv projection (sr_ratio == 1 path).
    # Row-tiled over queries; the same qkv tensor is passed a second time untiled
    # so k / v stay resident per batch element (no XLA-level q/kv split copies).
    B, N, C3 = qkv.shape
    C = C3 // 3
    tq = _row_tile(N)
    kernel = functools.partial(_attn_kernel_fused, num_heads=num_heads, scale=scale)
    return pl.pallas_call(
        kernel,
        out_shape=jax.ShapeDtypeStruct((B, N, C), qkv.dtype),
        grid=(B, pl.cdiv(N, tq)),
        in_specs=[pl.BlockSpec((1, tq, C3), lambda b, i: (b, i, 0)),
                  pl.BlockSpec((1, N, C3), lambda b, i: (b, 0, 0))],
        out_specs=pl.BlockSpec((1, tq, C), lambda b, i: (b, i, 0)),
        compiler_params=pltpu.CompilerParams(
            dimension_semantics=("parallel", "parallel"),
            vmem_limit_bytes=_VMEM_LIMIT),
    )(qkv, qkv)


# ----------------------------- PosCNN depthwise conv -----------------------------

def _dwconv_kernel(xp_ref, w_ref, b_ref, res_ref, o_ref):
    H, W = o_ref.shape[1], o_ref.shape[2]
    w = w_ref[...]                                          # hoisted (3,3,tc) load
    acc = res_ref[0].astype(jnp.float32) + b_ref[...]       # s == 1 -> residual + bias
    # Hoist the 3 sublane-misaligned W shifts once; H slices are major-axis (cheap).
    xw = [xp_ref[0, :, dw:dw + W, :].astype(jnp.float32) for dw in range(3)]
    for dh in range(3):
        for dw in range(3):
            acc = acc + xw[dw][dh:dh + H] * w[dh, dw]
    o_ref[0] = acc.astype(o_ref.dtype)


def dwconv3x3_residual(x_pad, w, b, res):
    # x_pad: (B, H+2, W+2, C) NHWC zero-padded; w: (3, 3, C); b: (1, C); res: (B, H, W, C)
    B, Hp2, Wp2, C = x_pad.shape
    H, W = Hp2 - 2, Wp2 - 2
    tc = C if C <= 128 else 128          # channel tiling -> more grid steps, lane-aligned
    return pl.pallas_call(
        _dwconv_kernel,
        out_shape=jax.ShapeDtypeStruct((B, H, W, C), res.dtype),
        grid=(B, pl.cdiv(C, tc)),
        in_specs=[pl.BlockSpec((1, Hp2, Wp2, tc), lambda i, j: (i, 0, 0, j)),
                  pl.BlockSpec((3, 3, tc), lambda i, j: (0, 0, j)),
                  pl.BlockSpec((1, tc), lambda i, j: (0, j)),
                  pl.BlockSpec((1, H, W, tc), lambda i, j: (i, 0, 0, j))],
        out_specs=pl.BlockSpec((1, H, W, tc), lambda i, j: (i, 0, 0, j)),
        compiler_params=pltpu.CompilerParams(
            dimension_semantics=("parallel", "parallel"),
            vmem_limit_bytes=_VMEM_LIMIT),
    )(x_pad, w, b, res)


# ----------------------------- model glue (JAX) -----------------------------

def _extract_patches_nhwc(x_nhwc, p):
    # Non-overlapping p x p patches; rows flattened in (kh, kw, cin) order,
    # matching the (p*p*cin, dim) weight flattening used at init.
    B, H, W, Cin = x_nhwc.shape
    Hp, Wp = H // p, W // p
    x = x_nhwc.reshape(B, Hp, p, Wp, p, Cin).transpose(0, 1, 3, 2, 4, 5)
    return x.reshape(B * Hp * Wp, p * p * Cin), Hp, Wp


def patch_embed(x_nhwc, pe, p):
    # Conv(kernel=stride=p) + LayerNorm fused into one matmul (post-LN epilogue).
    B = x_nhwc.shape[0]
    patches, Hp, Wp = _extract_patches_nhwc(x_nhwc, p)
    y = fused_linear(patches, pe["proj_w"], bias=pe["proj_b"],
                     post_ln=(pe["norm_g"], pe["norm_b"]))
    return y.reshape(B, Hp * Wp, -1), Hp, Wp


def block_forward(x_tokens, H, W, bp, num_heads, sr_ratio):
    B, N, C = x_tokens.shape
    hd = C // num_heads
    scale = hd ** (-0.5)
    x2d = x_tokens.reshape(B * N, C)

    # ---- attention branch: norm1 fused into the q/kv projections ----
    if sr_ratio > 1:
        # norm1 + q projection fused; normalized tokens also emitted for the sr path.
        q2d, h2d = fused_linear(x2d, bp["q_w"],
                                pre_ln=(bp["norm1_g"], bp["norm1_b"]),
                                emit_norm=True)
        sr = sr_ratio
        Hs, Ws = H // sr, W // sr
        patches = (h2d.reshape(B, Hs, sr, Ws, sr, C)
                      .transpose(0, 1, 3, 2, 4, 5)
                      .reshape(B * Hs * Ws, sr * sr * C))
        xr = fused_linear(patches, bp["sr_w"], bias=bp["sr_b"])          # sr conv
        kv2d = fused_linear(xr, bp["kv_w"],
                            pre_ln=(bp["srn_g"], bp["srn_b"]))           # sr-norm + kv
        attn_out = attn_core_split(q2d.reshape(B, N, C),
                                   kv2d.reshape(B, Hs * Ws, 2 * C),
                                   num_heads, scale)
    else:
        # Single LN-fused matmul produces q, k, v at once (qkv_bias=False -> no bias).
        qkv2d = fused_linear(x2d, bp["qkv_w"], pre_ln=(bp["norm1_g"], bp["norm1_b"]))
        attn_out = attn_core_fused(qkv2d.reshape(B, N, 3 * C), num_heads, scale)

    # output projection with the residual add fused into the epilogue
    x2d = fused_linear(attn_out.reshape(B * N, C), bp["proj_w"],
                       bias=bp["proj_b"], residual=x2d)

    # ---- MLP branch: norm2 + fc1 + GELU fused; fc2 + residual fused ----
    h = fused_linear(x2d, bp["fc1_w"], bias=bp["fc1_b"],
                     pre_ln=(bp["norm2_g"], bp["norm2_b"]), activation="gelu")
    x2d = fused_linear(h, bp["fc2_w"], bias=bp["fc2_b"], residual=x2d)
    return x2d.reshape(B, N, C)


def pos_cnn(x_tokens, H, W, p):
    # PosCNN with s=1: depthwise 3x3 conv (pad=1) + residual
    B, N, C = x_tokens.shape
    nhwc = x_tokens.reshape(B, H, W, C)        # tokens are row-major over (H, W)
    xp = jnp.pad(nhwc, ((0, 0), (1, 1), (1, 1), (0, 0)))
    out = dwconv3x3_residual(xp, p["w"], p["b"], nhwc)
    return out.reshape(B, N, C)


def cpvtv2_forward(x_nchw, params, cfg):
    outputs = []
    B = x_nchw.shape[0]
    x_nhwc = x_nchw.transpose(0, 2, 3, 1)      # internal flow is NHWC
    for i in range(len(cfg["depths"])):
        sp = params["stages"][i]
        ps = cfg["patch_size"] if i == 0 else 2
        x_tok, H, W = patch_embed(x_nhwc, sp["patch_embed"], ps)
        # pos_drop: Dropout(0.0) -> identity
        for j in range(cfg["depths"][i]):
            x_tok = block_forward(x_tok, H, W, sp["blocks"][j],
                                  cfg["num_heads"][i], cfg["sr_ratios"][i])
            if j == 0:
                x_tok = pos_cnn(x_tok, H, W, sp["pos_block"])
        x_nhwc = x_tok.reshape(B, H, W, -1)
        outputs.append(x_nhwc.transpose(0, 3, 1, 2))    # external NCHW like PyTorch
    return outputs


# ----------------------------- deterministic init -----------------------------

class _KeyGen:
    def __init__(self, key):
        self.key = key

    def __call__(self):
        self.key, k = jax.random.split(self.key)
        return k


def init_params(key, cfg):
    keys = _KeyGen(key)

    def trunc(shape, std=0.02):      # trunc_normal_(std=0.02)
        return jax.random.truncated_normal(keys(), -2.0, 2.0, shape, jnp.float32) * std

    def conv_normal(shape, fan_out):  # Conv2d init: normal(0, sqrt(2/fan_out))
        return jax.random.normal(keys(), shape, jnp.float32) * math.sqrt(2.0 / fan_out)

    def trunc_w(shape):               # matmul weights stored bf16 (halves weight DMA)
        return trunc(shape).astype(jnp.bfloat16)

    def conv_w(shape, fan_out):
        return conv_normal(shape, fan_out).astype(jnp.bfloat16)

    def ones(shape):
        return jnp.ones(shape, jnp.float32)

    def zeros(shape):
        return jnp.zeros(shape, jnp.float32)

    stages = []
    for i, dim in enumerate(cfg["embed_dims"]):
        ps = cfg["patch_size"] if i == 0 else 2
        cin = cfg["in_chans"] if i == 0 else cfg["embed_dims"][i - 1]
        pe = dict(
            proj_w=conv_w((ps * ps * cin, dim), ps * ps * dim),
            proj_b=zeros((1, dim)),
            norm_g=ones((1, dim)),
            norm_b=zeros((1, dim)),
        )
        hid = int(dim * cfg["mlp_ratios"][i])
        sr = cfg["sr_ratios"][i]
        blocks = []
        for _ in range(cfg["depths"][i]):
            blk = dict(
                norm1_g=ones((1, dim)), norm1_b=zeros((1, dim)),
                proj_w=trunc_w((dim, dim)), proj_b=zeros((1, dim)),
                norm2_g=ones((1, dim)), norm2_b=zeros((1, dim)),
                fc1_w=trunc_w((dim, hid)), fc1_b=zeros((1, hid)),
                fc2_w=trunc_w((hid, dim)), fc2_b=zeros((1, dim)),
            )
            if sr > 1:
                blk["q_w"] = trunc_w((dim, dim))          # qkv_bias=False -> no bias
                blk["kv_w"] = trunc_w((dim, 2 * dim))
                blk["sr_w"] = conv_w((sr * sr * dim, dim), sr * sr * dim)
                blk["sr_b"] = zeros((1, dim))
                blk["srn_g"] = ones((1, dim))
                blk["srn_b"] = zeros((1, dim))
            else:
                blk["qkv_w"] = trunc_w((dim, 3 * dim))    # q|kv concat built at init
            blocks.append(blk)
        pos = dict(
            w=conv_normal((3, 3, dim), 9),   # depthwise: fan_out = 3*3*dim/groups = 9
            b=zeros((1, dim)),
        )
        stages.append(dict(patch_embed=pe, blocks=blocks, pos_block=pos))
    return dict(stages=stages)


# ----------------------------- main -----------------------------

if __name__ == "__main__":
    # Small config consistent with the CPVTV2 constructor (2 pyramid stages).
    cfg = dict(img_size=16, patch_size=4, in_chans=3,
               embed_dims=[16, 32], num_heads=[1, 2], mlp_ratios=[2, 2],
               depths=[1, 2], sr_ratios=[2, 1])

    key = jax.random.PRNGKey(0)
    k_x, k_p = jax.random.split(key)
    x = jax.random.normal(k_x, (2, cfg["in_chans"], cfg["img_size"], cfg["img_size"]),
                          jnp.float32)
    params = init_params(k_p, cfg)

    fwd = jax.jit(functools.partial(cpvtv2_forward, cfg=cfg))
    outs = fwd(x, params)
    outs = jax.block_until_ready(outs)

    assert outs[0].shape == (2, 16, 4, 4)
    assert outs[1].shape == (2, 32, 2, 2)
    print("KERNEL_OK")
</pallas_src>

<mosaic_0001>
module attributes {stable_mosaic.version = 11 : i64} {
  func.func @kernel(%arg0: i32, %arg1: memref<32x48xf32, #tpu.memory_space<vmem>>, %arg2: memref<48x16xbf16, #tpu.memory_space<vmem>>, %arg3: memref<1x16xf32, #tpu.memory_space<vmem>>, %arg4: memref<1x16xf32, #tpu.memory_space<vmem>>, %arg5: memref<1x16xf32, #tpu.memory_space<vmem>>, %arg6: memref<32x16xf32, #tpu.memory_space<vmem>>) attributes {dimension_semantics = [#tpu.dimension_semantics<parallel>], iteration_bounds = array<i64: 1>, scalar_prefetch = 0 : i64, scratch_operands = 0 : i64, tpu.core_type = #tpu.core_type<tc>, window_params = [{transform_indices = @transform_0, window_bounds = array<i64: 32, 48>}, {pipeline_mode = #tpu.pipeline_mode<synchronous>, transform_indices = @transform_1, window_bounds = array<i64: 48, 16>}, {pipeline_mode = #tpu.pipeline_mode<synchronous>, transform_indices = @transform_2, window_bounds = array<i64: 1, 16>}, {pipeline_mode = #tpu.pipeline_mode<synchronous>, transform_indices = @transform_3, window_bounds = array<i64: 1, 16>}, {pipeline_mode = #tpu.pipeline_mode<synchronous>, transform_indices = @transform_4, window_bounds = array<i64: 1, 16>}, {transform_indices = @transform_5, window_bounds = array<i64: 32, 16>}]} {
    %c0 = arith.constant 0 : index
    %c0_0 = arith.constant 0 : index
    %0 = vector.load %arg1[%c0, %c0_0] : memref<32x48xf32, #tpu.memory_space<vmem>>, vector<32x48xf32>
    %1 = arith.truncf %0 : vector<32x48xf32> to vector<32x48xbf16>
    %c0_1 = arith.constant 0 : index
    %c0_2 = arith.constant 0 : index
    %2 = vector.load %arg2[%c0_1, %c0_2] : memref<48x16xbf16, #tpu.memory_space<vmem>>, vector<48x16xbf16>
    %cst = arith.constant dense<0.000000e+00> : vector<32x16xf32>
    %3 = tpu.matmul %1, %2, %cst {dimension_numbers = #tpu.dot_dimension_numbers<[1], [0], [0], [1], [0, 0, 1, 1], [], []>} : vector<32x48xbf16>, vector<48x16xbf16>, vector<32x16xf32> -> vector<32x16xf32>
    %c0_3 = arith.constant 0 : index
    %c0_4 = arith.constant 0 : index
    %4 = vector.load %arg3[%c0_3, %c0_4] : memref<1x16xf32, #tpu.memory_space<vmem>>, vector<1x16xf32>
    %5 = vector.broadcast %4 : vector<1x16xf32> to vector<32x16xf32>
    %6 = arith.addf %3, %5 : vector<32x16xf32>
    %c0_5 = arith.constant 0 : index
    %c0_6 = arith.constant 0 : index
    %7 = vector.load %arg4[%c0_5, %c0_6] : memref<1x16xf32, #tpu.memory_space<vmem>>, vector<1x16xf32>
    %c0_7 = arith.constant 0 : index
    %c0_8 = arith.constant 0 : index
    %8 = vector.load %arg5[%c0_7, %c0_8] : memref<1x16xf32, #tpu.memory_space<vmem>>, vector<1x16xf32>
    %cst_9 = arith.constant dense<0.000000e+00> : vector<32xf32>
    %9 = vector.multi_reduction <add>, %6, %cst_9 [1] : vector<32x16xf32> to vector<32xf32>
    %10 = vector.shape_cast %9 : vector<32xf32> to vector<32x1xf32>
    %cst_10 = arith.constant 1.600000e+01 : f32
    %11 = vector.broadcast %cst_10 : f32 to vector<32x1xf32>
    %12 = arith.divf %10, %11 : vector<32x1xf32>
    %13 = vector.broadcast %12 : vector<32x1xf32> to vector<32x16xf32>
    %14 = arith.subf %6, %13 : vector<32x16xf32>
    %15 = arith.mulf %14, %14 : vector<32x16xf32>
    %cst_11 = arith.constant dense<0.000000e+00> : vector<32xf32>
    %16 = vector.multi_reduction <add>, %15, %cst_11 [1] : vector<32x16xf32> to vector<32xf32>
    %17 = vector.shape_cast %16 : vector<32xf32> to vector<32x1xf32>
    %cst_12 = arith.constant 1.600000e+01 : f32
    %18 = vector.broadcast %cst_12 : f32 to vector<32x1xf32>
    %19 = arith.divf %17, %18 : vector<32x1xf32>
    %20 = vector.broadcast %12 : vector<32x1xf32> to vector<32x16xf32>
    %21 = arith.subf %6, %20 : vector<32x16xf32>
    %cst_13 = arith.constant 9.99999974E-6 : f32
    %22 = vector.broadcast %cst_13 : f32 to vector<32x1xf32>
    %23 = arith.addf %19, %22 : vector<32x1xf32>
    %24 = math.rsqrt %23 : vector<32x1xf32>
    %25 = vector.broadcast %24 : vector<32x1xf32> to vector<32x16xf32>
    %26 = arith.mulf %21, %25 : vector<32x16xf32>
    %27 = vector.broadcast %7 : vector<1x16xf32> to vector<32x16xf32>
    %28 = arith.mulf %26, %27 : vector<32x16xf32>
    %29 = vector.broadcast %8 : vector<1x16xf32> to vector<32x16xf32>
    %30 = arith.addf %28, %29 : vector<32x16xf32>
    %c0_14 = arith.constant 0 : index
    %c0_15 = arith.constant 0 : index
    %31 = vector.load %arg6[%c0_14, %c0_15] : memref<32x16xf32, #tpu.memory_space<vmem>>, vector<32x16xf32>
    tpu.vector_store %arg6[%c0_14, %c0_15], %30 {strides = array<i32>} : memref<32x16xf32, #tpu.memory_space<vmem>>, vector<32x16xf32>,
    return
  }
  func.func @transform_0(%arg0: i32) -> (i32, i32) {
    %c0_i32 = arith.constant 0 : i32
    %c0_i32_0 = arith.constant 0 : i32
    return %arg0, %c0_i32 : i32, i32
  }
  func.func @transform_1(%arg0: i32) -> (i32, i32) {
    %c0_i32 = arith.constant 0 : i32
    %c0_i32_0 = arith.constant 0 : i32
    %c0_i32_1 = arith.constant 0 : i32
    return %c0_i32, %c0_i32_0 : i32, i32
  }
  func.func @transform_2(%arg0: i32) -> (i32, i32) {
    %c0_i32 = arith.constant 0 : i32
    %c0_i32_0 = arith.constant 0 : i32
    %c0_i32_1 = arith.constant 0 : i32
    return %c0_i32, %c0_i32_0 : i32, i32
  }
  func.func @transform_3(%arg0: i32) -> (i32, i32) {
    %c0_i32 = arith.constant 0 : i32
    %c0_i32_0 = arith.constant 0 : i32
    %c0_i32_1 = arith.constant 0 : i32
    return %c0_i32, %c0_i32_0 : i32, i32
  }
  func.func @transform_4(%arg0: i32) -> (i32, i32) {
    %c0_i32 = arith.constant 0 : i32
    %c0_i32_0 = arith.constant 0 : i32
    %c0_i32_1 = arith.constant 0 : i32
    return %c0_i32, %c0_i32_0 : i32, i32
  }
  func.func @transform_5(%arg0: i32) -> (i32, i32) {
    %c0_i32 = arith.constant 0 : i32
    %c0_i32_0 = arith.constant 0 : i32
    return %arg0, %c0_i32 : i32, i32
  }
}

module attributes {stable_mosaic.version = 11 : i64} {
  func.func @kernel(%arg0: i32, %arg1: memref<32x16xf32, #tpu.memory_space<vmem>>, %arg2: memref<1x16xf32, #tpu.memory_space<vmem>>, %arg3: memref<1x16xf32, #tpu.memory_space<vmem>>, %arg4: memref<16x16xbf16, #tpu.memory_space<vmem>>, %arg5: memref<32x16xf32, #tpu.memory_space<vmem>>, %arg6: memref<32x16xf32, #tpu.memory_space<vmem>>) attributes {dimension_semantics = [#tpu.dimension_semantics<parallel>], iteration_bounds = array<i64: 1>, scalar_prefetch = 0 : i64, scratch_operands = 0 : i64, tpu.core_type = #tpu.core_type<tc>, window_params = [{transform_indices = @transform_0, window_bounds = array<i64: 32, 16>}, {pipeline_mode = #tpu.pipeline_mode<synchronous>, transform_indices = @transform_1, window_bounds = array<i64: 1, 16>}, {pipeline_mode = #tpu.pipeline_mode<synchronous>, transform_indices = @transform_2, window_bounds = array<i64: 1, 16>}, {pipeline_mode = #tpu.pipeline_mode<synchronous>, transform_indices = @transform_3, window_bounds = array<i64: 16, 16>}, {transform_indices = @transform_4, window_bounds = array<i64: 32, 16>}, {transform_indices = @transform_5, window_bounds = array<i64: 32, 16>}]} {
    %c0 = arith.constant 0 : index
    %c0_0 = arith.constant 0 : index
    %0 = vector.load %arg1[%c0, %c0_0] : memref<32x16xf32, #tpu.memory_space<vmem>>, vector<32x16xf32>
    %c0_1 = arith.constant 0 : index
    %c0_2 = arith.constant 0 : index
    %1 = vector.load %arg2[%c0_1, %c0_2] : memref<1x16xf32, #tpu.memory_space<vmem>>, vector<1x16xf32>
    %c0_3 = arith.constant 0 : index
    %c0_4 = arith.constant 0 : index
    %2 = vector.load %arg3[%c0_3, %c0_4] : memref<1x16xf32, #tpu.memory_space<vmem>>, vector<1x16xf32>
    %cst = arith.constant dense<0.000000e+00> : vector<32xf32>
    %3 = vector.multi_reduction <add>, %0, %cst [1] : vector<32x16xf32> to vector<32xf32>
    %4 = vector.shape_cast %3 : vector<32xf32> to vector<32x1xf32>
    %cst_5 = arith.constant 1.600000e+01 : f32
    %5 = vector.broadcast %cst_5 : f32 to vector<32x1xf32>
    %6 = arith.divf %4, %5 : vector<32x1xf32>
    %7 = vector.broadcast %6 : vector<32x1xf32> to vector<32x16xf32>
    %8 = arith.subf %0, %7 : vector<32x16xf32>
    %9 = arith.mulf %8, %8 : vector<32x16xf32>
    %cst_6 = arith.constant dense<0.000000e+00> : vector<32xf32>
    %10 = vector.multi_reduction <add>, %9, %cst_6 [1] : vector<32x16xf32> to vector<32xf32>
    %11 = vector.shape_cast %10 : vector<32xf32> to vector<32x1xf32>
    %cst_7 = arith.constant 1.600000e+01 : f32
    %12 = vector.broadcast %cst_7 : f32 to vector<32x1xf32>
    %13 = arith.divf %11, %12 : vector<32x1xf32>
    %14 = vector.broadcast %6 : vector<32x1xf32> to vector<32x16xf32>
    %15 = arith.subf %0, %14 : vector<32x16xf32>
    %cst_8 = arith.constant 9.99999974E-6 : f32
    %16 = vector.broadcast %cst_8 : f32 to vector<32x1xf32>
    %17 = arith.addf %13, %16 : vector<32x1xf32>
    %18 = math.rsqrt %17 : vector<32x1xf32>
    %19 = vector.broadcast %18 : vector<32x1xf32> to vector<32x16xf32>
    %20 = arith.mulf %15, %19 : vector<32x16xf32>
    %21 = vector.broadcast %1 : vector<1x16xf32> to vector<32x16xf32>
    %22 = arith.mulf %20, %21 : vector<32x16xf32>
    %23 = vector.broadcast %2 : vector<1x16xf32> to vector<32x16xf32>
    %24 = arith.addf %22, %23 : vector<32x16xf32>
    %c0_9 = arith.constant 0 : index
    %c0_10 = arith.constant 0 : index
    %25 = vector.load %arg6[%c0_9, %c0_10] : memref<32x16xf32, #tpu.memory_space<vmem>>, vector<32x16xf32>
    tpu.vector_store %arg6[%c0_9, %c0_10], %24 {strides = array<i32>} : memref<32x16xf32, #tpu.memory_space<vmem>>, vector<32x16xf32>,
    %26 = arith.truncf %24 : vector<32x16xf32> to vector<32x16xbf16>
    %c0_11 = arith.constant 0 : index
    %c0_12 = arith.constant 0 : index
    %27 = vector.load %arg4[%c0_11, %c0_12] : memref<16x16xbf16, #tpu.memory_space<vmem>>, vector<16x16xbf16>
    %cst_13 = arith.constant dense<0.000000e+00> : vector<32x16xf32>
    %28 = tpu.matmul %26, %27, %cst_13 {dimension_numbers = #tpu.dot_dimension_numbers<[1], [0], [0], [1], [0, 0, 1, 1], [], []>} : vector<32x16xbf16>, vector<16x16xbf16>, vector<32x16xf32> -> vector<32x16xf32>
    %c0_14 = arith.constant 0 : index
    %c0_15 = arith.constant 0 : index
    %29 = vector.load %arg5[%c0_14, %c0_15] : memref<32x16xf32, #tpu.memory_space<vmem>>, vector<32x16xf32>
    tpu.vector_store %arg5[%c0_14, %c0_15], %28 {strides = array<i32>} : memref<32x16xf32, #tpu.memory_space<vmem>>, vector<32x16xf32>,
    return
  }
  func.func @transform_0(%arg0: i32) -> (i32, i32) {
    %c0_i32 = arith.constant 0 : i32
    %c0_i32_0 = arith.constant 0 : i32
    return %arg0, %c0_i32 : i32, i32
  }
  func.func @transform_1(%arg0: i32) -> (i32, i32) {
    %c0_i32 = arith.constant 0 : i32
    %c0_i32_0 = arith.constant 0 : i32
    %c0_i32_1 = arith.constant 0 : i32
    return %c0_i32, %c0_i32_0 : i32, i32
  }
  func.func @transform_2(%arg0: i32) -> (i32, i32) {
    %c0_i32 = arith.constant 0 : i32
    %c0_i32_0 = arith.constant 0 : i32
    %c0_i32_1 = arith.constant 0 : i32
    return %c0_i32, %c0_i32_0 : i32, i32
  }
  func.func @transform_3(%arg0: i32) -> (i32, i32) {
    %c0_i32 = arith.constant 0 : i32
    %c0_i32_0 = arith.constant 0 : i32
    %c0_i32_1 = arith.constant 0 : i32
    return %c0_i32, %c0_i32_0 : i32, i32
  }
  func.func @transform_4(%arg0: i32) -> (i32, i32) {
    %c0_i32 = arith.constant 0 : i32
    %c0_i32_0 = arith.constant 0 : i32
    return %arg0, %c0_i32 : i32, i32
  }
  func.func @transform_5(%arg0: i32) -> (i32, i32) {
    %c0_i32 = arith.constant 0 : i32
    %c0_i32_0 = arith.constant 0 : i32
    return %arg0, %c0_i32 : i32, i32
  }
}

module attributes {stable_mosaic.version = 11 : i64} {
  func.func @kernel(%arg0: i32, %arg1: memref<8x16xf32, #tpu.memory_space<vmem>>, %arg2: memref<1x16xf32, #tpu.memory_space<vmem>>, %arg3: memref<1x16xf32, #tpu.memory_space<vmem>>, %arg4: memref<16x32xbf16, #tpu.memory_space<vmem>>, %arg5: memref<8x32xf32, #tpu.memory_space<vmem>>) attributes {dimension_semantics = [#tpu.dimension_semantics<parallel>], iteration_bounds = array<i64: 1>, scalar_prefetch = 0 : i64, scratch_operands = 0 : i64, tpu.core_type = #tpu.core_type<tc>, window_params = [{transform_indices = @transform_0, window_bounds = array<i64: 8, 16>}, {pipeline_mode = #tpu.pipeline_mode<synchronous>, transform_indices = @transform_1, window_bounds = array<i64: 1, 16>}, {pipeline_mode = #tpu.pipeline_mode<synchronous>, transform_indices = @transform_2, window_bounds = array<i64: 1, 16>}, {pipeline_mode = #tpu.pipeline_mode<synchronous>, transform_indices = @transform_3, window_bounds = array<i64: 16, 32>}, {transform_indices = @transform_4, window_bounds = array<i64: 8, 32>}]} {
    %c0 = arith.constant 0 : index
    %c0_0 = arith.constant 0 : index
    %0 = vector.load %arg1[%c0, %c0_0] : memref<8x16xf32, #tpu.memory_space<vmem>>, vector<8x16xf32>
    %c0_1 = arith.constant 0 : index
    %c0_2 = arith.constant 0 : index
    %1 = vector.load %arg2[%c0_1, %c0_2] : memref<1x16xf32, #tpu.memory_space<vmem>>, vector<1x16xf32>
    %c0_3 = arith.constant 0 : index
    %c0_4 = arith.constant 0 : index
    %2 = vector.load %arg3[%c0_3, %c0_4] : memref<1x16xf32, #tpu.memory_space<vmem>>, vector<1x16xf32>
    %cst = arith.constant dense<0.000000e+00> : vector<8xf32>
    %3 = vector.multi_reduction <add>, %0, %cst [1] : vector<8x16xf32> to vector<8xf32>
    %4 = vector.shape_cast %3 : vector<8xf32> to vector<8x1xf32>
    %cst_5 = arith.constant 1.600000e+01 : f32
    %5 = vector.broadcast %cst_5 : f32 to vector<8x1xf32>
    %6 = arith.divf %4, %5 : vector<8x1xf32>
    %7 = vector.broadcast %6 : vector<8x1xf32> to vector<8x16xf32>
    %8 = arith.subf %0, %7 : vector<8x16xf32>
    %9 = arith.mulf %8, %8 : vector<8x16xf32>
    %cst_6 = arith.constant dense<0.000000e+00> : vector<8xf32>
    %10 = vector.multi_reduction <add>, %9, %cst_6 [1] : vector<8x16xf32> to vector<8xf32>
    %11 = vector.shape_cast %10 : vector<8xf32> to vector<8x1xf32>
    %cst_7 = arith.constant 1.600000e+01 : f32
    %12 = vector.broadcast %cst_7 : f32 to vector<8x1xf32>
    %13 = arith.divf %11, %12 : vector<8x1xf32>
    %14 = vector.broadcast %6 : vector<8x1xf32> to vector<8x16xf32>
    %15 = arith.subf %0, %14 : vector<8x16xf32>
    %cst_8 = arith.constant 9.99999974E-6 : f32
    %16 = vector.broadcast %cst_8 : f32 to vector<8x1xf32>
    %17 = arith.addf %13, %16 : vector<8x1xf32>
    %18 = math.rsqrt %17 : vector<8x1xf32>
    %19 = vector.broadcast %18 : vector<8x1xf32> to vector<8x16xf32>
    %20 = arith.mulf %15, %19 : vector<8x16xf32>
    %21 = vector.broadcast %1 : vector<1x16xf32> to vector<8x16xf32>
    %22 = arith.mulf %20, %21 : vector<8x16xf32>
    %23 = vector.broadcast %2 : vector<1x16xf32> to vector<8x16xf32>
    %24 = arith.addf %22, %23 : vector<8x16xf32>
    %25 = arith.truncf %24 : vector<8x16xf32> to vector<8x16xbf16>
    %c0_9 = arith.constant 0 : index
    %c0_10 = arith.constant 0 : index
    %26 = vector.load %arg4[%c0_9, %c0_10] : memref<16x32xbf16, #tpu.memory_space<vmem>>, vector<16x32xbf16>
    %cst_11 = arith.constant dense<0.000000e+00> : vector<8x32xf32>
    %27 = tpu.matmul %25, %26, %cst_11 {dimension_numbers = #tpu.dot_dimension_numbers<[1], [0], [0], [1], [0, 0, 1, 1], [], []>} : vector<8x16xbf16>, vector<16x32xbf16>, vector<8x32xf32> -> vector<8x32xf32>
    %c0_12 = arith.constant 0 : index
    %c0_13 = arith.constant 0 : index
    %28 = vector.load %arg5[%c0_12, %c0_13] : memref<8x32xf32, #tpu.memory_space<vmem>>, vector<8x32xf32>
    tpu.vector_store %arg5[%c0_12, %c0_13], %27 {strides = array<i32>} : memref<8x32xf32, #tpu.memory_space<vmem>>, vector<8x32xf32>,
    return
  }
  func.func @transform_0(%arg0: i32) -> (i32, i32) {
    %c0_i32 = arith.constant 0 : i32
    %c0_i32_0 = arith.constant 0 : i32
    return %arg0, %c0_i32 : i32, i32
  }
  func.func @transform_1(%arg0: i32) -> (i32, i32) {
    %c0_i32 = arith.constant 0 : i32
    %c0_i32_0 = arith.constant 0 : i32
    %c0_i32_1 = arith.constant 0 : i32
    return %c0_i32, %c0_i32_0 : i32, i32
  }
  func.func @transform_2(%arg0: i32) -> (i32, i32) {
    %c0_i32 = arith.constant 0 : i32
    %c0_i32_0 = arith.constant 0 : i32
    %c0_i32_1 = arith.constant 0 : i32
    return %c0_i32, %c0_i32_0 : i32, i32
  }
  func.func @transform_3(%arg0: i32) -> (i32, i32) {
    %c0_i32 = arith.constant 0 : i32
    %c0_i32_0 = arith.constant 0 : i32
    %c0_i32_1 = arith.constant 0 : i32
    return %c0_i32, %c0_i32_0 : i32, i32
  }
  func.func @transform_4(%arg0: i32) -> (i32, i32) {
    %c0_i32 = arith.constant 0 : i32
    %c0_i32_0 = arith.constant 0 : i32
    return %arg0, %c0_i32 : i32, i32
  }
}

module attributes {stable_mosaic.version = 11 : i64} {
  func.func @kernel(%arg0: i32, %arg1: memref<8x64xf32, #tpu.memory_space<vmem>>, %arg2: memref<64x16xbf16, #tpu.memory_space<vmem>>, %arg3: memref<1x16xf32, #tpu.memory_space<vmem>>, %arg4: memref<8x16xf32, #tpu.memory_space<vmem>>) attributes {dimension_semantics = [#tpu.dimension_semantics<parallel>], iteration_bounds = array<i64: 1>, scalar_prefetch = 0 : i64, scratch_operands = 0 : i64, tpu.core_type = #tpu.core_type<tc>, window_params = [{transform_indices = @transform_0, window_bounds = array<i64: 8, 64>}, {pipeline_mode = #tpu.pipeline_mode<synchronous>, transform_indices = @transform_1, window_bounds = array<i64: 64, 16>}, {pipeline_mode = #tpu.pipeline_mode<synchronous>, transform_indices = @transform_2, window_bounds = array<i64: 1, 16>}, {transform_indices = @transform_3, window_bounds = array<i64: 8, 16>}]} {
    %c0 = arith.constant 0 : index
    %c0_0 = arith.constant 0 : index
    %0 = vector.load %arg1[%c0, %c0_0] : memref<8x64xf32, #tpu.memory_space<vmem>>, vector<8x64xf32>
    %1 = arith.truncf %0 : vector<8x64xf32> to vector<8x64xbf16>
    %c0_1 = arith.constant 0 : index
    %c0_2 = arith.constant 0 : index
    %2 = vector.load %arg2[%c0_1, %c0_2] : memref<64x16xbf16, #tpu.memory_space<vmem>>, vector<64x16xbf16>
    %cst = arith.constant dense<0.000000e+00> : vector<8x16xf32>
    %3 = tpu.matmul %1, %2, %cst {dimension_numbers = #tpu.dot_dimension_numbers<[1], [0], [0], [1], [0, 0, 1, 1], [], []>} : vector<8x64xbf16>, vector<64x16xbf16>, vector<8x16xf32> -> vector<8x16xf32>
    %c0_3 = arith.constant 0 : index
    %c0_4 = arith.constant 0 : index
    %4 = vector.load %arg3[%c0_3, %c0_4] : memref<1x16xf32, #tpu.memory_space<vmem>>, vector<1x16xf32>
    %5 = vector.broadcast %4 : vector<1x16xf32> to vector<8x16xf32>
    %6 = arith.addf %3, %5 : vector<8x16xf32>
    %c0_5 = arith.constant 0 : index
    %c0_6 = arith.constant 0 : index
    %7 = vector.load %arg4[%c0_5, %c0_6] : memref<8x16xf32, #tpu.memory_space<vmem>>, vector<8x16xf32>
    tpu.vector_store %arg4[%c0_5, %c0_6], %6 {strides = array<i32>} : memref<8x16xf32, #tpu.memory_space<vmem>>, vector<8x16xf32>,
    return
  }
  func.func @transform_0(%arg0: i32) -> (i32, i32) {
    %c0_i32 = arith.constant 0 : i32
    %c0_i32_0 = arith.constant 0 : i32
    return %arg0, %c0_i32 : i32, i32
  }
  func.func @transform_1(%arg0: i32) -> (i32, i32) {
    %c0_i32 = arith.constant 0 : i32
    %c0_i32_0 = arith.constant 0 : i32
    %c0_i32_1 = arith.constant 0 : i32
    return %c0_i32, %c0_i32_0 : i32, i32
  }
  func.func @transform_2(%arg0: i32) -> (i32, i32) {
    %c0_i32 = arith.constant 0 : i32
    %c0_i32_0 = arith.constant 0 : i32
    %c0_i32_1 = arith.constant 0 : i32
    return %c0_i32, %c0_i32_0 : i32, i32
  }
  func.func @transform_3(%arg0: i32) -> (i32, i32) {
    %c0_i32 = arith.constant 0 : i32
    %c0_i32_0 = arith.constant 0 : i32
    return %arg0, %c0_i32 : i32, i32
  }
}

module attributes {stable_mosaic.version = 11 : i64} {
  func.func @_attn_kernel_split(%arg0: i32, %arg1: i32, %arg2: memref<1x16x16xf32, #tpu.memory_space<vmem>>, %arg3: memref<1x4x32xf32, #tpu.memory_space<vmem>>, %arg4: memref<1x16x16xf32, #tpu.memory_space<vmem>>) attributes {dimension_semantics = [#tpu.dimension_semantics<parallel>, #tpu.dimension_semantics<parallel>], iteration_bounds = array<i64: 2, 1>, scalar_prefetch = 0 : i64, scratch_operands = 0 : i64, tpu.core_type = #tpu.core_type<tc>, window_params = [{transform_indices = @transform_0, window_bounds = array<i64: 1, 16, 16>}, {transform_indices = @transform_1, window_bounds = array<i64: 1, 4, 32>}, {transform_indices = @transform_2, window_bounds = array<i64: 1, 16, 16>}]} {
    %c0 = arith.constant 0 : index
    %c0_0 = arith.constant 0 : index
    %c0_1 = arith.constant 0 : index
    %0 = vector.load %arg2[%c0, %c0_0, %c0_1] : memref<1x16x16xf32, #tpu.memory_space<vmem>>, vector<1x16x16xf32>
    %1 = vector.shape_cast %0 : vector<1x16x16xf32> to vector<16x16xf32>
    %c0_2 = arith.constant 0 : index
    %c0_3 = arith.constant 0 : index
    %c0_4 = arith.constant 0 : index
    %2 = vector.load %arg3[%c0_2, %c0_3, %c0_4] : memref<1x4x32xf32, #tpu.memory_space<vmem>>, vector<1x4x32xf32>
    %3 = vector.shape_cast %2 : vector<1x4x32xf32> to vector<4x32xf32>
    %4 = vector.extract_strided_slice %3 {offsets = [0, 0], sizes = [4, 16], strides = [1, 1]} : vector<4x32xf32> to vector<4x16xf32>
    %5 = vector.extract_strided_slice %3 {offsets = [0, 16], sizes = [4, 16], strides = [1, 1]} : vector<4x32xf32> to vector<4x16xf32>
    %6 = arith.truncf %1 : vector<16x16xf32> to vector<16x16xbf16>
    %7 = arith.truncf %4 : vector<4x16xf32> to vector<4x16xbf16>
    %8 = arith.truncf %5 : vector<4x16xf32> to vector<4x16xbf16>
    %cst = arith.constant dense<0.000000e+00> : vector<16x4xf32>
    %9 = tpu.matmul %6, %7, %cst {dimension_numbers = #tpu.dot_dimension_numbers<[1], [1], [0], [0], [0, 0, 1, 0], [], []>} : vector<16x16xbf16>, vector<4x16xbf16>, vector<16x4xf32> -> vector<16x4xf32>
    %cst_5 = arith.constant 2.500000e-01 : f32
    %10 = vector.broadcast %cst_5 : f32 to vector<16x4xf32>
    %11 = arith.mulf %9, %10 : vector<16x4xf32>
    %cst_6 = arith.constant dense<0xFF800000> : vector<16xf32>
    %12 = vector.multi_reduction <maximumf>, %11, %cst_6 [1] : vector<16x4xf32> to vector<16xf32>
    %13 = vector.shape_cast %12 : vector<16xf32> to vector<16x1xf32>
    %14 = vector.broadcast %13 : vector<16x1xf32> to vector<16x4xf32>
    %15 = arith.subf %11, %14 : vector<16x4xf32>
    %16 = math.exp %15 : vector<16x4xf32>
    %cst_7 = arith.constant dense<0.000000e+00> : vector<16xf32>
    %17 = vector.multi_reduction <add>, %16, %cst_7 [1] : vector<16x4xf32> to vector<16xf32>
    %18 = vector.shape_cast %17 : vector<16xf32> to vector<16x1xf32>
    %19 = tpu.reciprocal %18 {approx = true} : vector<16x1xf32> -> vector<16x1xf32>
    %20 = vector.broadcast %19 : vector<16x1xf32> to vector<16x4xf32>
    %21 = arith.mulf %16, %20 : vector<16x4xf32>
    %22 = arith.truncf %21 : vector<16x4xf32> to vector<16x4xbf16>
    %cst_8 = arith.constant dense<0.000000e+00> : vector<16x16xf32>
    %23 = tpu.matmul %22, %8, %cst_8 {dimension_numbers = #tpu.dot_dimension_numbers<[1], [0], [0], [1], [0, 0, 1, 1], [], []>} : vector<16x4xbf16>, vector<4x16xbf16>, vector<16x16xf32> -> vector<16x16xf32>
    %c0_9 = arith.constant 0 : index
    %c0_10 = arith.constant 0 : index
    %c0_11 = arith.constant 0 : index
    %24 = vector.load %arg4[%c0_9, %c0_10, %c0_11] : memref<1x16x16xf32, #tpu.memory_space<vmem>>, vector<1x16x16xf32>
    %25 = vector.shape_cast %24 : vector<1x16x16xf32> to vector<16x16xf32>
    %26 = vector.shape_cast %23 : vector<16x16xf32> to vector<1x16x16xf32>
    tpu.vector_store %arg4[%c0_9, %c0_10, %c0_11], %26 {strides = array<i32>} : memref<1x16x16xf32, #tpu.memory_space<vmem>>, vector<1x16x16xf32>,
    return
  }
  func.func @transform_0(%arg0: i32, %arg1: i32) -> (i32, i32, i32) {
    %c0_i32 = arith.constant 0 : i32
    %c0_i32_0 = arith.constant 0 : i32
    return %arg0, %arg1, %c0_i32 : i32, i32, i32
  }
  func.func @transform_1(%arg0: i32, %arg1: i32) -> (i32, i32, i32) {
    %c0_i32 = arith.constant 0 : i32
    %c0_i32_0 = arith.constant 0 : i32
    %c0_i32_1 = arith.constant 0 : i32
    return %arg0, %c0_i32, %c0_i32_0 : i32, i32, i32
  }
  func.func @transform_2(%arg0: i32, %arg1: i32) -> (i32, i32, i32) {
    %c0_i32 = arith.constant 0 : i32
    %c0_i32_0 = arith.constant 0 : i32
    return %arg0, %arg1, %c0_i32 : i32, i32, i32
  }
}

module attributes {stable_mosaic.version = 11 : i64} {
  func.func @kernel(%arg0: i32, %arg1: memref<32x16xf32, #tpu.memory_space<vmem>>, %arg2: memref<16x16xbf16, #tpu.memory_space<vmem>>, %arg3: memref<1x16xf32, #tpu.memory_space<vmem>>, %arg4: memref<32x16xf32, #tpu.memory_space<vmem>>, %arg5: memref<32x16xf32, #tpu.memory_space<vmem>>) attributes {dimension_semantics = [#tpu.dimension_semantics<parallel>], iteration_bounds = array<i64: 1>, scalar_prefetch = 0 : i64, scratch_operands = 0 : i64, tpu.core_type = #tpu.core_type<tc>, window_params = [{transform_indices = @transform_0, window_bounds = array<i64: 32, 16>}, {pipeline_mode = #tpu.pipeline_mode<synchronous>, transform_indices = @transform_1, window_bounds = array<i64: 16, 16>}, {pipeline_mode = #tpu.pipeline_mode<synchronous>, transform_indices = @transform_2, window_bounds = array<i64: 1, 16>}, {transform_indices = @transform_3, window_bounds = array<i64: 32, 16>}, {transform_indices = @transform_4, window_bounds = array<i64: 32, 16>}]} {
    %c0 = arith.constant 0 : index
    %c0_0 = arith.constant 0 : index
    %0 = vector.load %arg1[%c0, %c0_0] : memref<32x16xf32, #tpu.memory_space<vmem>>, vector<32x16xf32>
    %1 = arith.truncf %0 : vector<32x16xf32> to vector<32x16xbf16>
    %c0_1 = arith.constant 0 : index
    %c0_2 = arith.constant 0 : index
    %2 = vector.load %arg2[%c0_1, %c0_2] : memref<16x16xbf16, #tpu.memory_space<vmem>>, vector<16x16xbf16>
    %cst = arith.constant dense<0.000000e+00> : vector<32x16xf32>
    %3 = tpu.matmul %1, %2, %cst {dimension_numbers = #tpu.dot_dimension_numbers<[1], [0], [0], [1], [0, 0, 1, 1], [], []>} : vector<32x16xbf16>, vector<16x16xbf16>, vector<32x16xf32> -> vector<32x16xf32>
    %c0_3 = arith.constant 0 : index
    %c0_4 = arith.constant 0 : index
    %4 = vector.load %arg3[%c0_3, %c0_4] : memref<1x16xf32, #tpu.memory_space<vmem>>, vector<1x16xf32>
    %5 = vector.broadcast %4 : vector<1x16xf32> to vector<32x16xf32>
    %6 = arith.addf %3, %5 : vector<32x16xf32>
    %c0_5 = arith.constant 0 : index
    %c0_6 = arith.constant 0 : index
    %7 = vector.load %arg4[%c0_5, %c0_6] : memref<32x16xf32, #tpu.memory_space<vmem>>, vector<32x16xf32>
    %8 = arith.addf %6, %7 : vector<32x16xf32>
    %c0_7 = arith.constant 0 : index
    %c0_8 = arith.constant 0 : index
    %9 = vector.load %arg5[%c0_7, %c0_8] : memref<32x16xf32, #tpu.memory_space<vmem>>, vector<32x16xf32>
    tpu.vector_store %arg5[%c0_7, %c0_8], %8 {strides = array<i32>} : memref<32x16xf32, #tpu.memory_space<vmem>>, vector<32x16xf32>,
    return
  }
  func.func @transform_0(%arg0: i32) -> (i32, i32) {
    %c0_i32 = arith.constant 0 : i32
    %c0_i32_0 = arith.constant 0 : i32
    return %arg0, %c0_i32 : i32, i32
  }
  func.func @transform_1(%arg0: i32) -> (i32, i32) {
    %c0_i32 = arith.constant 0 : i32
    %c0_i32_0 = arith.constant 0 : i32
    %c0_i32_1 = arith.constant 0 : i32
    return %c0_i32, %c0_i32_0 : i32, i32
  }
  func.func @transform_2(%arg0: i32) -> (i32, i32) {
    %c0_i32 = arith.constant 0 : i32
    %c0_i32_0 = arith.constant 0 : i32
    %c0_i32_1 = arith.constant 0 : i32
    return %c0_i32, %c0_i32_0 : i32, i32
  }
  func.func @transform_3(%arg0: i32) -> (i32, i32) {
    %c0_i32 = arith.constant 0 : i32
    %c0_i32_0 = arith.constant 0 : i32
    return %arg0, %c0_i32 : i32, i32
  }
  func.func @transform_4(%arg0: i32) -> (i32, i32) {
    %c0_i32 = arith.constant 0 : i32
    %c0_i32_0 = arith.constant 0 : i32
    return %arg0, %c0_i32 : i32, i32
  }
}

module attributes {stable_mosaic.version = 11 : i64} {
  func.func @kernel(%arg0: i32, %arg1: memref<32x16xf32, #tpu.memory_space<vmem>>, %arg2: memref<1x16xf32, #tpu.memory_space<vmem>>, %arg3: memref<1x16xf32, #tpu.memory_space<vmem>>, %arg4: memref<16x32xbf16, #tpu.memory_space<vmem>>, %arg5: memref<1x32xf32, #tpu.memory_space<vmem>>, %arg6: memref<32x32xf32, #tpu.memory_space<vmem>>) attributes {dimension_semantics = [#tpu.dimension_semantics<parallel>], iteration_bounds = array<i64: 1>, scalar_prefetch = 0 : i64, scratch_operands = 0 : i64, tpu.core_type = #tpu.core_type<tc>, window_params = [{transform_indices = @transform_0, window_bounds = array<i64: 32, 16>}, {pipeline_mode = #tpu.pipeline_mode<synchronous>, transform_indices = @transform_1, window_bounds = array<i64: 1, 16>}, {pipeline_mode = #tpu.pipeline_mode<synchronous>, transform_indices = @transform_2, window_bounds = array<i64: 1, 16>}, {pipeline_mode = #tpu.pipeline_mode<synchronous>, transform_indices = @transform_3, window_bounds = array<i64: 16, 32>}, {pipeline_mode = #tpu.pipeline_mode<synchronous>, transform_indices = @transform_4, window_bounds = array<i64: 1, 32>}, {transform_indices = @transform_5, window_bounds = array<i64: 32, 32>}]} {
    %c0 = arith.constant 0 : index
    %c0_0 = arith.constant 0 : index
    %0 = vector.load %arg1[%c0, %c0_0] : memref<32x16xf32, #tpu.memory_space<vmem>>, vector<32x16xf32>
    %c0_1 = arith.constant 0 : index
    %c0_2 = arith.constant 0 : index
    %1 = vector.load %arg2[%c0_1, %c0_2] : memref<1x16xf32, #tpu.memory_space<vmem>>, vector<1x16xf32>
    %c0_3 = arith.constant 0 : index
    %c0_4 = arith.constant 0 : index
    %2 = vector.load %arg3[%c0_3, %c0_4] : memref<1x16xf32, #tpu.memory_space<vmem>>, vector<1x16xf32>
    %cst = arith.constant dense<0.000000e+00> : vector<32xf32>
    %3 = vector.multi_reduction <add>, %0, %cst [1] : vector<32x16xf32> to vector<32xf32>
    %4 = vector.shape_cast %3 : vector<32xf32> to vector<32x1xf32>
    %cst_5 = arith.constant 1.600000e+01 : f32
    %5 = vector.broadcast %cst_5 : f32 to vector<32x1xf32>
    %6 = arith.divf %4, %5 : vector<32x1xf32>
    %7 = vector.broadcast %6 : vector<32x1xf32> to vector<32x16xf32>
    %8 = arith.subf %0, %7 : vector<32x16xf32>
    %9 = arith.mulf %8, %8 : vector<32x16xf32>
    %cst_6 = arith.constant dense<0.000000e+00> : vector<32xf32>
    %10 = vector.multi_reduction <add>, %9, %cst_6 [1] : vector<32x16xf32> to vector<32xf32>
    %11 = vector.shape_cast %10 : vector<32xf32> to vector<32x1xf32>
    %cst_7 = arith.constant 1.600000e+01 : f32
    %12 = vector.broadcast %cst_7 : f32 to vector<32x1xf32>
    %13 = arith.divf %11, %12 : vector<32x1xf32>
    %14 = vector.broadcast %6 : vector<32x1xf32> to vector<32x16xf32>
    %15 = arith.subf %0, %14 : vector<32x16xf32>
    %cst_8 = arith.constant 9.99999974E-6 : f32
    %16 = vector.broadcast %cst_8 : f32 to vector<32x1xf32>
    %17 = arith.addf %13, %16 : vector<32x1xf32>
    %18 = math.rsqrt %17 : vector<32x1xf32>
    %19 = vector.broadcast %18 : vector<32x1xf32> to vector<32x16xf32>
    %20 = arith.mulf %15, %19 : vector<32x16xf32>
    %21 = vector.broadcast %1 : vector<1x16xf32> to vector<32x16xf32>
    %22 = arith.mulf %20, %21 : vector<32x16xf32>
    %23 = vector.broadcast %2 : vector<1x16xf32> to vector<32x16xf32>
    %24 = arith.addf %22, %23 : vector<32x16xf32>
    %25 = arith.truncf %24 : vector<32x16xf32> to vector<32x16xbf16>
    %c0_9 = arith.constant 0 : index
    %c0_10 = arith.constant 0 : index
    %26 = vector.load %arg4[%c0_9, %c0_10] : memref<16x32xbf16, #tpu.memory_space<vmem>>, vector<16x32xbf16>
    %cst_11 = arith.constant dense<0.000000e+00> : vector<32x32xf32>
    %27 = tpu.matmul %25, %26, %cst_11 {dimension_numbers = #tpu.dot_dimension_numbers<[1], [0], [0], [1], [0, 0, 1, 1], [], []>} : vector<32x16xbf16>, vector<16x32xbf16>, vector<32x32xf32> -> vector<32x32xf32>
    %c0_12 = arith.constant 0 : index
    %c0_13 = arith.constant 0 : index
    %28 = vector.load %arg5[%c0_12, %c0_13] : memref<1x32xf32, #tpu.memory_space<vmem>>, vector<1x32xf32>
    %29 = vector.broadcast %28 : vector<1x32xf32> to vector<32x32xf32>
    %30 = arith.addf %27, %29 : vector<32x32xf32>
    %cst_14 = arith.constant 5.000000e-01 : f32
    %31 = vector.broadcast %cst_14 : f32 to vector<32x32xf32>
    %32 = arith.mulf %31, %30 : vector<32x32xf32>
    %cst_15 = arith.constant 4.471500e-02 : f32
    %33 = vector.broadcast %cst_15 : f32 to vector<32x32xf32>
    %34 = arith.mulf %33, %30 : vector<32x32xf32>
    %35 = arith.mulf %34, %30 : vector<32x32xf32>
    %36 = arith.mulf %35, %30 : vector<32x32xf32>
    %37 = arith.addf %30, %36 : vector<32x32xf32>
    %cst_16 = arith.constant 0.797884583 : f32
    %38 = vector.broadcast %cst_16 : f32 to vector<32x32xf32>
    %39 = arith.mulf %38, %37 : vector<32x32xf32>
    %40 = math.tanh %39 : vector<32x32xf32>
    %cst_17 = arith.constant 1.000000e+00 : f32
    %41 = vector.broadcast %cst_17 : f32 to vector<32x32xf32>
    %42 = arith.addf %41, %40 : vector<32x32xf32>
    %43 = arith.mulf %32, %42 : vector<32x32xf32>
    %c0_18 = arith.constant 0 : index
    %c0_19 = arith.constant 0 : index
    %44 = vector.load %arg6[%c0_18, %c0_19] : memref<32x32xf32, #tpu.memory_space<vmem>>, vector<32x32xf32>
    tpu.vector_store %arg6[%c0_18, %c0_19], %43 {strides = array<i32>} : memref<32x32xf32, #tpu.memory_space<vmem>>, vector<32x32xf32>,
    return
  }
  func.func @transform_0(%arg0: i32) -> (i32, i32) {
    %c0_i32 = arith.constant 0 : i32
    %c0_i32_0 = arith.constant 0 : i32
    return %arg0, %c0_i32 : i32, i32
  }
  func.func @transform_1(%arg0: i32) -> (i32, i32) {
    %c0_i32 = arith.constant 0 : i32
    %c0_i32_0 = arith.constant 0 : i32
    %c0_i32_1 = arith.constant 0 : i32
    return %c0_i32, %c0_i32_0 : i32, i32
  }
  func.func @transform_2(%arg0: i32) -> (i32, i32) {
    %c0_i32 = arith.constant 0 : i32
    %c0_i32_0 = arith.constant 0 : i32
    %c0_i32_1 = arith.constant 0 : i32
    return %c0_i32, %c0_i32_0 : i32, i32
  }
  func.func @transform_3(%arg0: i32) -> (i32, i32) {
    %c0_i32 = arith.constant 0 : i32
    %c0_i32_0 = arith.constant 0 : i32
    %c0_i32_1 = arith.constant 0 : i32
    return %c0_i32, %c0_i32_0 : i32, i32
  }
  func.func @transform_4(%arg0: i32) -> (i32, i32) {
    %c0_i32 = arith.constant 0 : i32
    %c0_i32_0 = arith.constant 0 : i32
    %c0_i32_1 = arith.constant 0 : i32
    return %c0_i32, %c0_i32_0 : i32, i32
  }
  func.func @transform_5(%arg0: i32) -> (i32, i32) {
    %c0_i32 = arith.constant 0 : i32
    %c0_i32_0 = arith.constant 0 : i32
    return %arg0, %c0_i32 : i32, i32
  }
}

module attributes {stable_mosaic.version = 11 : i64} {
  func.func @kernel(%arg0: i32, %arg1: memref<32x32xf32, #tpu.memory_space<vmem>>, %arg2: memref<32x16xbf16, #tpu.memory_space<vmem>>, %arg3: memref<1x16xf32, #tpu.memory_space<vmem>>, %arg4: memref<32x16xf32, #tpu.memory_space<vmem>>, %arg5: memref<32x16xf32, #tpu.memory_space<vmem>>) attributes {dimension_semantics = [#tpu.dimension_semantics<parallel>], iteration_bounds = array<i64: 1>, scalar_prefetch = 0 : i64, scratch_operands = 0 : i64, tpu.core_type = #tpu.core_type<tc>, window_params = [{transform_indices = @transform_0, window_bounds = array<i64: 32, 32>}, {pipeline_mode = #tpu.pipeline_mode<synchronous>, transform_indices = @transform_1, window_bounds = array<i64: 32, 16>}, {pipeline_mode = #tpu.pipeline_mode<synchronous>, transform_indices = @transform_2, window_bounds = array<i64: 1, 16>}, {transform_indices = @transform_3, window_bounds = array<i64: 32, 16>}, {transform_indices = @transform_4, window_bounds = array<i64: 32, 16>}]} {
    %c0 = arith.constant 0 : index
    %c0_0 = arith.constant 0 : index
    %0 = vector.load %arg1[%c0, %c0_0] : memref<32x32xf32, #tpu.memory_space<vmem>>, vector<32x32xf32>
    %1 = arith.truncf %0 : vector<32x32xf32> to vector<32x32xbf16>
    %c0_1 = arith.constant 0 : index
    %c0_2 = arith.constant 0 : index
    %2 = vector.load %arg2[%c0_1, %c0_2] : memref<32x16xbf16, #tpu.memory_space<vmem>>, vector<32x16xbf16>
    %cst = arith.constant dense<0.000000e+00> : vector<32x16xf32>
    %3 = tpu.matmul %1, %2, %cst {dimension_numbers = #tpu.dot_dimension_numbers<[1], [0], [0], [1], [0, 0, 1, 1], [], []>} : vector<32x32xbf16>, vector<32x16xbf16>, vector<32x16xf32> -> vector<32x16xf32>
    %c0_3 = arith.constant 0 : index
    %c0_4 = arith.constant 0 : index
    %4 = vector.load %arg3[%c0_3, %c0_4] : memref<1x16xf32, #tpu.memory_space<vmem>>, vector<1x16xf32>
    %5 = vector.broadcast %4 : vector<1x16xf32> to vector<32x16xf32>
    %6 = arith.addf %3, %5 : vector<32x16xf32>
    %c0_5 = arith.constant 0 : index
    %c0_6 = arith.constant 0 : index
    %7 = vector.load %arg4[%c0_5, %c0_6] : memref<32x16xf32, #tpu.memory_space<vmem>>, vector<32x16xf32>
    %8 = arith.addf %6, %7 : vector<32x16xf32>
    %c0_7 = arith.constant 0 : index
    %c0_8 = arith.constant 0 : index
    %9 = vector.load %arg5[%c0_7, %c0_8] : memref<32x16xf32, #tpu.memory_space<vmem>>, vector<32x16xf32>
    tpu.vector_store %arg5[%c0_7, %c0_8], %8 {strides = array<i32>} : memref<32x16xf32, #tpu.memory_space<vmem>>, vector<32x16xf32>,
    return
  }
  func.func @transform_0(%arg0: i32) -> (i32, i32) {
    %c0_i32 = arith.constant 0 : i32
    %c0_i32_0 = arith.constant 0 : i32
    return %arg0, %c0_i32 : i32, i32
  }
  func.func @transform_1(%arg0: i32) -> (i32, i32) {
    %c0_i32 = arith.constant 0 : i32
    %c0_i32_0 = arith.constant 0 : i32
    %c0_i32_1 = arith.constant 0 : i32
    return %c0_i32, %c0_i32_0 : i32, i32
  }
  func.func @transform_2(%arg0: i32) -> (i32, i32) {
    %c0_i32 = arith.constant 0 : i32
    %c0_i32_0 = arith.constant 0 : i32
    %c0_i32_1 = arith.constant 0 : i32
    return %c0_i32, %c0_i32_0 : i32, i32
  }
  func.func @transform_3(%arg0: i32) -> (i32, i32) {
    %c0_i32 = arith.constant 0 : i32
    %c0_i32_0 = arith.constant 0 : i32
    return %arg0, %c0_i32 : i32, i32
  }
  func.func @transform_4(%arg0: i32) -> (i32, i32) {
    %c0_i32 = arith.constant 0 : i32
    %c0_i32_0 = arith.constant 0 : i32
    return %arg0, %c0_i32 : i32, i32
  }
}

module attributes {stable_mosaic.version = 11 : i64} {
  func.func @_dwconv_kernel(%arg0: i32, %arg1: i32, %arg2: memref<1x6x6x16xf32, #tpu.memory_space<vmem>>, %arg3: memref<3x3x16xf32, #tpu.memory_space<vmem>>, %arg4: memref<1x16xf32, #tpu.memory_space<vmem>>, %arg5: memref<1x4x4x16xf32, #tpu.memory_space<vmem>>, %arg6: memref<1x4x4x16xf32, #tpu.memory_space<vmem>>) attributes {dimension_semantics = [#tpu.dimension_semantics<parallel>, #tpu.dimension_semantics<parallel>], iteration_bounds = array<i64: 2, 1>, scalar_prefetch = 0 : i64, scratch_operands = 0 : i64, tpu.core_type = #tpu.core_type<tc>, window_params = [{transform_indices = @transform_0, window_bounds = array<i64: 1, 6, 6, 16>}, {transform_indices = @transform_1, window_bounds = array<i64: 3, 3, 16>}, {transform_indices = @transform_2, window_bounds = array<i64: 1, 16>}, {transform_indices = @transform_3, window_bounds = array<i64: 1, 4, 4, 16>}, {transform_indices = @transform_4, window_bounds = array<i64: 1, 4, 4, 16>}]} {
    %c0 = arith.constant 0 : index
    %c0_0 = arith.constant 0 : index
    %c0_1 = arith.constant 0 : index
    %0 = vector.load %arg3[%c0, %c0_0, %c0_1] : memref<3x3x16xf32, #tpu.memory_space<vmem>>, vector<3x3x16xf32>
    %c0_2 = arith.constant 0 : index
    %c0_3 = arith.constant 0 : index
    %c0_4 = arith.constant 0 : index
    %c0_5 = arith.constant 0 : index
    %1 = vector.load %arg5[%c0_2, %c0_3, %c0_4, %c0_5] : memref<1x4x4x16xf32, #tpu.memory_space<vmem>>, vector<1x4x4x16xf32>
    %2 = vector.shape_cast %1 : vector<1x4x4x16xf32> to vector<4x4x16xf32>
    %c0_6 = arith.constant 0 : index
    %c0_7 = arith.constant 0 : index
    %3 = vector.load %arg4[%c0_6, %c0_7] : memref<1x16xf32, #tpu.memory_space<vmem>>, vector<1x16xf32>
    %4 = vector.shape_cast %3 : vector<1x16xf32> to vector<1x1x16xf32>
    %5 = vector.broadcast %4 : vector<1x1x16xf32> to vector<4x4x16xf32>
    %6 = arith.addf %2, %5 : vector<4x4x16xf32>
    %c0_8 = arith.constant 0 : index
    %c0_9 = arith.constant 0 : index
    %c0_10 = arith.constant 0 : index
    %c0_11 = arith.constant 0 : index
    %7 = vector.load %arg2[%c0_8, %c0_9, %c0_10, %c0_11] : memref<1x6x6x16xf32, #tpu.memory_space<vmem>>, vector<1x6x4x16xf32>
    %8 = vector.shape_cast %7 : vector<1x6x4x16xf32> to vector<6x4x16xf32>
    %c0_12 = arith.constant 0 : index
    %c0_13 = arith.constant 0 : index
    %c1 = arith.constant 1 : index
    %c0_14 = arith.constant 0 : index
    %9 = vector.load %arg2[%c0_12, %c0_13, %c1, %c0_14] : memref<1x6x6x16xf32, #tpu.memory_space<vmem>>, vector<1x6x4x16xf32>
    %10 = vector.shape_cast %9 : vector<1x6x4x16xf32> to vector<6x4x16xf32>
    %c0_15 = arith.constant 0 : index
    %c0_16 = arith.constant 0 : index
    %c2 = arith.constant 2 : index
    %c0_17 = arith.constant 0 : index
    %11 = vector.load %arg2[%c0_15, %c0_16, %c2, %c0_17] : memref<1x6x6x16xf32, #tpu.memory_space<vmem>>, vector<1x6x4x16xf32>
    %12 = vector.shape_cast %11 : vector<1x6x4x16xf32> to vector<6x4x16xf32>
    %13 = vector.extract_strided_slice %8 {offsets = [0, 0, 0], sizes = [4, 4, 16], strides = [1, 1, 1]} : vector<6x4x16xf32> to vector<4x4x16xf32>
    %14 = vector.extract_strided_slice %0 {offsets = [0, 0, 0], sizes = [1, 1, 16], strides = [1, 1, 1]} : vector<3x3x16xf32> to vector<1x1x16xf32>
    %15 = vector.shape_cast %14 : vector<1x1x16xf32> to vector<16xf32>
    %16 = vector.shape_cast %15 : vector<16xf32> to vector<1x1x16xf32>
    %17 = vector.broadcast %16 : vector<1x1x16xf32> to vector<4x4x16xf32>
    %18 = arith.mulf %13, %17 : vector<4x4x16xf32>
    %19 = arith.addf %6, %18 : vector<4x4x16xf32>
    %20 = vector.extract_strided_slice %10 {offsets = [0, 0, 0], sizes = [4, 4, 16], strides = [1, 1, 1]} : vector<6x4x16xf32> to vector<4x4x16xf32>
    %21 = vector.extract_strided_slice %0 {offsets = [0, 1, 0], sizes = [1, 1, 16], strides = [1, 1, 1]} : vector<3x3x16xf32> to vector<1x1x16xf32>
    %22 = vector.shape_cast %21 : vector<1x1x16xf32> to vector<16xf32>
    %23 = vector.shape_cast %22 : vector<16xf32> to vector<1x1x16xf32>
    %24 = vector.broadcast %23 : vector<1x1x16xf32> to vector<4x4x16xf32>
    %25 = arith.mulf %20, %24 : vector<4x4x16xf32>
    %26 = arith.addf %19, %25 : vector<4x4x16xf32>
    %27 = vector.extract_strided_slice %12 {offsets = [0, 0, 0], sizes = [4, 4, 16], strides = [1, 1, 1]} : vector<6x4x16xf32> to vector<4x4x16xf32>
    %28 = vector.extract_strided_slice %0 {offsets = [0, 2, 0], sizes = [1, 1, 16], strides = [1, 1, 1]} : vector<3x3x16xf32> to vector<1x1x16xf32>
    %29 = vector.shape_cast %28 : vector<1x1x16xf32> to vector<16xf32>
    %30 = vector.shape_cast %29 : vector<16xf32> to vector<1x1x16xf32>
    %31 = vector.broadcast %30 : vector<1x1x16xf32> to vector<4x4x16xf32>
    %32 = arith.mulf %27, %31 : vector<4x4x16xf32>
    %33 = arith.addf %26, %32 : vector<4x4x16xf32>
    %34 = vector.extract_strided_slice %8 {offsets = [1, 0, 0], sizes = [4, 4, 16], strides = [1, 1, 1]} : vector<6x4x16xf32> to vector<4x4x16xf32>
    %35 = vector.extract_strided_slice %0 {offsets = [1, 0, 0], sizes = [1, 1, 16], strides = [1, 1, 1]} : vector<3x3x16xf32> to vector<1x1x16xf32>
    %36 = vector.shape_cast %35 : vector<1x1x16xf32> to vector<16xf32>
    %37 = vector.shape_cast %36 : vector<16xf32> to vector<1x1x16xf32>
    %38 = vector.broadcast %37 : vector<1x1x16xf32> to vector<4x4x16xf32>
    %39 = arith.mulf %34, %38 : vector<4x4x16xf32>
    %40 = arith.addf %33, %39 : vector<4x4x16xf32>
    %41 = vector.extract_strided_slice %10 {offsets = [1, 0, 0], sizes = [4, 4, 16], strides = [1, 1, 1]} : vector<6x4x16xf32> to vector<4x4x16xf32>
    %42 = vector.extract_strided_slice %0 {offsets = [1, 1, 0], sizes = [1, 1, 16], strides = [1, 1, 1]} : vector<3x3x16xf32> to vector<1x1x16xf32>
    %43 = vector.shape_cast %42 : vector<1x1x16xf32> to vector<16xf32>
    %44 = vector.shape_cast %43 : vector<16xf32> to vector<1x1x16xf32>
    %45 = vector.broadcast %44 : vector<1x1x16xf32> to vector<4x4x16xf32>
    %46 = arith.mulf %41, %45 : vector<4x4x16xf32>
    %47 = arith.addf %40, %46 : vector<4x4x16xf32>
    %48 = vector.extract_strided_slice %12 {offsets = [1, 0, 0], sizes = [4, 4, 16], strides = [1, 1, 1]} : vector<6x4x16xf32> to vector<4x4x16xf32>
    %49 = vector.extract_strided_slice %0 {offsets = [1, 2, 0], sizes = [1, 1, 16], strides = [1, 1, 1]} : vector<3x3x16xf32> to vector<1x1x16xf32>
    %50 = vector.shape_cast %49 : vector<1x1x16xf32> to vector<16xf32>
    %51 = vector.shape_cast %50 : vector<16xf32> to vector<1x1x16xf32>
    %52 = vector.broadcast %51 : vector<1x1x16xf32> to vector<4x4x16xf32>
    %53 = arith.mulf %48, %52 : vector<4x4x16xf32>
    %54 = arith.addf %47, %53 : vector<4x4x16xf32>
    %55 = vector.extract_strided_slice %8 {offsets = [2, 0, 0], sizes = [4, 4, 16], strides = [1, 1, 1]} : vector<6x4x16xf32> to vector<4x4x16xf32>
    %56 = vector.extract_strided_slice %0 {offsets = [2, 0, 0], sizes = [1, 1, 16], strides = [1, 1, 1]} : vector<3x3x16xf32> to vector<1x1x16xf32>
    %57 = vector.shape_cast %56 : vector<1x1x16xf32> to vector<16xf32>
    %58 = vector.shape_cast %57 : vector<16xf32> to vector<1x1x16xf32>
    %59 = vector.broadcast %58 : vector<1x1x16xf32> to vector<4x4x16xf32>
    %60 = arith.mulf %55, %59 : vector<4x4x16xf32>
    %61 = arith.addf %54, %60 : vector<4x4x16xf32>
    %62 = vector.extract_strided_slice %10 {offsets = [2, 0, 0], sizes = [4, 4, 16], strides = [1, 1, 1]} : vector<6x4x16xf32> to vector<4x4x16xf32>
    %63 = vector.extract_strided_slice %0 {offsets = [2, 1, 0], sizes = [1, 1, 16], strides = [1, 1, 1]} : vector<3x3x16xf32> to vector<1x1x16xf32>
    %64 = vector.shape_cast %63 : vector<1x1x16xf32> to vector<16xf32>
    %65 = vector.shape_cast %64 : vector<16xf32> to vector<1x1x16xf32>
    %66 = vector.broadcast %65 : vector<1x1x16xf32> to vector<4x4x16xf32>
    %67 = arith.mulf %62, %66 : vector<4x4x16xf32>
    %68 = arith.addf %61, %67 : vector<4x4x16xf32>
    %69 = vector.extract_strided_slice %12 {offsets = [2, 0, 0], sizes = [4, 4, 16], strides = [1, 1, 1]} : vector<6x4x16xf32> to vector<4x4x16xf32>
    %70 = vector.extract_strided_slice %0 {offsets = [2, 2, 0], sizes = [1, 1, 16], strides = [1, 1, 1]} : vector<3x3x16xf32> to vector<1x1x16xf32>
    %71 = vector.shape_cast %70 : vector<1x1x16xf32> to vector<16xf32>
    %72 = vector.shape_cast %71 : vector<16xf32> to vector<1x1x16xf32>
    %73 = vector.broadcast %72 : vector<1x1x16xf32> to vector<4x4x16xf32>
    %74 = arith.mulf %69, %73 : vector<4x4x16xf32>
    %75 = arith.addf %68, %74 : vector<4x4x16xf32>
    %c0_18 = arith.constant 0 : index
    %c0_19 = arith.constant 0 : index
    %c0_20 = arith.constant 0 : index
    %c0_21 = arith.constant 0 : index
    %76 = vector.load %arg6[%c0_18, %c0_19, %c0_20, %c0_21] : memref<1x4x4x16xf32, #tpu.memory_space<vmem>>, vector<1x4x4x16xf32>
    %77 = vector.shape_cast %76 : vector<1x4x4x16xf32> to vector<4x4x16xf32>
    %78 = vector.shape_cast %75 : vector<4x4x16xf32> to vector<1x4x4x16xf32>
    tpu.vector_store %arg6[%c0_18, %c0_19, %c0_20, %c0_21], %78 {strides = array<i32>} : memref<1x4x4x16xf32, #tpu.memory_space<vmem>>, vector<1x4x4x16xf32>,
    return
  }
  func.func @transform_0(%arg0: i32, %arg1: i32) -> (i32, i32, i32, i32) {
    %c0_i32 = arith.constant 0 : i32
    %c0_i32_0 = arith.constant 0 : i32
    %c0_i32_1 = arith.constant 0 : i32
    return %arg0, %c0_i32, %c0_i32_0, %arg1 : i32, i32, i32, i32
  }
  func.func @transform_1(%arg0: i32, %arg1: i32) -> (i32, i32, i32) {
    %c0_i32 = arith.constant 0 : i32
    %c0_i32_0 = arith.constant 0 : i32
    %c0_i32_1 = arith.constant 0 : i32
    return %c0_i32, %c0_i32_0, %arg1 : i32, i32, i32
  }
  func.func @transform_2(%arg0: i32, %arg1: i32) -> (i32, i32) {
    %c0_i32 = arith.constant 0 : i32
    %c0_i32_0 = arith.constant 0 : i32
    return %c0_i32, %arg1 : i32, i32
  }
  func.func @transform_3(%arg0: i32, %arg1: i32) -> (i32, i32, i32, i32) {
    %c0_i32 = arith.constant 0 : i32
    %c0_i32_0 = arith.constant 0 : i32
    %c0_i32_1 = arith.constant 0 : i32
    return %arg0, %c0_i32, %c0_i32_0, %arg1 : i32, i32, i32, i32
  }
  func.func @transform_4(%arg0: i32, %arg1: i32) -> (i32, i32, i32, i32) {
    %c0_i32 = arith.constant 0 : i32
    %c0_i32_0 = arith.constant 0 : i32
    %c0_i32_1 = arith.constant 0 : i32
    return %arg0, %c0_i32, %c0_i32_0, %arg1 : i32, i32, i32, i32
  }
}

module attributes {stable_mosaic.version = 11 : i64} {
  func.func @kernel(%arg0: i32, %arg1: memref<8x64xf32, #tpu.memory_space<vmem>>, %arg2: memref<64x32xbf16, #tpu.memory_space<vmem>>, %arg3: memref<1x32xf32, #tpu.memory_space<vmem>>, %arg4: memref<1x32xf32, #tpu.memory_space<vmem>>, %arg5: memref<1x32xf32, #tpu.memory_space<vmem>>, %arg6: memref<8x32xf32, #tpu.memory_space<vmem>>) attributes {dimension_semantics = [#tpu.dimension_semantics<parallel>], iteration_bounds = array<i64: 1>, scalar_prefetch = 0 : i64, scratch_operands = 0 : i64, tpu.core_type = #tpu.core_type<tc>, window_params = [{transform_indices = @transform_0, window_bounds = array<i64: 8, 64>}, {pipeline_mode = #tpu.pipeline_mode<synchronous>, transform_indices = @transform_1, window_bounds = array<i64: 64, 32>}, {pipeline_mode = #tpu.pipeline_mode<synchronous>, transform_indices = @transform_2, window_bounds = array<i64: 1, 32>}, {pipeline_mode = #tpu.pipeline_mode<synchronous>, transform_indices = @transform_3, window_bounds = array<i64: 1, 32>}, {pipeline_mode = #tpu.pipeline_mode<synchronous>, transform_indices = @transform_4, window_bounds = array<i64: 1, 32>}, {transform_indices = @transform_5, window_bounds = array<i64: 8, 32>}]} {
    %c0 = arith.constant 0 : index
    %c0_0 = arith.constant 0 : index
    %0 = vector.load %arg1[%c0, %c0_0] : memref<8x64xf32, #tpu.memory_space<vmem>>, vector<8x64xf32>
    %1 = arith.truncf %0 : vector<8x64xf32> to vector<8x64xbf16>
    %c0_1 = arith.constant 0 : index
    %c0_2 = arith.constant 0 : index
    %2 = vector.load %arg2[%c0_1, %c0_2] : memref<64x32xbf16, #tpu.memory_space<vmem>>, vector<64x32xbf16>
    %cst = arith.constant dense<0.000000e+00> : vector<8x32xf32>
    %3 = tpu.matmul %1, %2, %cst {dimension_numbers = #tpu.dot_dimension_numbers<[1], [0], [0], [1], [0, 0, 1, 1], [], []>} : vector<8x64xbf16>, vector<64x32xbf16>, vector<8x32xf32> -> vector<8x32xf32>
    %c0_3 = arith.constant 0 : index
    %c0_4 = arith.constant 0 : index
    %4 = vector.load %arg3[%c0_3, %c0_4] : memref<1x32xf32, #tpu.memory_space<vmem>>, vector<1x32xf32>
    %5 = vector.broadcast %4 : vector<1x32xf32> to vector<8x32xf32>
    %6 = arith.addf %3, %5 : vector<8x32xf32>
    %c0_5 = arith.constant 0 : index
    %c0_6 = arith.constant 0 : index
    %7 = vector.load %arg4[%c0_5, %c0_6] : memref<1x32xf32, #tpu.memory_space<vmem>>, vector<1x32xf32>
    %c0_7 = arith.constant 0 : index
    %c0_8 = arith.constant 0 : index
    %8 = vector.load %arg5[%c0_7, %c0_8] : memref<1x32xf32, #tpu.memory_space<vmem>>, vector<1x32xf32>
    %cst_9 = arith.constant dense<0.000000e+00> : vector<8xf32>
    %9 = vector.multi_reduction <add>, %6, %cst_9 [1] : vector<8x32xf32> to vector<8xf32>
    %10 = vector.shape_cast %9 : vector<8xf32> to vector<8x1xf32>
    %cst_10 = arith.constant 3.200000e+01 : f32
    %11 = vector.broadcast %cst_10 : f32 to vector<8x1xf32>
    %12 = arith.divf %10, %11 : vector<8x1xf32>
    %13 = vector.broadcast %12 : vector<8x1xf32> to vector<8x32xf32>
    %14 = arith.subf %6, %13 : vector<8x32xf32>
    %15 = arith.mulf %14, %14 : vector<8x32xf32>
    %cst_11 = arith.constant dense<0.000000e+00> : vector<8xf32>
    %16 = vector.multi_reduction <add>, %15, %cst_11 [1] : vector<8x32xf32> to vector<8xf32>
    %17 = vector.shape_cast %16 : vector<8xf32> to vector<8x1xf32>
    %cst_12 = arith.constant 3.200000e+01 : f32
    %18 = vector.broadcast %cst_12 : f32 to vector<8x1xf32>
    %19 = arith.divf %17, %18 : vector<8x1xf32>
    %20 = vector.broadcast %12 : vector<8x1xf32> to vector<8x32xf32>
    %21 = arith.subf %6, %20 : vector<8x32xf32>
    %cst_13 = arith.constant 9.99999974E-6 : f32
    %22 = vector.broadcast %cst_13 : f32 to vector<8x1xf32>
    %23 = arith.addf %19, %22 : vector<8x1xf32>
    %24 = math.rsqrt %23 : vector<8x1xf32>
    %25 = vector.broadcast %24 : vector<8x1xf32> to vector<8x32xf32>
    %26 = arith.mulf %21, %25 : vector<8x32xf32>
    %27 = vector.broadcast %7 : vector<1x32xf32> to vector<8x32xf32>
    %28 = arith.mulf %26, %27 : vector<8x32xf32>
    %29 = vector.broadcast %8 : vector<1x32xf32> to vector<8x32xf32>
    %30 = arith.addf %28, %29 : vector<8x32xf32>
    %c0_14 = arith.constant 0 : index
    %c0_15 = arith.constant 0 : index
    %31 = vector.load %arg6[%c0_14, %c0_15] : memref<8x32xf32, #tpu.memory_space<vmem>>, vector<8x32xf32>
    tpu.vector_store %arg6[%c0_14, %c0_15], %30 {strides = array<i32>} : memref<8x32xf32, #tpu.memory_space<vmem>>, vector<8x32xf32>,
    return
  }
  func.func @transform_0(%arg0: i32) -> (i32, i32) {
    %c0_i32 = arith.constant 0 : i32
    %c0_i32_0 = arith.constant 0 : i32
    return %arg0, %c0_i32 : i32, i32
  }
  func.func @transform_1(%arg0: i32) -> (i32, i32) {
    %c0_i32 = arith.constant 0 : i32
    %c0_i32_0 = arith.constant 0 : i32
    %c0_i32_1 = arith.constant 0 : i32
    return %c0_i32, %c0_i32_0 : i32, i32
  }
  func.func @transform_2(%arg0: i32) -> (i32, i32) {
    %c0_i32 = arith.constant 0 : i32
    %c0_i32_0 = arith.constant 0 : i32
    %c0_i32_1 = arith.constant 0 : i32
    return %c0_i32, %c0_i32_0 : i32, i32
  }
  func.func @transform_3(%arg0: i32) -> (i32, i32) {
    %c0_i32 = arith.constant 0 : i32
    %c0_i32_0 = arith.constant 0 : i32
    %c0_i32_1 = arith.constant 0 : i32
    return %c0_i32, %c0_i32_0 : i32, i32
  }
  func.func @transform_4(%arg0: i32) -> (i32, i32) {
    %c0_i32 = arith.constant 0 : i32
    %c0_i32_0 = arith.constant 0 : i32
    %c0_i32_1 = arith.constant 0 : i32
    return %c0_i32, %c0_i32_0 : i32, i32
  }
  func.func @transform_5(%arg0: i32) -> (i32, i32) {
    %c0_i32 = arith.constant 0 : i32
    %c0_i32_0 = arith.constant 0 : i32
    return %arg0, %c0_i32 : i32, i32
  }
}

module attributes {stable_mosaic.version = 11 : i64} {
  func.func @kernel(%arg0: i32, %arg1: memref<8x32xf32, #tpu.memory_space<vmem>>, %arg2: memref<1x32xf32, #tpu.memory_space<vmem>>, %arg3: memref<1x32xf32, #tpu.memory_space<vmem>>, %arg4: memref<32x96xbf16, #tpu.memory_space<vmem>>, %arg5: memref<8x96xf32, #tpu.memory_space<vmem>>) attributes {dimension_semantics = [#tpu.dimension_semantics<parallel>], iteration_bounds = array<i64: 1>, scalar_prefetch = 0 : i64, scratch_operands = 0 : i64, tpu.core_type = #tpu.core_type<tc>, window_params = [{transform_indices = @transform_0, window_bounds = array<i64: 8, 32>}, {pipeline_mode = #tpu.pipeline_mode<synchronous>, transform_indices = @transform_1, window_bounds = array<i64: 1, 32>}, {pipeline_mode = #tpu.pipeline_mode<synchronous>, transform_indices = @transform_2, window_bounds = array<i64: 1, 32>}, {pipeline_mode = #tpu.pipeline_mode<synchronous>, transform_indices = @transform_3, window_bounds = array<i64: 32, 96>}, {transform_indices = @transform_4, window_bounds = array<i64: 8, 96>}]} {
    %c0 = arith.constant 0 : index
    %c0_0 = arith.constant 0 : index
    %0 = vector.load %arg1[%c0, %c0_0] : memref<8x32xf32, #tpu.memory_space<vmem>>, vector<8x32xf32>
    %c0_1 = arith.constant 0 : index
    %c0_2 = arith.constant 0 : index
    %1 = vector.load %arg2[%c0_1, %c0_2] : memref<1x32xf32, #tpu.memory_space<vmem>>, vector<1x32xf32>
    %c0_3 = arith.constant 0 : index
    %c0_4 = arith.constant 0 : index
    %2 = vector.load %arg3[%c0_3, %c0_4] : memref<1x32xf32, #tpu.memory_space<vmem>>, vector<1x32xf32>
    %cst = arith.constant dense<0.000000e+00> : vector<8xf32>
    %3 = vector.multi_reduction <add>, %0, %cst [1] : vector<8x32xf32> to vector<8xf32>
    %4 = vector.shape_cast %3 : vector<8xf32> to vector<8x1xf32>
    %cst_5 = arith.constant 3.200000e+01 : f32
    %5 = vector.broadcast %cst_5 : f32 to vector<8x1xf32>
    %6 = arith.divf %4, %5 : vector<8x1xf32>
    %7 = vector.broadcast %6 : vector<8x1xf32> to vector<8x32xf32>
    %8 = arith.subf %0, %7 : vector<8x32xf32>
    %9 = arith.mulf %8, %8 : vector<8x32xf32>
    %cst_6 = arith.constant dense<0.000000e+00> : vector<8xf32>
    %10 = vector.multi_reduction <add>, %9, %cst_6 [1] : vector<8x32xf32> to vector<8xf32>
    %11 = vector.shape_cast %10 : vector<8xf32> to vector<8x1xf32>
    %cst_7 = arith.constant 3.200000e+01 : f32
    %12 = vector.broadcast %cst_7 : f32 to vector<8x1xf32>
    %13 = arith.divf %11, %12 : vector<8x1xf32>
    %14 = vector.broadcast %6 : vector<8x1xf32> to vector<8x32xf32>
    %15 = arith.subf %0, %14 : vector<8x32xf32>
    %cst_8 = arith.constant 9.99999974E-6 : f32
    %16 = vector.broadcast %cst_8 : f32 to vector<8x1xf32>
    %17 = arith.addf %13, %16 : vector<8x1xf32>
    %18 = math.rsqrt %17 : vector<8x1xf32>
    %19 = vector.broadcast %18 : vector<8x1xf32> to vector<8x32xf32>
    %20 = arith.mulf %15, %19 : vector<8x32xf32>
    %21 = vector.broadcast %1 : vector<1x32xf32> to vector<8x32xf32>
    %22 = arith.mulf %20, %21 : vector<8x32xf32>
    %23 = vector.broadcast %2 : vector<1x32xf32> to vector<8x32xf32>
    %24 = arith.addf %22, %23 : vector<8x32xf32>
    %25 = arith.truncf %24 : vector<8x32xf32> to vector<8x32xbf16>
    %c0_9 = arith.constant 0 : index
    %c0_10 = arith.constant 0 : index
    %26 = vector.load %arg4[%c0_9, %c0_10] : memref<32x96xbf16, #tpu.memory_space<vmem>>, vector<32x96xbf16>
    %cst_11 = arith.constant dense<0.000000e+00> : vector<8x96xf32>
    %27 = tpu.matmul %25, %26, %cst_11 {dimension_numbers = #tpu.dot_dimension_numbers<[1], [0], [0], [1], [0, 0, 1, 1], [], []>} : vector<8x32xbf16>, vector<32x96xbf16>, vector<8x96xf32> -> vector<8x96xf32>
    %c0_12 = arith.constant 0 : index
    %c0_13 = arith.constant 0 : index
    %28 = vector.load %arg5[%c0_12, %c0_13] : memref<8x96xf32, #tpu.memory_space<vmem>>, vector<8x96xf32>
    tpu.vector_store %arg5[%c0_12, %c0_13], %27 {strides = array<i32>} : memref<8x96xf32, #tpu.memory_space<vmem>>, vector<8x96xf32>,
    return
  }
  func.func @transform_0(%arg0: i32) -> (i32, i32) {
    %c0_i32 = arith.constant 0 : i32
    %c0_i32_0 = arith.constant 0 : i32
    return %arg0, %c0_i32 : i32, i32
  }
  func.func @transform_1(%arg0: i32) -> (i32, i32) {
    %c0_i32 = arith.constant 0 : i32
    %c0_i32_0 = arith.constant 0 : i32
    %c0_i32_1 = arith.constant 0 : i32
    return %c0_i32, %c0_i32_0 : i32, i32
  }
  func.func @transform_2(%arg0: i32) -> (i32, i32) {
    %c0_i32 = arith.constant 0 : i32
    %c0_i32_0 = arith.constant 0 : i32
    %c0_i32_1 = arith.constant 0 : i32
    return %c0_i32, %c0_i32_0 : i32, i32
  }
  func.func @transform_3(%arg0: i32) -> (i32, i32) {
    %c0_i32 = arith.constant 0 : i32
    %c0_i32_0 = arith.constant 0 : i32
    %c0_i32_1 = arith.constant 0 : i32
    return %c0_i32, %c0_i32_0 : i32, i32
  }
  func.func @transform_4(%arg0: i32) -> (i32, i32) {
    %c0_i32 = arith.constant 0 : i32
    %c0_i32_0 = arith.constant 0 : i32
    return %arg0, %c0_i32 : i32, i32
  }
}

module attributes {stable_mosaic.version = 11 : i64} {
  func.func @_attn_kernel_fused(%arg0: i32, %arg1: i32, %arg2: memref<1x4x96xf32, #tpu.memory_space<vmem>>, %arg3: memref<1x4x96xf32, #tpu.memory_space<vmem>>, %arg4: memref<1x4x32xf32, #tpu.memory_space<vmem>>) attributes {dimension_semantics = [#tpu.dimension_semantics<parallel>, #tpu.dimension_semantics<parallel>], iteration_bounds = array<i64: 2, 1>, scalar_prefetch = 0 : i64, scratch_operands = 0 : i64, tpu.core_type = #tpu.core_type<tc>, window_params = [{transform_indices = @transform_0, window_bounds = array<i64: 1, 4, 96>}, {transform_indices = @transform_1, window_bounds = array<i64: 1, 4, 96>}, {transform_indices = @transform_2, window_bounds = array<i64: 1, 4, 32>}]} {
    %c0 = arith.constant 0 : index
    %c0_0 = arith.constant 0 : index
    %c0_1 = arith.constant 0 : index
    %0 = vector.load %arg2[%c0, %c0_0, %c0_1] : memref<1x4x96xf32, #tpu.memory_space<vmem>>, vector<1x4x96xf32>
    %1 = vector.shape_cast %0 : vector<1x4x96xf32> to vector<4x96xf32>
    %2 = vector.extract_strided_slice %1 {offsets = [0, 0], sizes = [4, 32], strides = [1, 1]} : vector<4x96xf32> to vector<4x32xf32>
    %c0_2 = arith.constant 0 : index
    %c0_3 = arith.constant 0 : index
    %c0_4 = arith.constant 0 : index
    %3 = vector.load %arg3[%c0_2, %c0_3, %c0_4] : memref<1x4x96xf32, #tpu.memory_space<vmem>>, vector<1x4x96xf32>
    %4 = vector.shape_cast %3 : vector<1x4x96xf32> to vector<4x96xf32>
    %5 = vector.extract_strided_slice %4 {offsets = [0, 32], sizes = [4, 32], strides = [1, 1]} : vector<4x96xf32> to vector<4x32xf32>
    %6 = vector.extract_strided_slice %4 {offsets = [0, 64], sizes = [4, 32], strides = [1, 1]} : vector<4x96xf32> to vector<4x32xf32>
    %7 = arith.truncf %2 : vector<4x32xf32> to vector<4x32xbf16>
    %8 = arith.truncf %5 : vector<4x32xf32> to vector<4x32xbf16>
    %9 = arith.truncf %6 : vector<4x32xf32> to vector<4x32xbf16>
    %10 = vector.extract_strided_slice %7 {offsets = [0, 0], sizes = [4, 16], strides = [1, 1]} : vector<4x32xbf16> to vector<4x16xbf16>
    %11 = vector.extract_strided_slice %8 {offsets = [0, 0], sizes = [4, 16], strides = [1, 1]} : vector<4x32xbf16> to vector<4x16xbf16>
    %cst = arith.constant dense<0.000000e+00> : vector<4x4xf32>
    %12 = tpu.matmul %10, %11, %cst {dimension_numbers = #tpu.dot_dimension_numbers<[1], [1], [0], [0], [0, 0, 1, 0], [], []>} : vector<4x16xbf16>, vector<4x16xbf16>, vector<4x4xf32> -> vector<4x4xf32>
    %cst_5 = arith.constant 2.500000e-01 : f32
    %13 = vector.broadcast %cst_5 : f32 to vector<4x4xf32>
    %14 = arith.mulf %12, %13 : vector<4x4xf32>
    %cst_6 = arith.constant dense<0xFF800000> : vector<4xf32>
    %15 = vector.multi_reduction <maximumf>, %14, %cst_6 [1] : vector<4x4xf32> to vector<4xf32>
    %16 = vector.shape_cast %15 : vector<4xf32> to vector<4x1xf32>
    %17 = vector.broadcast %16 : vector<4x1xf32> to vector<4x4xf32>
    %18 = arith.subf %14, %17 : vector<4x4xf32>
    %19 = math.exp %18 : vector<4x4xf32>
    %cst_7 = arith.constant dense<0.000000e+00> : vector<4xf32>
    %20 = vector.multi_reduction <add>, %19, %cst_7 [1] : vector<4x4xf32> to vector<4xf32>
    %21 = vector.shape_cast %20 : vector<4xf32> to vector<4x1xf32>
    %22 = tpu.reciprocal %21 {approx = true} : vector<4x1xf32> -> vector<4x1xf32>
    %23 = vector.broadcast %22 : vector<4x1xf32> to vector<4x4xf32>
    %24 = arith.mulf %19, %23 : vector<4x4xf32>
    %25 = arith.truncf %24 : vector<4x4xf32> to vector<4x4xbf16>
    %26 = vector.extract_strided_slice %9 {offsets = [0, 0], sizes = [4, 16], strides = [1, 1]} : vector<4x32xbf16> to vector<4x16xbf16>
    %cst_8 = arith.constant dense<0.000000e+00> : vector<4x16xf32>
    %27 = tpu.matmul %25, %26, %cst_8 {dimension_numbers = #tpu.dot_dimension_numbers<[1], [0], [0], [1], [0, 0, 1, 1], [], []>} : vector<4x4xbf16>, vector<4x16xbf16>, vector<4x16xf32> -> vector<4x16xf32>
    %28 = vector.extract_strided_slice %7 {offsets = [0, 16], sizes = [4, 16], strides = [1, 1]} : vector<4x32xbf16> to vector<4x16xbf16>
    %29 = vector.extract_strided_slice %8 {offsets = [0, 16], sizes = [4, 16], strides = [1, 1]} : vector<4x32xbf16> to vector<4x16xbf16>
    %cst_9 = arith.constant dense<0.000000e+00> : vector<4x4xf32>
    %30 = tpu.matmul %28, %29, %cst_9 {dimension_numbers = #tpu.dot_dimension_numbers<[1], [1], [0], [0], [0, 0, 1, 0], [], []>} : vector<4x16xbf16>, vector<4x16xbf16>, vector<4x4xf32> -> vector<4x4xf32>
    %cst_10 = arith.constant 2.500000e-01 : f32
    %31 = vector.broadcast %cst_10 : f32 to vector<4x4xf32>
    %32 = arith.mulf %30, %31 : vector<4x4xf32>
    %cst_11 = arith.constant dense<0xFF800000> : vector<4xf32>
    %33 = vector.multi_reduction <maximumf>, %32, %cst_11 [1] : vector<4x4xf32> to vector<4xf32>
    %34 = vector.shape_cast %33 : vector<4xf32> to vector<4x1xf32>
    %35 = vector.broadcast %34 : vector<4x1xf32> to vector<4x4xf32>
    %36 = arith.subf %32, %35 : vector<4x4xf32>
    %37 = math.exp %36 : vector<4x4xf32>
    %cst_12 = arith.constant dense<0.000000e+00> : vector<4xf32>
    %38 = vector.multi_reduction <add>, %37, %cst_12 [1] : vector<4x4xf32> to vector<4xf32>
    %39 = vector.shape_cast %38 : vector<4xf32> to vector<4x1xf32>
    %40 = tpu.reciprocal %39 {approx = true} : vector<4x1xf32> -> vector<4x1xf32>
    %41 = vector.broadcast %40 : vector<4x1xf32> to vector<4x4xf32>
    %42 = arith.mulf %37, %41 : vector<4x4xf32>
    %43 = arith.truncf %42 : vector<4x4xf32> to vector<4x4xbf16>
    %44 = vector.extract_strided_slice %9 {offsets = [0, 16], sizes = [4, 16], strides = [1, 1]} : vector<4x32xbf16> to vector<4x16xbf16>
    %cst_13 = arith.constant dense<0.000000e+00> : vector<4x16xf32>
    %45 = tpu.matmul %43, %44, %cst_13 {dimension_numbers = #tpu.dot_dimension_numbers<[1], [0], [0], [1], [0, 0, 1, 1], [], []>} : vector<4x4xbf16>, vector<4x16xbf16>, vector<4x16xf32> -> vector<4x16xf32>
    %46 = tpu.concatenate %27, %45 in 1 : vector<4x16xf32>, vector<4x16xf32> -> vector<4x32xf32>
    %c0_14 = arith.constant 0 : index
    %c0_15 = arith.constant 0 : index
    %c0_16 = arith.constant 0 : index
    %47 = vector.load %arg4[%c0_14, %c0_15, %c0_16] : memref<1x4x32xf32, #tpu.memory_space<vmem>>, vector<1x4x32xf32>
    %48 = vector.shape_cast %47 : vector<1x4x32xf32> to vector<4x32xf32>
    %49 = vector.shape_cast %46 : vector<4x32xf32> to vector<1x4x32xf32>
    tpu.vector_store %arg4[%c0_14, %c0_15, %c0_16], %49 {strides = array<i32>} : memref<1x4x32xf32, #tpu.memory_space<vmem>>, vector<1x4x32xf32>,
    return
  }
  func.func @transform_0(%arg0: i32, %arg1: i32) -> (i32, i32, i32) {
    %c0_i32 = arith.constant 0 : i32
    %c0_i32_0 = arith.constant 0 : i32
    return %arg0, %arg1, %c0_i32 : i32, i32, i32
  }
  func.func @transform_1(%arg0: i32, %arg1: i32) -> (i32, i32, i32) {
    %c0_i32 = arith.constant 0 : i32
    %c0_i32_0 = arith.constant 0 : i32
    %c0_i32_1 = arith.constant 0 : i32
    return %arg0, %c0_i32, %c0_i32_0 : i32, i32, i32
  }
  func.func @transform_2(%arg0: i32, %arg1: i32) -> (i32, i32, i32) {
    %c0_i32 = arith.constant 0 : i32
    %c0_i32_0 = arith.constant 0 : i32
    return %arg0, %arg1, %c0_i32 : i32, i32, i32
  }
}

module attributes {stable_mosaic.version = 11 : i64} {
  func.func @kernel(%arg0: i32, %arg1: memref<8x64xf32, #tpu.memory_space<vmem>>, %arg2: memref<64x32xbf16, #tpu.memory_space<vmem>>, %arg3: memref<1x32xf32, #tpu.memory_space<vmem>>, %arg4: memref<8x32xf32, #tpu.memory_space<vmem>>, %arg5: memref<8x32xf32, #tpu.memory_space<vmem>>) attributes {dimension_semantics = [#tpu.dimension_semantics<parallel>], iteration_bounds = array<i64: 1>, scalar_prefetch = 0 : i64, scratch_operands = 0 : i64, tpu.core_type = #tpu.core_type<tc>, window_params = [{transform_indices = @transform_0, window_bounds = array<i64: 8, 64>}, {pipeline_mode = #tpu.pipeline_mode<synchronous>, transform_indices = @transform_1, window_bounds = array<i64: 64, 32>}, {pipeline_mode = #tpu.pipeline_mode<synchronous>, transform_indices = @transform_2, window_bounds = array<i64: 1, 32>}, {transform_indices = @transform_3, window_bounds = array<i64: 8, 32>}, {transform_indices = @transform_4, window_bounds = array<i64: 8, 32>}]} {
    %c0 = arith.constant 0 : index
    %c0_0 = arith.constant 0 : index
    %0 = vector.load %arg1[%c0, %c0_0] : memref<8x64xf32, #tpu.memory_space<vmem>>, vector<8x64xf32>
    %1 = arith.truncf %0 : vector<8x64xf32> to vector<8x64xbf16>
    %c0_1 = arith.constant 0 : index
    %c0_2 = arith.constant 0 : index
    %2 = vector.load %arg2[%c0_1, %c0_2] : memref<64x32xbf16, #tpu.memory_space<vmem>>, vector<64x32xbf16>
    %cst = arith.constant dense<0.000000e+00> : vector<8x32xf32>
    %3 = tpu.matmul %1, %2, %cst {dimension_numbers = #tpu.dot_dimension_numbers<[1], [0], [0], [1], [0, 0, 1, 1], [], []>} : vector<8x64xbf16>, vector<64x32xbf16>, vector<8x32xf32> -> vector<8x32xf32>
    %c0_3 = arith.constant 0 : index
    %c0_4 = arith.constant 0 : index
    %4 = vector.load %arg3[%c0_3, %c0_4] : memref<1x32xf32, #tpu.memory_space<vmem>>, vector<1x32xf32>
    %5 = vector.broadcast %4 : vector<1x32xf32> to vector<8x32xf32>
    %6 = arith.addf %3, %5 : vector<8x32xf32>
    %c0_5 = arith.constant 0 : index
    %c0_6 = arith.constant 0 : index
    %7 = vector.load %arg4[%c0_5, %c0_6] : memref<8x32xf32, #tpu.memory_space<vmem>>, vector<8x32xf32>
    %8 = arith.addf %6, %7 : vector<8x32xf32>
    %c0_7 = arith.constant 0 : index
    %c0_8 = arith.constant 0 : index
    %9 = vector.load %arg5[%c0_7, %c0_8] : memref<8x32xf32, #tpu.memory_space<vmem>>, vector<8x32xf32>
    tpu.vector_store %arg5[%c0_7, %c0_8], %8 {strides = array<i32>} : memref<8x32xf32, #tpu.memory_space<vmem>>, vector<8x32xf32>,
    return
  }
  func.func @transform_0(%arg0: i32) -> (i32, i32) {
    %c0_i32 = arith.constant 0 : i32
    %c0_i32_0 = arith.constant 0 : i32
    return %arg0, %c0_i32 : i32, i32
  }
  func.func @transform_1(%arg0: i32) -> (i32, i32) {
    %c0_i32 = arith.constant 0 : i32
    %c0_i32_0 = arith.constant 0 : i32
    %c0_i32_1 = arith.constant 0 : i32
    return %c0_i32, %c0_i32_0 : i32, i32
  }
  func.func @transform_2(%arg0: i32) -> (i32, i32) {
    %c0_i32 = arith.constant 0 : i32
    %c0_i32_0 = arith.constant 0 : i32
    %c0_i32_1 = arith.constant 0 : i32
    return %c0_i32, %c0_i32_0 : i32, i32
  }
  func.func @transform_3(%arg0: i32) -> (i32, i32) {
    %c0_i32 = arith.constant 0 : i32
    %c0_i32_0 = arith.constant 0 : i32
    return %arg0, %c0_i32 : i32, i32
  }
  func.func @transform_4(%arg0: i32) -> (i32, i32) {
    %c0_i32 = arith.constant 0 : i32
    %c0_i32_0 = arith.constant 0 : i32
    return %arg0, %c0_i32 : i32, i32
  }
}

module attributes {stable_mosaic.version = 11 : i64} {
  func.func @kernel(%arg0: i32, %arg1: memref<8x32xf32, #tpu.memory_space<vmem>>, %arg2: memref<1x32xf32, #tpu.memory_space<vmem>>, %arg3: memref<1x32xf32, #tpu.memory_space<vmem>>, %arg4: memref<32x64xbf16, #tpu.memory_space<vmem>>, %arg5: memref<1x64xf32, #tpu.memory_space<vmem>>, %arg6: memref<8x64xf32, #tpu.memory_space<vmem>>) attributes {dimension_semantics = [#tpu.dimension_semantics<parallel>], iteration_bounds = array<i64: 1>, scalar_prefetch = 0 : i64, scratch_operands = 0 : i64, tpu.core_type = #tpu.core_type<tc>, window_params = [{transform_indices = @transform_0, window_bounds = array<i64: 8, 32>}, {pipeline_mode = #tpu.pipeline_mode<synchronous>, transform_indices = @transform_1, window_bounds = array<i64: 1, 32>}, {pipeline_mode = #tpu.pipeline_mode<synchronous>, transform_indices = @transform_2, window_bounds = array<i64: 1, 32>}, {pipeline_mode = #tpu.pipeline_mode<synchronous>, transform_indices = @transform_3, window_bounds = array<i64: 32, 64>}, {pipeline_mode = #tpu.pipeline_mode<synchronous>, transform_indices = @transform_4, window_bounds = array<i64: 1, 64>}, {transform_indices = @transform_5, window_bounds = array<i64: 8, 64>}]} {
    %c0 = arith.constant 0 : index
    %c0_0 = arith.constant 0 : index
    %0 = vector.load %arg1[%c0, %c0_0] : memref<8x32xf32, #tpu.memory_space<vmem>>, vector<8x32xf32>
    %c0_1 = arith.constant 0 : index
    %c0_2 = arith.constant 0 : index
    %1 = vector.load %arg2[%c0_1, %c0_2] : memref<1x32xf32, #tpu.memory_space<vmem>>, vector<1x32xf32>
    %c0_3 = arith.constant 0 : index
    %c0_4 = arith.constant 0 : index
    %2 = vector.load %arg3[%c0_3, %c0_4] : memref<1x32xf32, #tpu.memory_space<vmem>>, vector<1x32xf32>
    %cst = arith.constant dense<0.000000e+00> : vector<8xf32>
    %3 = vector.multi_reduction <add>, %0, %cst [1] : vector<8x32xf32> to vector<8xf32>
    %4 = vector.shape_cast %3 : vector<8xf32> to vector<8x1xf32>
    %cst_5 = arith.constant 3.200000e+01 : f32
    %5 = vector.broadcast %cst_5 : f32 to vector<8x1xf32>
    %6 = arith.divf %4, %5 : vector<8x1xf32>
    %7 = vector.broadcast %6 : vector<8x1xf32> to vector<8x32xf32>
    %8 = arith.subf %0, %7 : vector<8x32xf32>
    %9 = arith.mulf %8, %8 : vector<8x32xf32>
    %cst_6 = arith.constant dense<0.000000e+00> : vector<8xf32>
    %10 = vector.multi_reduction <add>, %9, %cst_6 [1] : vector<8x32xf32> to vector<8xf32>
    %11 = vector.shape_cast %10 : vector<8xf32> to vector<8x1xf32>
    %cst_7 = arith.constant 3.200000e+01 : f32
    %12 = vector.broadcast %cst_7 : f32 to vector<8x1xf32>
    %13 = arith.divf %11, %12 : vector<8x1xf32>
    %14 = vector.broadcast %6 : vector<8x1xf32> to vector<8x32xf32>
    %15 = arith.subf %0, %14 : vector<8x32xf32>
    %cst_8 = arith.constant 9.99999974E-6 : f32
    %16 = vector.broadcast %cst_8 : f32 to vector<8x1xf32>
    %17 = arith.addf %13, %16 : vector<8x1xf32>
    %18 = math.rsqrt %17 : vector<8x1xf32>
    %19 = vector.broadcast %18 : vector<8x1xf32> to vector<8x32xf32>
    %20 = arith.mulf %15, %19 : vector<8x32xf32>
    %21 = vector.broadcast %1 : vector<1x32xf32> to vector<8x32xf32>
    %22 = arith.mulf %20, %21 : vector<8x32xf32>
    %23 = vector.broadcast %2 : vector<1x32xf32> to vector<8x32xf32>
    %24 = arith.addf %22, %23 : vector<8x32xf32>
    %25 = arith.truncf %24 : vector<8x32xf32> to vector<8x32xbf16>
    %c0_9 = arith.constant 0 : index
    %c0_10 = arith.constant 0 : index
    %26 = vector.load %arg4[%c0_9, %c0_10] : memref<32x64xbf16, #tpu.memory_space<vmem>>, vector<32x64xbf16>
    %cst_11 = arith.constant dense<0.000000e+00> : vector<8x64xf32>
    %27 = tpu.matmul %25, %26, %cst_11 {dimension_numbers = #tpu.dot_dimension_numbers<[1], [0], [0], [1], [0, 0, 1, 1], [], []>} : vector<8x32xbf16>, vector<32x64xbf16>, vector<8x64xf32> -> vector<8x64xf32>
    %c0_12 = arith.constant 0 : index
    %c0_13 = arith.constant 0 : index
    %28 = vector.load %arg5[%c0_12, %c0_13] : memref<1x64xf32, #tpu.memory_space<vmem>>, vector<1x64xf32>
    %29 = vector.broadcast %28 : vector<1x64xf32> to vector<8x64xf32>
    %30 = arith.addf %27, %29 : vector<8x64xf32>
    %cst_14 = arith.constant 5.000000e-01 : f32
    %31 = vector.broadcast %cst_14 : f32 to vector<8x64xf32>
    %32 = arith.mulf %31, %30 : vector<8x64xf32>
    %cst_15 = arith.constant 4.471500e-02 : f32
    %33 = vector.broadcast %cst_15 : f32 to vector<8x64xf32>
    %34 = arith.mulf %33, %30 : vector<8x64xf32>
    %35 = arith.mulf %34, %30 : vector<8x64xf32>
    %36 = arith.mulf %35, %30 : vector<8x64xf32>
    %37 = arith.addf %30, %36 : vector<8x64xf32>
    %cst_16 = arith.constant 0.797884583 : f32
    %38 = vector.broadcast %cst_16 : f32 to vector<8x64xf32>
    %39 = arith.mulf %38, %37 : vector<8x64xf32>
    %40 = math.tanh %39 : vector<8x64xf32>
    %cst_17 = arith.constant 1.000000e+00 : f32
    %41 = vector.broadcast %cst_17 : f32 to vector<8x64xf32>
    %42 = arith.addf %41, %40 : vector<8x64xf32>
    %43 = arith.mulf %32, %42 : vector<8x64xf32>
    %c0_18 = arith.constant 0 : index
    %c0_19 = arith.constant 0 : index
    %44 = vector.load %arg6[%c0_18, %c0_19] : memref<8x64xf32, #tpu.memory_space<vmem>>, vector<8x64xf32>
    tpu.vector_store %arg6[%c0_18, %c0_19], %43 {strides = array<i32>} : memref<8x64xf32, #tpu.memory_space<vmem>>, vector<8x64xf32>,
    return
  }
  func.func @transform_0(%arg0: i32) -> (i32, i32) {
    %c0_i32 = arith.constant 0 : i32
    %c0_i32_0 = arith.constant 0 : i32
    return %arg0, %c0_i32 : i32, i32
  }
  func.func @transform_1(%arg0: i32) -> (i32, i32) {
    %c0_i32 = arith.constant 0 : i32
    %c0_i32_0 = arith.constant 0 : i32
    %c0_i32_1 = arith.constant 0 : i32
    return %c0_i32, %c0_i32_0 : i32, i32
  }
  func.func @transform_2(%arg0: i32) -> (i32, i32) {
    %c0_i32 = arith.constant 0 : i32
    %c0_i32_0 = arith.constant 0 : i32
    %c0_i32_1 = arith.constant 0 : i32
    return %c0_i32, %c0_i32_0 : i32, i32
  }
  func.func @transform_3(%arg0: i32) -> (i32, i32) {
    %c0_i32 = arith.constant 0 : i32
    %c0_i32_0 = arith.constant 0 : i32
    %c0_i32_1 = arith.constant 0 : i32
    return %c0_i32, %c0_i32_0 : i32, i32
  }
  func.func @transform_4(%arg0: i32) -> (i32, i32) {
    %c0_i32 = arith.constant 0 : i32
    %c0_i32_0 = arith.constant 0 : i32
    %c0_i32_1 = arith.constant 0 : i32
    return %c0_i32, %c0_i32_0 : i32, i32
  }
  func.func @transform_5(%arg0: i32) -> (i32, i32) {
    %c0_i32 = arith.constant 0 : i32
    %c0_i32_0 = arith.constant 0 : i32
    return %arg0, %c0_i32 : i32, i32
  }
}

module attributes {stable_mosaic.version = 11 : i64} {
  func.func @kernel(%arg0: i32, %arg1: memref<8x32xf32, #tpu.memory_space<vmem>>, %arg2: memref<32x32xbf16, #tpu.memory_space<vmem>>, %arg3: memref<1x32xf32, #tpu.memory_space<vmem>>, %arg4: memref<8x32xf32, #tpu.memory_space<vmem>>, %arg5: memref<8x32xf32, #tpu.memory_space<vmem>>) attributes {dimension_semantics = [#tpu.dimension_semantics<parallel>], iteration_bounds = array<i64: 1>, scalar_prefetch = 0 : i64, scratch_operands = 0 : i64, tpu.core_type = #tpu.core_type<tc>, window_params = [{transform_indices = @transform_0, window_bounds = array<i64: 8, 32>}, {pipeline_mode = #tpu.pipeline_mode<synchronous>, transform_indices = @transform_1, window_bounds = array<i64: 32, 32>}, {pipeline_mode = #tpu.pipeline_mode<synchronous>, transform_indices = @transform_2, window_bounds = array<i64: 1, 32>}, {transform_indices = @transform_3, window_bounds = array<i64: 8, 32>}, {transform_indices = @transform_4, window_bounds = array<i64: 8, 32>}]} {
    %c0 = arith.constant 0 : index
    %c0_0 = arith.constant 0 : index
    %0 = vector.load %arg1[%c0, %c0_0] : memref<8x32xf32, #tpu.memory_space<vmem>>, vector<8x32xf32>
    %1 = arith.truncf %0 : vector<8x32xf32> to vector<8x32xbf16>
    %c0_1 = arith.constant 0 : index
    %c0_2 = arith.constant 0 : index
    %2 = vector.load %arg2[%c0_1, %c0_2] : memref<32x32xbf16, #tpu.memory_space<vmem>>, vector<32x32xbf16>
    %cst = arith.constant dense<0.000000e+00> : vector<8x32xf32>
    %3 = tpu.matmul %1, %2, %cst {dimension_numbers = #tpu.dot_dimension_numbers<[1], [0], [0], [1], [0, 0, 1, 1], [], []>} : vector<8x32xbf16>, vector<32x32xbf16>, vector<8x32xf32> -> vector<8x32xf32>
    %c0_3 = arith.constant 0 : index
    %c0_4 = arith.constant 0 : index
    %4 = vector.load %arg3[%c0_3, %c0_4] : memref<1x32xf32, #tpu.memory_space<vmem>>, vector<1x32xf32>
    %5 = vector.broadcast %4 : vector<1x32xf32> to vector<8x32xf32>
    %6 = arith.addf %3, %5 : vector<8x32xf32>
    %c0_5 = arith.constant 0 : index
    %c0_6 = arith.constant 0 : index
    %7 = vector.load %arg4[%c0_5, %c0_6] : memref<8x32xf32, #tpu.memory_space<vmem>>, vector<8x32xf32>
    %8 = arith.addf %6, %7 : vector<8x32xf32>
    %c0_7 = arith.constant 0 : index
    %c0_8 = arith.constant 0 : index
    %9 = vector.load %arg5[%c0_7, %c0_8] : memref<8x32xf32, #tpu.memory_space<vmem>>, vector<8x32xf32>
    tpu.vector_store %arg5[%c0_7, %c0_8], %8 {strides = array<i32>} : memref<8x32xf32, #tpu.memory_space<vmem>>, vector<8x32xf32>,
    return
  }
  func.func @transform_0(%arg0: i32) -> (i32, i32) {
    %c0_i32 = arith.constant 0 : i32
    %c0_i32_0 = arith.constant 0 : i32
    return %arg0, %c0_i32 : i32, i32
  }
  func.func @transform_1(%arg0: i32) -> (i32, i32) {
    %c0_i32 = arith.constant 0 : i32
    %c0_i32_0 = arith.constant 0 : i32
    %c0_i32_1 = arith.constant 0 : i32
    return %c0_i32, %c0_i32_0 : i32, i32
  }
  func.func @transform_2(%arg0: i32) -> (i32, i32) {
    %c0_i32 = arith.constant 0 : i32
    %c0_i32_0 = arith.constant 0 : i32
    %c0_i32_1 = arith.constant 0 : i32
    return %c0_i32, %c0_i32_0 : i32, i32
  }
  func.func @transform_3(%arg0: i32) -> (i32, i32) {
    %c0_i32 = arith.constant 0 : i32
    %c0_i32_0 = arith.constant 0 : i32
    return %arg0, %c0_i32 : i32, i32
  }
  func.func @transform_4(%arg0: i32) -> (i32, i32) {
    %c0_i32 = arith.constant 0 : i32
    %c0_i32_0 = arith.constant 0 : i32
    return %arg0, %c0_i32 : i32, i32
  }
}

module attributes {stable_mosaic.version = 11 : i64} {
  func.func @_dwconv_kernel(%arg0: i32, %arg1: i32, %arg2: memref<1x4x4x32xf32, #tpu.memory_space<vmem>>, %arg3: memref<3x3x32xf32, #tpu.memory_space<vmem>>, %arg4: memref<1x32xf32, #tpu.memory_space<vmem>>, %arg5: memref<1x2x2x32xf32, #tpu.memory_space<vmem>>, %arg6: memref<1x2x2x32xf32, #tpu.memory_space<vmem>>) attributes {dimension_semantics = [#tpu.dimension_semantics<parallel>, #tpu.dimension_semantics<parallel>], iteration_bounds = array<i64: 2, 1>, scalar_prefetch = 0 : i64, scratch_operands = 0 : i64, tpu.core_type = #tpu.core_type<tc>, window_params = [{transform_indices = @transform_0, window_bounds = array<i64: 1, 4, 4, 32>}, {transform_indices = @transform_1, window_bounds = array<i64: 3, 3, 32>}, {transform_indices = @transform_2, window_bounds = array<i64: 1, 32>}, {transform_indices = @transform_3, window_bounds = array<i64: 1, 2, 2, 32>}, {transform_indices = @transform_4, window_bounds = array<i64: 1, 2, 2, 32>}]} {
    %c0 = arith.constant 0 : index
    %c0_0 = arith.constant 0 : index
    %c0_1 = arith.constant 0 : index
    %0 = vector.load %arg3[%c0, %c0_0, %c0_1] : memref<3x3x32xf32, #tpu.memory_space<vmem>>, vector<3x3x32xf32>
    %c0_2 = arith.constant 0 : index
    %c0_3 = arith.constant 0 : index
    %c0_4 = arith.constant 0 : index
    %c0_5 = arith.constant 0 : index
    %1 = vector.load %arg5[%c0_2, %c0_3, %c0_4, %c0_5] : memref<1x2x2x32xf32, #tpu.memory_space<vmem>>, vector<1x2x2x32xf32>
    %2 = vector.shape_cast %1 : vector<1x2x2x32xf32> to vector<2x2x32xf32>
    %c0_6 = arith.constant 0 : index
    %c0_7 = arith.constant 0 : index
    %3 = vector.load %arg4[%c0_6, %c0_7] : memref<1x32xf32, #tpu.memory_space<vmem>>, vector<1x32xf32>
    %4 = vector.shape_cast %3 : vector<1x32xf32> to vector<1x1x32xf32>
    %5 = vector.broadcast %4 : vector<1x1x32xf32> to vector<2x2x32xf32>
    %6 = arith.addf %2, %5 : vector<2x2x32xf32>
    %c0_8 = arith.constant 0 : index
    %c0_9 = arith.constant 0 : index
    %c0_10 = arith.constant 0 : index
    %c0_11 = arith.constant 0 : index
    %7 = vector.load %arg2[%c0_8, %c0_9, %c0_10, %c0_11] : memref<1x4x4x32xf32, #tpu.memory_space<vmem>>, vector<1x4x2x32xf32>
    %8 = vector.shape_cast %7 : vector<1x4x2x32xf32> to vector<4x2x32xf32>
    %c0_12 = arith.constant 0 : index
    %c0_13 = arith.constant 0 : index
    %c1 = arith.constant 1 : index
    %c0_14 = arith.constant 0 : index
    %9 = vector.load %arg2[%c0_12, %c0_13, %c1, %c0_14] : memref<1x4x4x32xf32, #tpu.memory_space<vmem>>, vector<1x4x2x32xf32>
    %10 = vector.shape_cast %9 : vector<1x4x2x32xf32> to vector<4x2x32xf32>
    %c0_15 = arith.constant 0 : index
    %c0_16 = arith.constant 0 : index
    %c2 = arith.constant 2 : index
    %c0_17 = arith.constant 0 : index
    %11 = vector.load %arg2[%c0_15, %c0_16, %c2, %c0_17] : memref<1x4x4x32xf32, #tpu.memory_space<vmem>>, vector<1x4x2x32xf32>
    %12 = vector.shape_cast %11 : vector<1x4x2x32xf32> to vector<4x2x32xf32>
    %13 = vector.extract_strided_slice %8 {offsets = [0, 0, 0], sizes = [2, 2, 32], strides = [1, 1, 1]} : vector<4x2x32xf32> to vector<2x2x32xf32>
    %14 = vector.extract_strided_slice %0 {offsets = [0, 0, 0], sizes = [1, 1, 32], strides = [1, 1, 1]} : vector<3x3x32xf32> to vector<1x1x32xf32>
    %15 = vector.shape_cast %14 : vector<1x1x32xf32> to vector<32xf32>
    %16 = vector.shape_cast %15 : vector<32xf32> to vector<1x1x32xf32>
    %17 = vector.broadcast %16 : vector<1x1x32xf32> to vector<2x2x32xf32>
    %18 = arith.mulf %13, %17 : vector<2x2x32xf32>
    %19 = arith.addf %6, %18 : vector<2x2x32xf32>
    %20 = vector.extract_strided_slice %10 {offsets = [0, 0, 0], sizes = [2, 2, 32], strides = [1, 1, 1]} : vector<4x2x32xf32> to vector<2x2x32xf32>
    %21 = vector.extract_strided_slice %0 {offsets = [0, 1, 0], sizes = [1, 1, 32], strides = [1, 1, 1]} : vector<3x3x32xf32> to vector<1x1x32xf32>
    %22 = vector.shape_cast %21 : vector<1x1x32xf32> to vector<32xf32>
    %23 = vector.shape_cast %22 : vector<32xf32> to vector<1x1x32xf32>
    %24 = vector.broadcast %23 : vector<1x1x32xf32> to vector<2x2x32xf32>
    %25 = arith.mulf %20, %24 : vector<2x2x32xf32>
    %26 = arith.addf %19, %25 : vector<2x2x32xf32>
    %27 = vector.extract_strided_slice %12 {offsets = [0, 0, 0], sizes = [2, 2, 32], strides = [1, 1, 1]} : vector<4x2x32xf32> to vector<2x2x32xf32>
    %28 = vector.extract_strided_slice %0 {offsets = [0, 2, 0], sizes = [1, 1, 32], strides = [1, 1, 1]} : vector<3x3x32xf32> to vector<1x1x32xf32>
    %29 = vector.shape_cast %28 : vector<1x1x32xf32> to vector<32xf32>
    %30 = vector.shape_cast %29 : vector<32xf32> to vector<1x1x32xf32>
    %31 = vector.broadcast %30 : vector<1x1x32xf32> to vector<2x2x32xf32>
    %32 = arith.mulf %27, %31 : vector<2x2x32xf32>
    %33 = arith.addf %26, %32 : vector<2x2x32xf32>
    %34 = vector.extract_strided_slice %8 {offsets = [1, 0, 0], sizes = [2, 2, 32], strides = [1, 1, 1]} : vector<4x2x32xf32> to vector<2x2x32xf32>
    %35 = vector.extract_strided_slice %0 {offsets = [1, 0, 0], sizes = [1, 1, 32], strides = [1, 1, 1]} : vector<3x3x32xf32> to vector<1x1x32xf32>
    %36 = vector.shape_cast %35 : vector<1x1x32xf32> to vector<32xf32>
    %37 = vector.shape_cast %36 : vector<32xf32> to vector<1x1x32xf32>
    %38 = vector.broadcast %37 : vector<1x1x32xf32> to vector<2x2x32xf32>
    %39 = arith.mulf %34, %38 : vector<2x2x32xf32>
    %40 = arith.addf %33, %39 : vector<2x2x32xf32>
    %41 = vector.extract_strided_slice %10 {offsets = [1, 0, 0], sizes = [2, 2, 32], strides = [1, 1, 1]} : vector<4x2x32xf32> to vector<2x2x32xf32>
    %42 = vector.extract_strided_slice %0 {offsets = [1, 1, 0], sizes = [1, 1, 32], strides = [1, 1, 1]} : vector<3x3x32xf32> to vector<1x1x32xf32>
    %43 = vector.shape_cast %42 : vector<1x1x32xf32> to vector<32xf32>
    %44 = vector.shape_cast %43 : vector<32xf32> to vector<1x1x32xf32>
    %45 = vector.broadcast %44 : vector<1x1x32xf32> to vector<2x2x32xf32>
    %46 = arith.mulf %41, %45 : vector<2x2x32xf32>
    %47 = arith.addf %40, %46 : vector<2x2x32xf32>
    %48 = vector.extract_strided_slice %12 {offsets = [1, 0, 0], sizes = [2, 2, 32], strides = [1, 1, 1]} : vector<4x2x32xf32> to vector<2x2x32xf32>
    %49 = vector.extract_strided_slice %0 {offsets = [1, 2, 0], sizes = [1, 1, 32], strides = [1, 1, 1]} : vector<3x3x32xf32> to vector<1x1x32xf32>
    %50 = vector.shape_cast %49 : vector<1x1x32xf32> to vector<32xf32>
    %51 = vector.shape_cast %50 : vector<32xf32> to vector<1x1x32xf32>
    %52 = vector.broadcast %51 : vector<1x1x32xf32> to vector<2x2x32xf32>
    %53 = arith.mulf %48, %52 : vector<2x2x32xf32>
    %54 = arith.addf %47, %53 : vector<2x2x32xf32>
    %55 = vector.extract_strided_slice %8 {offsets = [2, 0, 0], sizes = [2, 2, 32], strides = [1, 1, 1]} : vector<4x2x32xf32> to vector<2x2x32xf32>
    %56 = vector.extract_strided_slice %0 {offsets = [2, 0, 0], sizes = [1, 1, 32], strides = [1, 1, 1]} : vector<3x3x32xf32> to vector<1x1x32xf32>
    %57 = vector.shape_cast %56 : vector<1x1x32xf32> to vector<32xf32>
    %58 = vector.shape_cast %57 : vector<32xf32> to vector<1x1x32xf32>
    %59 = vector.broadcast %58 : vector<1x1x32xf32> to vector<2x2x32xf32>
    %60 = arith.mulf %55, %59 : vector<2x2x32xf32>
    %61 = arith.addf %54, %60 : vector<2x2x32xf32>
    %62 = vector.extract_strided_slice %10 {offsets = [2, 0, 0], sizes = [2, 2, 32], strides = [1, 1, 1]} : vector<4x2x32xf32> to vector<2x2x32xf32>
    %63 = vector.extract_strided_slice %0 {offsets = [2, 1, 0], sizes = [1, 1, 32], strides = [1, 1, 1]} : vector<3x3x32xf32> to vector<1x1x32xf32>
    %64 = vector.shape_cast %63 : vector<1x1x32xf32> to vector<32xf32>
    %65 = vector.shape_cast %64 : vector<32xf32> to vector<1x1x32xf32>
    %66 = vector.broadcast %65 : vector<1x1x32xf32> to vector<2x2x32xf32>
    %67 = arith.mulf %62, %66 : vector<2x2x32xf32>
    %68 = arith.addf %61, %67 : vector<2x2x32xf32>
    %69 = vector.extract_strided_slice %12 {offsets = [2, 0, 0], sizes = [2, 2, 32], strides = [1, 1, 1]} : vector<4x2x32xf32> to vector<2x2x32xf32>
    %70 = vector.extract_strided_slice %0 {offsets = [2, 2, 0], sizes = [1, 1, 32], strides = [1, 1, 1]} : vector<3x3x32xf32> to vector<1x1x32xf32>
    %71 = vector.shape_cast %70 : vector<1x1x32xf32> to vector<32xf32>
    %72 = vector.shape_cast %71 : vector<32xf32> to vector<1x1x32xf32>
    %73 = vector.broadcast %72 : vector<1x1x32xf32> to vector<2x2x32xf32>
    %74 = arith.mulf %69, %73 : vector<2x2x32xf32>
    %75 = arith.addf %68, %74 : vector<2x2x32xf32>
    %c0_18 = arith.constant 0 : index
    %c0_19 = arith.constant 0 : index
    %c0_20 = arith.constant 0 : index
    %c0_21 = arith.constant 0 : index
    %76 = vector.load %arg6[%c0_18, %c0_19, %c0_20, %c0_21] : memref<1x2x2x32xf32, #tpu.memory_space<vmem>>, vector<1x2x2x32xf32>
    %77 = vector.shape_cast %76 : vector<1x2x2x32xf32> to vector<2x2x32xf32>
    %78 = vector.shape_cast %75 : vector<2x2x32xf32> to vector<1x2x2x32xf32>
    tpu.vector_store %arg6[%c0_18, %c0_19, %c0_20, %c0_21], %78 {strides = array<i32>} : memref<1x2x2x32xf32, #tpu.memory_space<vmem>>, vector<1x2x2x32xf32>,
    return
  }
  func.func @transform_0(%arg0: i32, %arg1: i32) -> (i32, i32, i32, i32) {
    %c0_i32 = arith.constant 0 : i32
    %c0_i32_0 = arith.constant 0 : i32
    %c0_i32_1 = arith.constant 0 : i32
    return %arg0, %c0_i32, %c0_i32_0, %arg1 : i32, i32, i32, i32
  }
  func.func @transform_1(%arg0: i32, %arg1: i32) -> (i32, i32, i32) {
    %c0_i32 = arith.constant 0 : i32
    %c0_i32_0 = arith.constant 0 : i32
    %c0_i32_1 = arith.constant 0 : i32
    return %c0_i32, %c0_i32_0, %arg1 : i32, i32, i32
  }
  func.func @transform_2(%arg0: i32, %arg1: i32) -> (i32, i32) {
    %c0_i32 = arith.constant 0 : i32
    %c0_i32_0 = arith.constant 0 : i32
    return %c0_i32, %arg1 : i32, i32
  }
  func.func @transform_3(%arg0: i32, %arg1: i32) -> (i32, i32, i32, i32) {
    %c0_i32 = arith.constant 0 : i32
    %c0_i32_0 = arith.constant 0 : i32
    %c0_i32_1 = arith.constant 0 : i32
    return %arg0, %c0_i32, %c0_i32_0, %arg1 : i32, i32, i32, i32
  }
  func.func @transform_4(%arg0: i32, %arg1: i32) -> (i32, i32, i32, i32) {
    %c0_i32 = arith.constant 0 : i32
    %c0_i32_0 = arith.constant 0 : i32
    %c0_i32_1 = arith.constant 0 : i32
    return %arg0, %c0_i32, %c0_i32_0, %arg1 : i32, i32, i32, i32
  }
}

module attributes {stable_mosaic.version = 11 : i64} {
  func.func @kernel(%arg0: i32, %arg1: memref<8x64xf32, #tpu.memory_space<vmem>>, %arg2: memref<64x32xbf16, #tpu.memory_space<vmem>>, %arg3: memref<1x32xf32, #tpu.memory_space<vmem>>, %arg4: memref<8x32xf32, #tpu.memory_space<vmem>>, %arg5: memref<8x32xf32, #tpu.memory_space<vmem>>) attributes {dimension_semantics = [#tpu.dimension_semantics<parallel>], iteration_bounds = array<i64: 1>, scalar_prefetch = 0 : i64, scratch_operands = 0 : i64, tpu.core_type = #tpu.core_type<tc>, window_params = [{transform_indices = @transform_0, window_bounds = array<i64: 8, 64>}, {pipeline_mode = #tpu.pipeline_mode<synchronous>, transform_indices = @transform_1, window_bounds = array<i64: 64, 32>}, {pipeline_mode = #tpu.pipeline_mode<synchronous>, transform_indices = @transform_2, window_bounds = array<i64: 1, 32>}, {transform_indices = @transform_3, window_bounds = array<i64: 8, 32>}, {transform_indices = @transform_4, window_bounds = array<i64: 8, 32>}]} {
    %c0 = arith.constant 0 : index
    %c0_0 = arith.constant 0 : index
    %0 = vector.load %arg1[%c0, %c0_0] : memref<8x64xf32, #tpu.memory_space<vmem>>, vector<8x64xf32>
    %1 = arith.truncf %0 : vector<8x64xf32> to vector<8x64xbf16>
    %c0_1 = arith.constant 0 : index
    %c0_2 = arith.constant 0 : index
    %2 = vector.load %arg2[%c0_1, %c0_2] : memref<64x32xbf16, #tpu.memory_space<vmem>>, vector<64x32xbf16>
    %cst = arith.constant dense<0.000000e+00> : vector<8x32xf32>
    %3 = tpu.matmul %1, %2, %cst {dimension_numbers = #tpu.dot_dimension_numbers<[1], [0], [0], [1], [0, 0, 1, 1], [], []>} : vector<8x64xbf16>, vector<64x32xbf16>, vector<8x32xf32> -> vector<8x32xf32>
    %c0_3 = arith.constant 0 : index
    %c0_4 = arith.constant 0 : index
    %4 = vector.load %arg3[%c0_3, %c0_4] : memref<1x32xf32, #tpu.memory_space<vmem>>, vector<1x32xf32>
    %5 = vector.broadcast %4 : vector<1x32xf32> to vector<8x32xf32>
    %6 = arith.addf %3, %5 : vector<8x32xf32>
    %c0_5 = arith.constant 0 : index
    %c0_6 = arith.constant 0 : index
    %7 = vector.load %arg4[%c0_5, %c0_6] : memref<8x32xf32, #tpu.memory_space<vmem>>, vector<8x32xf32>
    %8 = arith.addf %6, %7 : vector<8x32xf32>
    %c0_7 = arith.constant 0 : index
    %c0_8 = arith.constant 0 : index
    %9 = vector.load %arg5[%c0_7, %c0_8] : memref<8x32xf32, #tpu.memory_space<vmem>>, vector<8x32xf32>
    tpu.vector_store %arg5[%c0_7, %c0_8], %8 {strides = array<i32>} : memref<8x32xf32, #tpu.memory_space<vmem>>, vector<8x32xf32>,
    return
  }
  func.func @transform_0(%arg0: i32) -> (i32, i32) {
    %c0_i32 = arith.constant 0 : i32
    %c0_i32_0 = arith.constant 0 : i32
    return %arg0, %c0_i32 : i32, i32
  }
  func.func @transform_1(%arg0: i32) -> (i32, i32) {
    %c0_i32 = arith.constant 0 : i32
    %c0_i32_0 = arith.constant 0 : i32
    %c0_i32_1 = arith.constant 0 : i32
    return %c0_i32, %c0_i32_0 : i32, i32
  }
  func.func @transform_2(%arg0: i32) -> (i32, i32) {
    %c0_i32 = arith.constant 0 : i32
    %c0_i32_0 = arith.constant 0 : i32
    %c0_i32_1 = arith.constant 0 : i32
    return %c0_i32, %c0_i32_0 : i32, i32
  }
  func.func @transform_3(%arg0: i32) -> (i32, i32) {
    %c0_i32 = arith.constant 0 : i32
    %c0_i32_0 = arith.constant 0 : i32
    return %arg0, %c0_i32 : i32, i32
  }
  func.func @transform_4(%arg0: i32) -> (i32, i32) {
    %c0_i32 = arith.constant 0 : i32
    %c0_i32_0 = arith.constant 0 : i32
    return %arg0, %c0_i32 : i32, i32
  }
}

</mosaic_0001>

<bundles_post_ra>
// kernel: cpvtv2_forward.23
= control target key start
LH: loop header
LB: loop body
LE: loop exit
PB: predicated region body
PF: predicated region fallthrough
CT: control target
= control target key end

     0   :  { %v135_v0 = vmov 0.0   ;;  %vm136_vm0 = vmmov 0   ;;  %vm56_vm1 = vcmask 523264   ;;  %vm100_vm2 = vcmask 130048   ;;  %s178_s1 = inlined_call_operand.vmem [shape: bf16[64,16], index: 1, kind: input, shape index: {}]   ;;  %s179_s0 = inlined_call_operand.vmem [shape: f32[8,64], index: 0, kind: input, shape index: {}]   ;;  %s180_s2 = inlined_call_operand.vmem [shape: f32[1,16], index: 2, kind: input, shape index: {}]   ;;  %s181_s3 = inlined_call_operand.vmem [shape: f32[8,16], index: 3, kind: output, shape index: {}]  }
   0x1   :  { %117 = vmatprep.subr.bf16.mxu0 %v135_v0  ;;  %v131_v1 = vld [vmem:[%s178_s1] sm:$0xff]   ;;  %125 = vmatprep.mubr.msk.bf16.mxu0 %vm136_vm0, %v135_v0  ;;  %v132_v2 = vld [vmem:[%s178_s1 + $0x8] sm:$0xff]   ;;  %v133_v3 = vld [vmem:[%s178_s1 + $0x10] sm:$0xff]  }
   0x2   :  { %118 = vmatpush3.bf16.msra.mxu0 %v131_v1  ;;  %v134_v4 = vld [vmem:[%s178_s1 + $0x18] sm:$0xff]   ;;  %v15_v5 = vld [vmem:[%s179_s0] sm:$0xff] }
   0x3   :  { %119 = vmatprep.subr.bf16.mxu0 %v135_v0  ;;  %v16_v6 = vpack.c.bf16 %v15_v5, %v15_v5  ;;  %v106_v7 = vld [vmem:[%s180_s2] ss:$0 sm:$0xff] }
   0x6   :  { %120 = vmatpush3.bf16.msra.mxu0 %v132_v2 }
   0x7   :  { %121 = vmatprep.subr.bf16.mxu0 %v135_v0 }
   0xa   :  { %122 = vmatpush3.bf16.msra.mxu0 %v133_v3 }
   0xb   :  { %123 = vmatprep.subr.bf16.mxu0 %v135_v0 }
   0xe   :  { %124 = vmatpush3.bf16.msra.mxu0 %v134_v4 }
  0x11   :  { %126 = vmatmul.mubr.msk.bf16.vlgmr.msra.gmra.mrb[0].mxu0 %vm56_vm1, %v16_v6 }
  0xe4   :  { %v94_v8 = vpop.f32.mrb[0].mxu0 }
  0xe5   :  { %v95_v9 = vadd.f32 %v106_v7, %v94_v8  ;;  %v127_v10 = vpop.f32.mrb[1].mxu0 }
  0xe6   :  { %v97_v11 = vpop.f32.mrb[2].mxu0 }
  0xe7   :  { %101 = vst.msk [vmem:[%s181_s3] sm:$0xff] %vm100_vm2, %v95_v9  ;;  %v128_v12 = vpop.f32.mrb[3].mxu0 }

// kernel: cpvtv2_forward.24
= control target key start
LH: loop header
LB: loop body
LE: loop exit
PB: predicated region body
PF: predicated region fallthrough
CT: control target
= control target key end

     0   :  { %vm21_vm0 = vcmask 130048   ;;  %v125_v7 = vmov 0.0   ;;  %vm126_vm1 = vmmov 0   ;;  %vm102_vm2 = vcmask 261120   ;;  %s170_s0 = inlined_call_operand.vmem [shape: f32[8,16], index: 0, kind: input, shape index: {}]   ;;  %s171_s3 = inlined_call_operand.vmem [shape: bf16[16,32], index: 3, kind: input, shape index: {}]   ;;  %s172_s1 = inlined_call_operand.vmem [shape: f32[1,16], index: 1, kind: input, shape index: {}]   ;;  %s173_s2 = inlined_call_operand.vmem [shape: f32[1,16], index: 2, kind: input, shape index: {}]   ;;  %s174_s4 = inlined_call_operand.vmem [shape: f32[8,32], index: 4, kind: output, shape index: {}]  }
   0x1   :  { %v18_v0 = vld [vmem:[%s170_s0] sm:$0xff]  ;;  %114 = vmatprep.subr.bf16.mxu0 %v125_v7  ;;  %116 = vmatprep.mubr.msk.bf16.mxu0 %vm126_vm1, %v125_v7 }
   0x2   :  { %v22_v1 = vsel %vm21_vm0, %v18_v0, 0.0  ;;  %v122_v8 = vld [vmem:[%s171_s3] sm:$0xff]  }
   0x3   :  { %23 = vadd.xlane.f32.xlu0 %v22_v1  ;;  %115 = vmatpush3.bf16.msra.mxu0 %v122_v8  ;;  %v108_v13 = vld [vmem:[%s172_s1] ss:$0 sm:$0xff] }
   0x4   :  { %v109_v15 = vld [vmem:[%s173_s2] ss:$0 sm:$0xff] }
  0x90   :  { %v24_v2 = vpop.xlane.xlu0 %23 }
  0x91   :  { %v26_v3 = vmul.f32 0.0625, %v24_v2 }
  0x93   :  { %v27_v4 = vsub.f32 %v18_v0, %v26_v3 }
  0x95   :  { %v28_v5 = vmul.f32 %v27_v4, %v27_v4 }
  0x97   :  { %v29_v6 = vsel %vm21_vm0, %v28_v5, 0.0 }
  0x98   :  { %30 = vadd.xlane.f32.xlu0 %v29_v6 }
 0x125   :  { %v31_v9 = vpop.xlane.xlu0 %30 }
 0x126   :  { %v32_v10 = vmul.f32 0.0625, %v31_v9 }
 0x128   :  { %v33_v11 = vadd.f32 1e-05, %v32_v10 }
 0x12a   :  { %123 = vrsqrt.f32 %v33_v11 }
 0x134   :  { %v124_v12 = vpop.eup %123 }
 0x135   :  { %v35_v14 = vmul.f32 %v124_v12, %v27_v4 }
 0x137   :  { %v42_v16 = vmul.f32 %v108_v13, %v35_v14 }
 0x139   :  { %v49_v17 = vadd.f32 %v109_v15, %v42_v16 }
 0x13b   :  { %v50_v18 = vpack.c.bf16 %v49_v17, %v49_v17 }
 0x13d   :  { %117 = vmatmul.mubr.msk.bf16.vlgmr.msra.gmra.mrb[0].mxu0 %vm21_vm0, %v50_v18 }
 0x210   :  { %v96_v19 = vpop.f32.mrb[0].mxu0 }
 0x211   :  { %103 = vst.msk [vmem:[%s174_s4] sm:$0xff] %vm102_vm2, %v96_v19  ;;  %v118_v20 = vpop.f32.mrb[1].mxu0 }
 0x212   :  { %v99_v21 = vpop.f32.mrb[2].mxu0 }
 0x213   :  { %v119_v22 = vpop.f32.mrb[3].mxu0 }

// kernel: cpvtv2_forward.21
= control target key start
LH: loop header
LB: loop body
LE: loop exit
PB: predicated region body
PF: predicated region fallthrough
CT: control target
= control target key end

     0   :  { %vm58_vm0 = vcmask 392192   ;;  %vm116_vm1 = vcmask 130048   ;;  %s316_s1 = inlined_call_operand.vmem [shape: bf16[48,16], index: 1, kind: input, shape index: {}]   ;;  %s317_s0 = inlined_call_operand.vmem [shape: f32[32,48], index: 0, kind: input, shape index: {}]   ;;  %s318_s2 = inlined_call_operand.vmem [shape: f32[1,16], index: 2, kind: input, shape index: {}]   ;;  %s319_s3 = inlined_call_operand.vmem [shape: f32[1,16], index: 3, kind: input, shape index: {}]   ;;  %s320_s4 = inlined_call_operand.vmem [shape: f32[1,16], index: 4, kind: input, shape index: {}]   ;;  %s321_s5 = inlined_call_operand.vmem [shape: f32[32,16], index: 5, kind: output, shape index: {}]  }
   0x1   :  { %v221_v0 = vld [vmem:[%s316_s1] sm:$0xff]   ;;  %v222_v1 = vld [vmem:[%s316_s1 + $0x8] sm:$0xff]   ;;  %v223_v4 = vld [vmem:[%s316_s1 + $0x10] sm:$0xff]  }
   0x2   :  { %211 = vmatprep.subr.bf16.mxu0 %v221_v0  ;;  %v21_v2 = vld [vmem:[%s317_s0] sm:$0xff]  ;;  %v22_v3 = vld [vmem:[%s317_s0 + $0x8] sm:$0xff]  ;;  %v23_v6 = vld [vmem:[%s317_s0 + $0x10] sm:$0xff] }
   0x3   :  { %212 = vmatpush3.bf16.msra.mxu0 %v221_v0  ;;  %v25_v5 = vpack.c.bf16 %v22_v3, %v21_v2  ;;  %v24_v7 = vld [vmem:[%s317_s0 + $0x18] sm:$0xff]  ;;  %v198_v9 = vld [vmem:[%s318_s2] ss:$0 sm:$0xff] }
   0x4   :  { %213 = vmatprep.subr.bf16.mxu0 %v222_v1  ;;  %v26_v8 = vpack.c.bf16 %v24_v7, %v23_v6  ;;  %v204_v55 = vld [vmem:[%s319_s3] ss:$0 sm:$0xff] }
   0x5   :  { %217 = vmatprep.mubr.msk.bf16.mxu0 %vm58_vm0, %v25_v5  ;;  %v205_v57 = vld [vmem:[%s320_s4] ss:$0 sm:$0xff] }
   0x7   :  { %214 = vmatpush3.bf16.msra.mxu0 %v222_v1 }
   0x8   :  { %215 = vmatprep.subr.bf16.mxu0 %v223_v4 }
   0xb   :  { %216 = vmatpush3.bf16.msra.mxu0 %v223_v4 }
   0xe   :  { %218 = vmatmul.mubr.msk.bf16.vlgmr.msra.gmra.mrb[0].mxu0 %vm58_vm0, %v26_v8 }
  0xe1   :  { %v219_v10 = vpop.f32.mrb[0].mxu0 }
  0xe2   :  { %v108_v11 = vadd.f32 %v219_v10, %v198_v9  ;;  %v99_v12 = vpop.f32.mrb[1].mxu0 }
  0xe3   :  { %v100_v13 = vadd.f32 %v198_v9, %v99_v12  ;;  %v220_v14 = vpop.f32.mrb[2].mxu0 }
  0xe4   :  { %v111_v15 = vadd.f32 %v220_v14, %v198_v9  ;;  %v102_v16 = vpop.f32.mrb[3].mxu0  ;;  %v123_v17 = vsel %vm116_vm1, %v108_v11, 0.0 }
  0xe5   :  { %v103_v18 = vadd.f32 %v198_v9, %v102_v16  ;;  %124 = vadd.xlane.f32.xlu1 %v123_v17  ;;  %v117_v19 = vsel %vm116_vm1, %v100_v13, 0.0 }
  0xe6   :  { %118 = vadd.xlane.f32.xlu0 %v117_v19  ;;  %v126_v20 = vsel %vm116_vm1, %v111_v15, 0.0 }
  0xe7   :  { %v120_v21 = vsel %vm116_vm1, %v103_v18, 0.0 }
  0xe9   :  { %127 = vadd.xlane.f32.xlu1 %v126_v20 }
  0xea   :  { %121 = vadd.xlane.f32.xlu0 %v120_v21 }
 0x172   :  { %v125_v22 = vpop.xlane.xlu1 %124 }
 0x173   :  { %v132_v23 = vmul.f32 0.0625, %v125_v22  ;;  %v119_v24 = vpop.xlane.xlu0 %118 }
 0x174   :  { %v130_v25 = vmul.f32 0.0625, %v119_v24 }
 0x175   :  { %v136_v26 = vsub.f32 %v108_v11, %v132_v23 }
 0x176   :  { %v134_v27 = vsub.f32 %v100_v13, %v130_v25  ;;  %v128_v28 = vpop.xlane.xlu1 %127 }
 0x177   :  { %v133_v29 = vmul.f32 0.0625, %v128_v28  ;;  %v122_v30 = vpop.xlane.xlu0 %121  ;;  %v140_v36 = vmul.f32 %v136_v26, %v136_v26 }
 0x178   :  { %v131_v31 = vmul.f32 0.0625, %v122_v30  ;;  %v138_v32 = vmul.f32 %v134_v27, %v134_v27 }
 0x179   :  { %v137_v33 = vsub.f32 %v111_v15, %v133_v29  ;;  %v148_v38 = vsel %vm116_vm1, %v140_v36, 0.0 }
 0x17a   :  { %v135_v34 = vsub.f32 %v103_v18, %v131_v31  ;;  %v142_v35 = vsel %vm116_vm1, %v138_v32, 0.0 }
 0x17b   :  { %143 = vadd.xlane.f32.xlu0 %v142_v35  ;;  %v141_v40 = vmul.f32 %v137_v33, %v137_v33 }
 0x17c   :  { %v139_v37 = vmul.f32 %v135_v34, %v135_v34 }
 0x17d   :  { %v151_v41 = vsel %vm116_vm1, %v141_v40, 0.0 }
 0x17e   :  { %v145_v39 = vsel %vm116_vm1, %v139_v37, 0.0 }
 0x17f   :  { %149 = vadd.xlane.f32.xlu0 %v148_v38  ;;  %146 = vadd.xlane.f32.xlu1 %v145_v39 }
 0x183   :  { %152 = vadd.xlane.f32.xlu1 %v151_v41 }
 0x208   :  { %v144_v42 = vpop.xlane.xlu0 %143 }
 0x209   :  { %v154_v43 = vmul.f32 0.0625, %v144_v42 }
 0x20b   :  { %v158_v44 = vadd.f32 1e-05, %v154_v43 }
 0x20c   :  { %v147_v45 = vpop.xlane.xlu1 %146  ;;  %v150_v46 = vpop.xlane.xlu0 %149 }
 0x20d   :  { %224 = vrsqrt.f32 %v158_v44  ;;  %v155_v47 = vmul.f32 0.0625, %v147_v45  ;;  %v156_v48 = vmul.f32 0.0625, %v150_v46 }
 0x20f   :  { %v159_v49 = vadd.f32 1e-05, %v155_v47  ;;  %v160_v50 = vadd.f32 1e-05, %v156_v48 }
 0x210   :  { %v153_v51 = vpop.xlane.xlu1 %152 }
 0x211   :  { %226 = vrsqrt.f32 %v159_v49  ;;  %v157_v52 = vmul.f32 0.0625, %v153_v51 }
 0x212   :  { %228 = vrsqrt.f32 %v160_v50 }
 0x213   :  { %v161_v53 = vadd.f32 1e-05, %v157_v52 }
 0x215   :  { %230 = vrsqrt.f32 %v161_v53 }
 0x217   :  { %v225_v54 = vpop.eup %224 }
 0x218   :  { %v166_v56 = vmul.f32 %v225_v54, %v134_v27 }
 0x21a   :  { %v176_v58 = vmul.f32 %v204_v55, %v166_v56 }
 0x21b   :  { %v227_v59 = vpop.eup %226 }
 0x21c   :  { %v229_v60 = vpop.eup %228  ;;  %v186_v61 = vadd.f32 %v205_v57, %v176_v58  ;;  %v167_v62 = vmul.f32 %v227_v59, %v135_v34 }
 0x21d   :  { %v168_v63 = vmul.f32 %v229_v60, %v136_v26 }
 0x21e   :  { %190 = vst.msk [vmem:[%s321_s5] sm:$0xff] %vm116_vm1, %v186_v61  ;;  %v177_v0 = vmul.f32 %v204_v55, %v167_v62 }
 0x21f   :  { %v231_v1 = vpop.eup %230  ;;  %v178_v2 = vmul.f32 %v204_v55, %v168_v63 }
 0x220   :  { %v187_v3 = vadd.f32 %v205_v57, %v177_v0  ;;  %v169_v4 = vmul.f32 %v231_v1, %v137_v33 }
 0x221   :  { %v188_v5 = vadd.f32 %v205_v57, %v178_v2 }
 0x222   :  { %191 = vst.msk [vmem:[%s321_s5 + $0x8] sm:$0xff] %vm116_vm1, %v187_v3  ;;  %v179_v6 = vmul.f32 %v204_v55, %v169_v4 }
 0x223   :  { %192 = vst.msk [vmem:[%s321_s5 + $0x10] sm:$0xff] %vm116_vm1, %v188_v5 }
 0x224   :  { %v189_v7 = vadd.f32 %v205_v57, %v179_v6 }
 0x226   :  { %193 = vst.msk [vmem:[%s321_s5 + $0x18] sm:$0xff] %vm116_vm1, %v189_v7 }

// kernel: cpvtv2_forward.22
= control target key start
LH: loop header
LB: loop body
LE: loop exit
PB: predicated region body
PF: predicated region fallthrough
CT: control target
= control target key end

     0   :  { %vm26_vm0 = vcmask 130048   ;;  %s297_s0 = inlined_call_operand.vmem [shape: f32[32,16], index: 0, kind: input, shape index: {}]   ;;  %s298_s3 = inlined_call_operand.vmem [shape: bf16[16,16], index: 3, kind: input, shape index: {}]   ;;  %s299_s1 = inlined_call_operand.vmem [shape: f32[1,16], index: 1, kind: input, shape index: {}]   ;;  %s300_s2 = inlined_call_operand.vmem [shape: f32[1,16], index: 2, kind: input, shape index: {}]   ;;  %s301_s5 = inlined_call_operand.vmem [shape: f32[32,16], index: 5, kind: output, shape index: {1}]   ;;  %s302_s4 = inlined_call_operand.vmem [shape: f32[32,16], index: 4, kind: output, shape index: {0}]  }
   0x1   :  { %v20_v0 = vld [vmem:[%s297_s0] sm:$0xff]  ;;  %v22_v1 = vld [vmem:[%s297_s0 + $0x10] sm:$0xff]  ;;  %v21_v2 = vld [vmem:[%s297_s0 + $0x8] sm:$0xff] }
   0x2   :  { %v27_v3 = vsel %vm26_vm0, %v20_v0, 0.0  ;;  %v33_v4 = vsel %vm26_vm0, %v22_v1, 0.0  ;;  %v23_v5 = vld [vmem:[%s297_s0 + $0x18] sm:$0xff]  ;;  %v30_v6 = vsel %vm26_vm0, %v21_v2, 0.0  ;;  %v195_v28 = vld [vmem:[%s298_s3] sm:$0xff]  }
   0x3   :  { %28 = vadd.xlane.f32.xlu0 %v27_v3  ;;  %34 = vadd.xlane.f32.xlu1 %v33_v4  ;;  %v36_v7 = vsel %vm26_vm0, %v23_v5, 0.0  ;;  %v181_v42 = vld [vmem:[%s299_s1] ss:$0 sm:$0xff] }
   0x4   :  { %189 = vmatprep.subr.bf16.mxu0 %v195_v28  ;;  %v182_v44 = vld [vmem:[%s300_s2] ss:$0 sm:$0xff] }
   0x5   :  { %190 = vmatpush3.bf16.msra.mxu0 %v195_v28 }
   0x7   :  { %31 = vadd.xlane.f32.xlu0 %v30_v6  ;;  %37 = vadd.xlane.f32.xlu1 %v36_v7 }
  0x90   :  { %v29_v8 = vpop.xlane.xlu0 %28  ;;  %v35_v9 = vpop.xlane.xlu1 %34 }
  0x91   :  { %v40_v10 = vmul.f32 0.0625, %v29_v8  ;;  %v42_v11 = vmul.f32 0.0625, %v35_v9 }
  0x93   :  { %v44_v12 = vsub.f32 %v20_v0, %v40_v10  ;;  %v46_v13 = vsub.f32 %v22_v1, %v42_v11 }
  0x94   :  { %v32_v14 = vpop.xlane.xlu0 %31  ;;  %v38_v15 = vpop.xlane.xlu1 %37 }
  0x95   :  { %v41_v16 = vmul.f32 0.0625, %v32_v14  ;;  %v43_v17 = vmul.f32 0.0625, %v38_v15  ;;  %v48_v18 = vmul.f32 %v44_v12, %v44_v12  ;;  %v50_v19 = vmul.f32 %v46_v13, %v46_v13 }
  0x97   :  { %v45_v20 = vsub.f32 %v21_v2, %v41_v16  ;;  %v47_v21 = vsub.f32 %v23_v5, %v43_v17  ;;  %v52_v22 = vsel %vm26_vm0, %v48_v18, 0.0  ;;  %v58_v23 = vsel %vm26_vm0, %v50_v19, 0.0 }
  0x98   :  { %53 = vadd.xlane.f32.xlu0 %v52_v22 }
  0x99   :  { %v49_v24 = vmul.f32 %v45_v20, %v45_v20  ;;  %v51_v25 = vmul.f32 %v47_v21, %v47_v21 }
  0x9b   :  { %v55_v26 = vsel %vm26_vm0, %v49_v24, 0.0  ;;  %v61_v27 = vsel %vm26_vm0, %v51_v25, 0.0 }
  0x9c   :  { %59 = vadd.xlane.f32.xlu0 %v58_v23  ;;  %56 = vadd.xlane.f32.xlu1 %v55_v26 }
  0xa0   :  { %62 = vadd.xlane.f32.xlu1 %v61_v27 }
 0x125   :  { %v54_v29 = vpop.xlane.xlu0 %53 }
 0x126   :  { %v64_v30 = vmul.f32 0.0625, %v54_v29 }
 0x128   :  { %v68_v31 = vadd.f32 1e-05, %v64_v30 }
 0x129   :  { %v57_v32 = vpop.xlane.xlu1 %56  ;;  %v60_v33 = vpop.xlane.xlu0 %59 }
 0x12a   :  { %196 = vrsqrt.f32 %v68_v31  ;;  %v65_v34 = vmul.f32 0.0625, %v57_v32  ;;  %v66_v35 = vmul.f32 0.0625, %v60_v33 }
 0x12c   :  { %v69_v36 = vadd.f32 1e-05, %v65_v34  ;;  %v70_v37 = vadd.f32 1e-05, %v66_v35 }
 0x12d   :  { %v63_v38 = vpop.xlane.xlu1 %62 }
 0x12e   :  { %198 = vrsqrt.f32 %v69_v36  ;;  %v67_v39 = vmul.f32 0.0625, %v63_v38 }
 0x12f   :  { %200 = vrsqrt.f32 %v70_v37 }
 0x130   :  { %v71_v40 = vadd.f32 1e-05, %v67_v39 }
 0x132   :  { %202 = vrsqrt.f32 %v71_v40 }
 0x134   :  { %v197_v41 = vpop.eup %196 }
 0x135   :  { %v76_v43 = vmul.f32 %v197_v41, %v44_v12 }
 0x137   :  { %v86_v45 = vmul.f32 %v181_v42, %v76_v43 }
 0x138   :  { %v199_v46 = vpop.eup %198 }
 0x139   :  { %v201_v47 = vpop.eup %200  ;;  %v77_v48 = vmul.f32 %v199_v46, %v45_v20  ;;  %v96_v49 = vadd.f32 %v182_v44, %v86_v45 }
 0x13a   :  { %v78_v50 = vmul.f32 %v201_v47, %v46_v13 }
 0x13b   :  { %v87_v51 = vmul.f32 %v181_v42, %v77_v48  ;;  %100 = vst.msk [vmem:[%s301_s5] sm:$0xff] %vm26_vm0, %v96_v49 }
 0x13c   :  { %v203_v52 = vpop.eup %202  ;;  %v88_v53 = vmul.f32 %v181_v42, %v78_v50 }
 0x13d   :  { %v79_v54 = vmul.f32 %v203_v52, %v47_v21  ;;  %v97_v55 = vadd.f32 %v182_v44, %v87_v51 }
 0x13e   :  { %v98_v56 = vadd.f32 %v182_v44, %v88_v53 }
 0x13f   :  { %101 = vst.msk [vmem:[%s301_s5 + $0x8] sm:$0xff] %vm26_vm0, %v97_v55  ;;  %v104_v57 = vpack.c.bf16 %v97_v55, %v96_v49  ;;  %v89_v58 = vmul.f32 %v181_v42, %v79_v54 }
 0x140   :  { %102 = vst.msk [vmem:[%s301_s5 + $0x10] sm:$0xff] %vm26_vm0, %v98_v56 }
 0x141   :  { %191 = vmatprep.mubr.msk.bf16.mxu0 %vm26_vm0, %v104_v57  ;;  %v99_v59 = vadd.f32 %v182_v44, %v89_v58 }
 0x143   :  { %103 = vst.msk [vmem:[%s301_s5 + $0x18] sm:$0xff] %vm26_vm0, %v99_v59  ;;  %v105_v60 = vpack.c.bf16 %v99_v59, %v98_v56 }
 0x145   :  { %192 = vmatmul.mubr.msk.bf16.vlgmr.msra.gmra.mrb[0].mxu0 %vm26_vm0, %v105_v60 }
 0x218   :  { %v193_v61 = vpop.f32.mrb[0].mxu0 }
 0x219   :  { %171 = vst.msk [vmem:[%s302_s4 + $0x10] sm:$0xff] %vm26_vm0, %v193_v61  ;;  %v154_v62 = vpop.f32.mrb[1].mxu0 }
 0x21a   :  { %169 = vst.msk [vmem:[%s302_s4] sm:$0xff] %vm26_vm0, %v154_v62  ;;  %v194_v63 = vpop.f32.mrb[2].mxu0 }
 0x21b   :  { %172 = vst.msk [vmem:[%s302_s4 + $0x18] sm:$0xff] %vm26_vm0, %v194_v63  ;;  %v157_v0 = vpop.f32.mrb[3].mxu0 }
 0x21c   :  { %170 = vst.msk [vmem:[%s302_s4 + $0x8] sm:$0xff] %vm26_vm0, %v157_v0 }

// kernel: cpvtv2_forward.26
= control target key start
LH: loop header
LB: loop body
LE: loop exit
PB: predicated region body
PF: predicated region fallthrough
CT: control target
= control target key end

     0   :  { %vm39_vm0 = vcmask 130048   ;;  %s198_s1 = inlined_call_operand.vmem [shape: bf16[16,16], index: 1, kind: input, shape index: {}]   ;;  %s199_s0 = inlined_call_operand.vmem [shape: f32[32,16], index: 0, kind: input, shape index: {}]   ;;  %s200_s2 = inlined_call_operand.vmem [shape: f32[1,16], index: 2, kind: input, shape index: {}]   ;;  %s201_s3 = inlined_call_operand.vmem [shape: f32[32,16], index: 3, kind: input, shape index: {}]   ;;  %s202_s4 = inlined_call_operand.vmem [shape: f32[32,16], index: 4, kind: output, shape index: {}]  }
   0x1   :  { %v124_v0 = vld [vmem:[%s198_s1] sm:$0xff]   ;;  %v19_v2 = vld [vmem:[%s199_s0 + $0x8] sm:$0xff]  ;;  %v20_v3 = vld [vmem:[%s199_s0 + $0x10] sm:$0xff] }
   0x2   :  { %v18_v1 = vld [vmem:[%s199_s0] sm:$0xff]  ;;  %118 = vmatprep.subr.bf16.mxu0 %v124_v0  ;;  %v21_v5 = vld [vmem:[%s199_s0 + $0x18] sm:$0xff]  ;;  %v97_v9 = vld [vmem:[%s201_s3 + $0x10] sm:$0xff] }
   0x3   :  { %v22_v4 = vpack.c.bf16 %v19_v2, %v18_v1  ;;  %119 = vmatpush3.bf16.msra.mxu0 %v124_v0  ;;  %v23_v6 = vpack.c.bf16 %v21_v5, %v20_v3  ;;  %v111_v7 = vld [vmem:[%s200_s2] ss:$0 sm:$0xff]  ;;  %v98_v15 = vld [vmem:[%s201_s3 + $0x18] sm:$0xff]  ;;  %v96_v19 = vld [vmem:[%s201_s3 + $0x8] sm:$0xff] }
   0x4   :  { %v95_v12 = vld [vmem:[%s201_s3] sm:$0xff] }
   0x5   :  { %120 = vmatprep.mubr.msk.bf16.mxu0 %vm39_vm0, %v22_v4 }
   0x6   :  { %121 = vmatmul.mubr.msk.bf16.vlgmr.msra.gmra.mrb[0].mxu0 %vm39_vm0, %v23_v6 }
  0xd9   :  { %v122_v8 = vpop.f32.mrb[0].mxu0 }
  0xda   :  { %v89_v10 = vadd.f32 %v122_v8, %v111_v7  ;;  %v80_v11 = vpop.f32.mrb[1].mxu0 }
  0xdb   :  { %v81_v13 = vadd.f32 %v111_v7, %v80_v11  ;;  %v123_v14 = vpop.f32.mrb[2].mxu0 }
  0xdc   :  { %v101_v16 = vadd.f32 %v97_v9, %v89_v10  ;;  %v92_v17 = vadd.f32 %v123_v14, %v111_v7  ;;  %v83_v18 = vpop.f32.mrb[3].mxu0 }
  0xdd   :  { %v99_v20 = vadd.f32 %v95_v12, %v81_v13  ;;  %v84_v21 = vadd.f32 %v111_v7, %v83_v18 }
  0xde   :  { %105 = vst.msk [vmem:[%s202_s4 + $0x10] sm:$0xff] %vm39_vm0, %v101_v16  ;;  %v102_v22 = vadd.f32 %v98_v15, %v92_v17 }
  0xdf   :  { %103 = vst.msk [vmem:[%s202_s4] sm:$0xff] %vm39_vm0, %v99_v20  ;;  %v100_v23 = vadd.f32 %v96_v19, %v84_v21 }
  0xe0   :  { %106 = vst.msk [vmem:[%s202_s4 + $0x18] sm:$0xff] %vm39_vm0, %v102_v22 }
  0xe1   :  { %104 = vst.msk [vmem:[%s202_s4 + $0x8] sm:$0xff] %vm39_vm0, %v100_v23 }

// kernel: cpvtv2_forward.25
= control target key start
LH: loop header
LB: loop body
LE: loop exit
PB: predicated region body
PF: predicated region fallthrough
CT: control target
= control target key end

     0   :  { %s541_s9 = smov 0   ;;  %s543_s10 = smov 0   ;;  %s594_s0 = inlined_call_operand.vmem [shape: f32[2,16,16], index: 0, kind: input, shape index: {}]   ;;  %s595_s1 = inlined_call_operand.vmem [shape: f32[2,4,32], index: 1, kind: input, shape index: {}]   ;;  %s596_s2 = inlined_call_operand.vmem [shape: f32[2,16,16], index: 2, kind: output, shape index: {}]  }
   0x1   :  { %s545_s11 = smov 0  }
   0x2 LB: > { %s24_s12 = sadd.s32 1, %s517_s10  ;;  %p436_p0 = scmp.ge.s32.totalorder %s521_s11, 1  ;;  %s521_s11 = sphi %s545_s11, %s12_s11   ;;  %s517_s10 = sphi %s543_s10, %s598_s10   ;;  %s513_s9 = sphi %s541_s9, %s597_s9  }
   0x3   : > { %p26_p1 = scmp.ge.s32.totalorder %s24_s12, 2  ;;  %p142_p2 = scmp.lt.s32.totalorder %s521_s11, 3 }
   0x5   : > { %s600_s12 = smov (%p26_p1, %s24_s12), 0  ;;  %p143_p3 = pnand %p436_p0, %p142_p2 }
   0x6   : > { %p177_p4 = scmp.lt.s32.totalorder (!%p143_p3), %s513_s9, 1  ;;  %v523_v0 = vmov (!%p143_p3), 0.0   ;;  %vm524_vm0 = vmmov (!%p143_p3), 0   ;;  %vm206_vm1 = vcmask (!%p143_p3), 130048   ;;  %vm256_vm2 = vcmask (!%p143_p3), 31744   ;;  %s525_s21 = smov (!%p143_p3), 112  }
   0x7   : > { %146 = sbr.rel (%p143_p3) target bundleno = 777 (0x309), region = 28  ;;  %452 = vmatprep.subr.bf16.mxu0 (!%p143_p3), %v523_v0  ;;  %454 = vmatprep.mubr.msk.bf16.mxu0 (!%p143_p3), %vm524_vm0, %v523_v0  ;;  %vm286_vm3 = vcmask (!%p143_p3), 1041408  }
   0x8   : > { %458 = vmatprep.subr.bf16.mxu1 (!%p143_p3), %v523_v0  ;;  %460 = vmatprep.mubr.msk.bf16.mxu1 (!%p143_p3), %vm524_vm0, %v523_v0 }
   0xe   : > { %s602_s9 = smov (!%p177_p4, %s513_s9), 1 }
   0xf   : > { %s446_s13 = sshll.u32 %s602_s9, 4  ;;  %s439_s14 = sshll.u32 %s602_s9, 2 }
  0x10   : > { %s189_s17 = scalar_lea.vmem %s595_s1, %s439_s14  ;;  %s184_s20 = scalar_lea.vmem %s594_s0, %s446_s13 }
  0x11   : > { %v203_v1 = vld [vmem:[%s189_s17] sm:$0xf]  ;;  %v202_v5 = vld [vmem:[%s184_s20 + $0x8] sm:$0xff]  ;;  %s198_s24 = scalar_lea.vmem %s596_s2, %s446_s13 }
  0x12   : > { %v205_v2 = vpack.c.bf16 %v203_v1, %v203_v1  ;;  %v201_v4 = vld [vmem:[%s184_s20] sm:$0xff] }
  0x13   : > { %v204_v6 = vpack.c.bf16 %v202_v5, %v201_v4 }
  0x14   : > { %v211_v3 = vsel %vm206_vm1, %v205_v2, 0 }
  0x15   : > { %453 = vmatpush3.bf16.xpose.msra.mxu0 %v211_v3 }
  0x1c   : > { %455 = vmatmul.mubr.msk.bf16.vlgmr.msra.gmra.mrb[0].mxu0 %vm206_vm1, %v204_v6 }
  0xef   : > { %v247_v7 = vpop.f32.mrb[0].mxu0 }
  0xf0   : > { %v254_v8 = vmul.f32 0.25, %v247_v7  ;;  %v456_v9 = vpop.f32.mrb[1].mxu0 }
  0xf1   : > { %v250_v10 = vpop.f32.mrb[2].mxu0 }
  0xf2   : > { %v255_v11 = vmul.f32 0.25, %v250_v10  ;;  %v457_v12 = vpop.f32.mrb[3].mxu0  ;;  %v257_v13 = vsel %vm256_vm2, %v254_v8, -inf }
  0xf3   : > { %258 = vmax.xlane.f32.xlu0 %v257_v13 }
  0xf4   : > { %v260_v14 = vsel %vm256_vm2, %v255_v11, -inf }
  0xf7   : > { %261 = vmax.xlane.f32.xlu0 %v260_v14 }
 0x10d   : > { %281 = vrot.lane.b32.xlu0 %v205_v2, %s525_s21 }
 0x180   : > { %v259_v15 = vpop.xlane.xlu0 %258 }
 0x181   : > { %v263_v16 = vsub.f32 %v254_v8, %v259_v15 }
 0x183   : > { %v265_v17 = vmul.f32 1.442695, %v263_v16 }
 0x184   : > { %v262_v18 = vpop.xlane.xlu0 %261 }
 0x185   : > { %491 = vpow2.f32 %v265_v17  ;;  %v264_v19 = vsub.f32 %v255_v11, %v262_v18 }
 0x187   : > { %v267_v20 = vmul.f32 1.442695, %v264_v19 }
 0x188   : > { %v282_v25 = vpop.permute.xlu0 %281 }
 0x189   : > { %493 = vpow2.f32 %v267_v20  ;;  %v288_v26 = vsel %vm286_vm3, %v282_v25, 0 }
 0x18a   : > { %459 = vmatpush3.bf16.msra.mxu1 %v288_v26 }
 0x18f   : > { %v492_v21 = vpop.eup %491 }
 0x190   : > { %v269_v22 = vsel %vm256_vm2, %v492_v21, 0.0 }
 0x191   : > { %270 = vadd.xlane.f32.xlu1 %v269_v22 }
 0x193   : > { %v494_v23 = vpop.eup %493 }
 0x194   : > { %v272_v24 = vsel %vm256_vm2, %v494_v23, 0.0 }
 0x195   : > { %273 = vadd.xlane.f32.xlu1 %v272_v24 }
 0x21e   : > { %v271_v27 = vpop.xlane.xlu1 %270 }
 0x21f   : > { %495 = vrcp.f32 %v271_v27 }
 0x222   : > { %v274_v28 = vpop.xlane.xlu1 %273 }
 0x223   : > { %497 = vrcp.f32 %v274_v28 }
 0x229   : > { %v496_v29 = vpop.eup %495 }
 0x22a   : > { %v277_v31 = vmul.f32 %v496_v29, %v492_v21 }
 0x22d   : > { %v498_v30 = vpop.eup %497 }
 0x22e   : > { %v278_v32 = vmul.f32 %v498_v30, %v494_v23 }
 0x230   : > { %v279_v33 = vpack.c.bf16 %v278_v32, %v277_v31 }
 0x232   : > { %461 = vmatmul.mubr.msk.bf16.vlgmr.msra.gmra.mrb[0].mxu1 %vm256_vm2, %v279_v33 }
 0x305   : > { %v324_v34 = vpop.f32.mrb[0].mxu1 }
 0x306   : > { %331 = vst.msk [vmem:[%s198_s24] sm:$0xff] %vm206_vm1, %v324_v34  ;;  %v462_v35 = vpop.f32.mrb[1].mxu1 }
 0x307   : > { %v327_v36 = vpop.f32.mrb[2].mxu1 }
 0x308   : > { %332 = vst.msk [vmem:[%s198_s24 + $0x8] sm:$0xff] %vm206_vm1, %v327_v36  ;;  %v463_v37 = vpop.f32.mrb[3].mxu1 }
 0x309 PF: > { %s12_s11 = sadd.s32 1, %s521_s11   ;;  %s597_s9 = smov %s517_s10 }
 0x30a   : > { %p9_p5 = scmp.ge.s32.totalorder %s12_s11, 4   ;;  %s598_s10 = smov %s600_s12 }
 0x30c   :  { %11 = sbr.rel (!%p9_p5) target bundleno = 2 (0x2), region = 61 }

// kernel: cpvtv2_forward.27
= control target key start
LH: loop header
LB: loop body
LE: loop exit
PB: predicated region body
PF: predicated region fallthrough
CT: control target
= control target key end

     0   :  { %vm27_vm0 = vcmask 130048   ;;  %vm209_vm1 = vcmask 261120   ;;  %s326_s0 = inlined_call_operand.vmem [shape: f32[32,16], index: 0, kind: input, shape index: {}]   ;;  %s327_s3 = inlined_call_operand.vmem [shape: bf16[16,32], index: 3, kind: input, shape index: {}]   ;;  %s328_s1 = inlined_call_operand.vmem [shape: f32[1,16], index: 1, kind: input, shape index: {}]   ;;  %s329_s2 = inlined_call_operand.vmem [shape: f32[1,16], index: 2, kind: input, shape index: {}]   ;;  %s330_s4 = inlined_call_operand.vmem [shape: f32[1,32], index: 4, kind: input, shape index: {}]   ;;  %s331_s5 = inlined_call_operand.vmem [shape: f32[32,32], index: 5, kind: output, shape index: {}]  }
   0x1   :  { %v21_v0 = vld [vmem:[%s326_s0] sm:$0xff]  ;;  %v23_v1 = vld [vmem:[%s326_s0 + $0x10] sm:$0xff]  ;;  %v22_v2 = vld [vmem:[%s326_s0 + $0x8] sm:$0xff] }
   0x2   :  { %v28_v3 = vsel %vm27_vm0, %v21_v0, 0.0  ;;  %v34_v4 = vsel %vm27_vm0, %v23_v1, 0.0  ;;  %v24_v5 = vld [vmem:[%s326_s0 + $0x18] sm:$0xff]  ;;  %v31_v6 = vsel %vm27_vm0, %v22_v2, 0.0  ;;  %v233_v28 = vld [vmem:[%s327_s3] sm:$0xff]  }
   0x3   :  { %29 = vadd.xlane.f32.xlu0 %v28_v3  ;;  %35 = vadd.xlane.f32.xlu1 %v34_v4  ;;  %v37_v7 = vsel %vm27_vm0, %v24_v5, 0.0  ;;  %v218_v43 = vld [vmem:[%s328_s1] ss:$0 sm:$0xff] }
   0x4   :  { %227 = vmatprep.subr.bf16.mxu0 %v233_v28  ;;  %v219_v49 = vld [vmem:[%s329_s2] ss:$0 sm:$0xff] }
   0x5   :  { %228 = vmatpush3.bf16.msra.mxu0 %v233_v28  ;;  %v220_v61 = vld [vmem:[%s330_s4] ss:$0 sm:$0xff] }
   0x7   :  { %32 = vadd.xlane.f32.xlu0 %v31_v6  ;;  %38 = vadd.xlane.f32.xlu1 %v37_v7 }
  0x90   :  { %v30_v8 = vpop.xlane.xlu0 %29  ;;  %v36_v9 = vpop.xlane.xlu1 %35 }
  0x91   :  { %v41_v10 = vmul.f32 0.0625, %v30_v8  ;;  %v43_v11 = vmul.f32 0.0625, %v36_v9 }
  0x93   :  { %v45_v12 = vsub.f32 %v21_v0, %v41_v10  ;;  %v47_v13 = vsub.f32 %v23_v1, %v43_v11 }
  0x94   :  { %v33_v14 = vpop.xlane.xlu0 %32  ;;  %v39_v15 = vpop.xlane.xlu1 %38 }
  0x95   :  { %v42_v16 = vmul.f32 0.0625, %v33_v14  ;;  %v44_v17 = vmul.f32 0.0625, %v39_v15  ;;  %v49_v18 = vmul.f32 %v45_v12, %v45_v12  ;;  %v51_v19 = vmul.f32 %v47_v13, %v47_v13 }
  0x97   :  { %v46_v20 = vsub.f32 %v22_v2, %v42_v16  ;;  %v48_v21 = vsub.f32 %v24_v5, %v44_v17  ;;  %v53_v22 = vsel %vm27_vm0, %v49_v18, 0.0  ;;  %v59_v23 = vsel %vm27_vm0, %v51_v19, 0.0 }
  0x98   :  { %54 = vadd.xlane.f32.xlu0 %v53_v22 }
  0x99   :  { %v50_v24 = vmul.f32 %v46_v20, %v46_v20  ;;  %v52_v25 = vmul.f32 %v48_v21, %v48_v21 }
  0x9b   :  { %v56_v26 = vsel %vm27_vm0, %v50_v24, 0.0  ;;  %v62_v27 = vsel %vm27_vm0, %v52_v25, 0.0 }
  0x9c   :  { %60 = vadd.xlane.f32.xlu0 %v59_v23  ;;  %57 = vadd.xlane.f32.xlu1 %v56_v26 }
  0xa0   :  { %63 = vadd.xlane.f32.xlu1 %v62_v27 }
 0x125   :  { %v55_v29 = vpop.xlane.xlu0 %54 }
 0x126   :  { %v65_v30 = vmul.f32 0.0625, %v55_v29 }
 0x128   :  { %v69_v31 = vadd.f32 1e-05, %v65_v30 }
 0x129   :  { %v58_v32 = vpop.xlane.xlu1 %57  ;;  %v61_v33 = vpop.xlane.xlu0 %60 }
 0x12a   :  { %234 = vrsqrt.f32 %v69_v31  ;;  %v66_v34 = vmul.f32 0.0625, %v58_v32  ;;  %v67_v35 = vmul.f32 0.0625, %v61_v33 }
 0x12c   :  { %v70_v36 = vadd.f32 1e-05, %v66_v34  ;;  %v71_v37 = vadd.f32 1e-05, %v67_v35 }
 0x12d   :  { %v64_v38 = vpop.xlane.xlu1 %63 }
 0x12e   :  { %236 = vrsqrt.f32 %v70_v36  ;;  %v68_v39 = vmul.f32 0.0625, %v64_v38 }
 0x12f   :  { %238 = vrsqrt.f32 %v71_v37 }
 0x130   :  { %v72_v40 = vadd.f32 1e-05, %v68_v39 }
 0x132   :  { %240 = vrsqrt.f32 %v72_v40 }
 0x134   :  { %v235_v41 = vpop.eup %234 }
 0x135   :  { %v77_v42 = vmul.f32 %v235_v41, %v45_v12 }
 0x137   :  { %v87_v47 = vmul.f32 %v218_v43, %v77_v42 }
 0x138   :  { %v237_v44 = vpop.eup %236 }
 0x139   :  { %v239_v45 = vpop.eup %238  ;;  %v78_v46 = vmul.f32 %v237_v44, %v46_v20  ;;  %v97_v53 = vadd.f32 %v219_v49, %v87_v47 }
 0x13a   :  { %v79_v48 = vmul.f32 %v239_v45, %v47_v13 }
 0x13b   :  { %v88_v50 = vmul.f32 %v218_v43, %v78_v46 }
 0x13c   :  { %v241_v51 = vpop.eup %240  ;;  %v89_v55 = vmul.f32 %v218_v43, %v79_v48 }
 0x13d   :  { %v80_v52 = vmul.f32 %v241_v51, %v48_v21  ;;  %v98_v54 = vadd.f32 %v219_v49, %v88_v50 }
 0x13e   :  { %v99_v58 = vadd.f32 %v219_v49, %v89_v55 }
 0x13f   :  { %v101_v56 = vpack.c.bf16 %v98_v54, %v97_v53  ;;  %v90_v57 = vmul.f32 %v218_v43, %v80_v52 }
 0x141   :  { %229 = vmatprep.mubr.msk.bf16.mxu0 %vm27_vm0, %v101_v56  ;;  %v100_v59 = vadd.f32 %v219_v49, %v90_v57 }
 0x143   :  { %v102_v60 = vpack.c.bf16 %v100_v59, %v99_v58 }
 0x145   :  { %230 = vmatmul.mubr.msk.bf16.vlgmr.msra.gmra.mrb[0].mxu0 %vm27_vm0, %v102_v60 }
 0x218   :  { %v231_v62 = vpop.f32.mrb[0].mxu0 }
 0x219   :  { %v167_v63 = vadd.f32 %v231_v62, %v220_v61  ;;  %v158_v0 = vpop.f32.mrb[1].mxu0 }
 0x21a   :  { %v159_v1 = vadd.f32 %v220_v61, %v158_v0  ;;  %v232_v2 = vpop.f32.mrb[2].mxu0 }
 0x21b   :  { %v179_v3 = vmul.f32 0.044715, %v167_v63  ;;  %v170_v4 = vadd.f32 %v232_v2, %v220_v61  ;;  %v161_v5 = vpop.f32.mrb[3].mxu0  ;;  %v175_v28 = vmul.f32 0.5, %v167_v63 }
 0x21c   :  { %v177_v6 = vmul.f32 0.044715, %v159_v1  ;;  %v162_v7 = vadd.f32 %v220_v61, %v161_v5  ;;  %v173_v31 = vmul.f32 0.5, %v159_v1 }
 0x21d   :  { %v183_v8 = vmul.f32 %v179_v3, %v167_v63  ;;  %v180_v9 = vmul.f32 0.044715, %v170_v4  ;;  %v176_v35 = vmul.f32 0.5, %v170_v4 }
 0x21e   :  { %v181_v10 = vmul.f32 %v177_v6, %v159_v1  ;;  %v178_v11 = vmul.f32 0.044715, %v162_v7  ;;  %v174_v38 = vmul.f32 0.5, %v162_v7 }
 0x21f   :  { %v187_v12 = vmul.f32 %v183_v8, %v167_v63  ;;  %v184_v13 = vmul.f32 %v180_v9, %v170_v4 }
 0x220   :  { %v185_v14 = vmul.f32 %v181_v10, %v159_v1  ;;  %v182_v15 = vmul.f32 %v178_v11, %v162_v7 }
 0x221   :  { %v191_v16 = vadd.f32 %v187_v12, %v167_v63  ;;  %v188_v17 = vmul.f32 %v184_v13, %v170_v4 }
 0x222   :  { %v189_v18 = vadd.f32 %v185_v14, %v159_v1  ;;  %v186_v19 = vmul.f32 %v182_v15, %v162_v7 }
 0x223   :  { %v195_v20 = vmul.f32 0.7978846, %v191_v16  ;;  %v192_v21 = vadd.f32 %v188_v17, %v170_v4 }
 0x224   :  { %v193_v22 = vmul.f32 0.7978846, %v189_v18  ;;  %v190_v23 = vadd.f32 %v186_v19, %v162_v7 }
 0x225   :  { %242 = vtanh.f32 %v195_v20  ;;  %v196_v24 = vmul.f32 0.7978846, %v192_v21 }
 0x226   :  { %244 = vtanh.f32 %v193_v22  ;;  %v194_v25 = vmul.f32 0.7978846, %v190_v23 }
 0x227   :  { %246 = vtanh.f32 %v196_v24 }
 0x228   :  { %248 = vtanh.f32 %v194_v25 }
 0x22f   :  { %v243_v26 = vpop.eup %242 }
 0x230   :  { %v245_v27 = vpop.eup %244  ;;  %v203_v29 = vadd.f32 1.0, %v243_v26 }
 0x231   :  { %v247_v30 = vpop.eup %246  ;;  %v201_v32 = vadd.f32 1.0, %v245_v27 }
 0x232   :  { %v249_v33 = vpop.eup %248  ;;  %v207_v34 = vmul.f32 %v203_v29, %v175_v28  ;;  %v204_v36 = vadd.f32 1.0, %v247_v30 }
 0x233   :  { %v205_v37 = vmul.f32 %v201_v32, %v173_v31  ;;  %v202_v39 = vadd.f32 1.0, %v249_v33 }
 0x234   :  { %212 = vst.msk [vmem:[%s331_s5 + $0x10] sm:$0xff] %vm209_vm1, %v207_v34  ;;  %v208_v40 = vmul.f32 %v204_v36, %v176_v35 }
 0x235   :  { %210 = vst.msk [vmem:[%s331_s5] sm:$0xff] %vm209_vm1, %v205_v37  ;;  %v206_v41 = vmul.f32 %v202_v39, %v174_v38 }
 0x236   :  { %213 = vst.msk [vmem:[%s331_s5 + $0x18] sm:$0xff] %vm209_vm1, %v208_v40 }
 0x237   :  { %211 = vst.msk [vmem:[%s331_s5 + $0x8] sm:$0xff] %vm209_vm1, %v206_v41 }

// kernel: cpvtv2_forward.28
= control target key start
LH: loop header
LB: loop body
LE: loop exit
PB: predicated region body
PF: predicated region fallthrough
CT: control target
= control target key end

     0   :  { %vm47_vm0 = vcmask 261120   ;;  %vm111_vm1 = vcmask 130048   ;;  %s209_s1 = inlined_call_operand.vmem [shape: bf16[32,16], index: 1, kind: input, shape index: {}]   ;;  %s210_s0 = inlined_call_operand.vmem [shape: f32[32,32], index: 0, kind: input, shape index: {}]   ;;  %s211_s2 = inlined_call_operand.vmem [shape: f32[1,16], index: 2, kind: input, shape index: {}]   ;;  %s212_s3 = inlined_call_operand.vmem [shape: f32[32,16], index: 3, kind: input, shape index: {}]   ;;  %s213_s4 = inlined_call_operand.vmem [shape: f32[32,16], index: 4, kind: output, shape index: {}]  }
   0x1   :  { %v137_v0 = vld [vmem:[%s209_s1] sm:$0xff]   ;;  %v138_v1 = vld [vmem:[%s209_s1 + $0x8] sm:$0xff]   ;;  %v20_v5 = vld [vmem:[%s210_s0 + $0x10] sm:$0xff] }
   0x2   :  { %129 = vmatprep.subr.bf16.mxu0 %v137_v0  ;;  %v18_v2 = vld [vmem:[%s210_s0] sm:$0xff]  ;;  %v19_v3 = vld [vmem:[%s210_s0 + $0x8] sm:$0xff]  ;;  %v21_v6 = vld [vmem:[%s210_s0 + $0x18] sm:$0xff] }
   0x3   :  { %130 = vmatpush3.bf16.msra.mxu0 %v137_v0  ;;  %v22_v4 = vpack.c.bf16 %v19_v3, %v18_v2  ;;  %v23_v7 = vpack.c.bf16 %v21_v6, %v20_v5  ;;  %v120_v8 = vld [vmem:[%s211_s2] ss:$0 sm:$0xff]  ;;  %v105_v10 = vld [vmem:[%s212_s3 + $0x10] sm:$0xff]  ;;  %v106_v16 = vld [vmem:[%s212_s3 + $0x18] sm:$0xff] }
   0x4   :  { %131 = vmatprep.subr.bf16.mxu0 %v138_v1  ;;  %v103_v13 = vld [vmem:[%s212_s3] sm:$0xff]  ;;  %v104_v20 = vld [vmem:[%s212_s3 + $0x8] sm:$0xff] }
   0x5   :  { %133 = vmatprep.mubr.msk.bf16.mxu0 %vm47_vm0, %v22_v4 }
   0x7   :  { %132 = vmatpush3.bf16.msra.mxu0 %v138_v1 }
   0xa   :  { %134 = vmatmul.mubr.msk.bf16.vlgmr.msra.gmra.mrb[0].mxu0 %vm47_vm0, %v23_v7 }
  0xdd   :  { %v135_v9 = vpop.f32.mrb[0].mxu0 }
  0xde   :  { %v97_v11 = vadd.f32 %v135_v9, %v120_v8  ;;  %v88_v12 = vpop.f32.mrb[1].mxu0 }
  0xdf   :  { %v89_v14 = vadd.f32 %v120_v8, %v88_v12  ;;  %v136_v15 = vpop.f32.mrb[2].mxu0 }
  0xe0   :  { %v109_v17 = vadd.f32 %v105_v10, %v97_v11  ;;  %v100_v18 = vadd.f32 %v136_v15, %v120_v8  ;;  %v91_v19 = vpop.f32.mrb[3].mxu0 }
  0xe1   :  { %v107_v21 = vadd.f32 %v103_v13, %v89_v14  ;;  %v92_v22 = vadd.f32 %v120_v8, %v91_v19 }
  0xe2   :  { %114 = vst.msk [vmem:[%s213_s4 + $0x10] sm:$0xff] %vm111_vm1, %v109_v17  ;;  %v110_v23 = vadd.f32 %v106_v16, %v100_v18 }
  0xe3   :  { %112 = vst.msk [vmem:[%s213_s4] sm:$0xff] %vm111_vm1, %v107_v21  ;;  %v108_v24 = vadd.f32 %v104_v20, %v92_v22 }
  0xe4   :  { %115 = vst.msk [vmem:[%s213_s4 + $0x18] sm:$0xff] %vm111_vm1, %v110_v23 }
  0xe5   :  { %113 = vst.msk [vmem:[%s213_s4 + $0x8] sm:$0xff] %vm111_vm1, %v108_v24 }

// kernel: cpvtv2_forward.30
= control target key start
LH: loop header
LB: loop body
LE: loop exit
PB: predicated region body
PF: predicated region fallthrough
CT: control target
= control target key end

     0   :  { %v175_v0 = vmov 0.0   ;;  %vm176_vm0 = vmmov 0   ;;  %vm62_vm1 = vcmask 523264   ;;  %vm108_vm2 = vcmask 261120   ;;  %s237_s1 = inlined_call_operand.vmem [shape: bf16[64,32], index: 1, kind: input, shape index: {}]   ;;  %s238_s0 = inlined_call_operand.vmem [shape: f32[8,64], index: 0, kind: input, shape index: {}]   ;;  %s239_s2 = inlined_call_operand.vmem [shape: f32[1,32], index: 2, kind: input, shape index: {}]   ;;  %s240_s3 = inlined_call_operand.vmem [shape: f32[1,32], index: 3, kind: input, shape index: {}]   ;;  %s241_s4 = inlined_call_operand.vmem [shape: f32[1,32], index: 4, kind: input, shape index: {}]   ;;  %s242_s5 = inlined_call_operand.vmem [shape: f32[8,32], index: 5, kind: output, shape index: {}]  }
   0x1   :  { %155 = vmatprep.subr.bf16.mxu0 %v175_v0  ;;  %v169_v1 = vld [vmem:[%s237_s1] sm:$0xff]   ;;  %163 = vmatprep.mubr.msk.bf16.mxu0 %vm176_vm0, %v175_v0  ;;  %v170_v2 = vld [vmem:[%s237_s1 + $0x8] sm:$0xff]   ;;  %v171_v3 = vld [vmem:[%s237_s1 + $0x10] sm:$0xff]  }
   0x2   :  { %156 = vmatpush3.bf16.msra.mxu0 %v169_v1  ;;  %v172_v4 = vld [vmem:[%s237_s1 + $0x18] sm:$0xff]   ;;  %v21_v5 = vld [vmem:[%s238_s0] sm:$0xff] }
   0x3   :  { %157 = vmatprep.subr.bf16.mxu0 %v175_v0  ;;  %v22_v6 = vpack.c.bf16 %v21_v5, %v21_v5  ;;  %v142_v7 = vld [vmem:[%s239_s2] ss:$0 sm:$0xff] }
   0x4   :  { %v148_v23 = vld [vmem:[%s240_s3] ss:$0 sm:$0xff] }
   0x5   :  { %v149_v25 = vld [vmem:[%s241_s4] ss:$0 sm:$0xff] }
   0x6   :  { %158 = vmatpush3.bf16.msra.mxu0 %v170_v2 }
   0x7   :  { %159 = vmatprep.subr.bf16.mxu0 %v175_v0 }
   0xa   :  { %160 = vmatpush3.bf16.msra.mxu0 %v171_v3 }
   0xb   :  { %161 = vmatprep.subr.bf16.mxu0 %v175_v0 }
   0xe   :  { %162 = vmatpush3.bf16.msra.mxu0 %v172_v4 }
  0x11   :  { %164 = vmatmul.mubr.msk.bf16.vlgmr.msra.gmra.mrb[0].mxu0 %vm62_vm1, %v22_v6 }
  0xe4   :  { %v100_v8 = vpop.f32.mrb[0].mxu0 }
  0xe5   :  { %v101_v9 = vadd.f32 %v142_v7, %v100_v8  ;;  %v165_v10 = vpop.f32.mrb[1].mxu0 }
  0xe6   :  { %v103_v11 = vpop.f32.mrb[2].mxu0 }
  0xe7   :  { %v166_v12 = vpop.f32.mrb[3].mxu0  ;;  %v109_v13 = vsel %vm108_vm2, %v101_v9, 0.0 }
  0xe8   :  { %110 = vadd.xlane.f32.xlu0 %v109_v13 }
 0x175   :  { %v111_v14 = vpop.xlane.xlu0 %110 }
 0x176   :  { %v113_v15 = vmul.f32 0.03125, %v111_v14 }
 0x178   :  { %v114_v16 = vsub.f32 %v101_v9, %v113_v15 }
 0x17a   :  { %v115_v17 = vmul.f32 %v114_v16, %v114_v16 }
 0x17c   :  { %v116_v18 = vsel %vm108_vm2, %v115_v17, 0.0 }
 0x17d   :  { %117 = vadd.xlane.f32.xlu0 %v116_v18 }
 0x20a   :  { %v118_v19 = vpop.xlane.xlu0 %117 }
 0x20b   :  { %v119_v20 = vmul.f32 0.03125, %v118_v19 }
 0x20d   :  { %v120_v21 = vadd.f32 1e-05, %v119_v20 }
 0x20f   :  { %173 = vrsqrt.f32 %v120_v21 }
 0x219   :  { %v174_v22 = vpop.eup %173 }
 0x21a   :  { %v122_v24 = vmul.f32 %v174_v22, %v114_v16 }
 0x21c   :  { %v129_v26 = vmul.f32 %v148_v23, %v122_v24 }
 0x21e   :  { %v136_v27 = vadd.f32 %v149_v25, %v129_v26 }
 0x220   :  { %137 = vst.msk [vmem:[%s242_s5] sm:$0xff] %vm108_vm2, %v136_v27 }

// kernel: cpvtv2_forward.31
= control target key start
LH: loop header
LB: loop body
LE: loop exit
PB: predicated region body
PF: predicated region fallthrough
CT: control target
= control target key end

     0   :  { %vm21_vm0 = vcmask 261120   ;;  %v138_v8 = vmov 0.0   ;;  %vm139_vm1 = vmmov 0   ;;  %vm110_vm2 = vcmask 785408   ;;  %s186_s0 = inlined_call_operand.vmem [shape: f32[8,32], index: 0, kind: input, shape index: {}]   ;;  %s187_s3 = inlined_call_operand.vmem [shape: bf16[32,96], index: 3, kind: input, shape index: {}]   ;;  %s188_s1 = inlined_call_operand.vmem [shape: f32[1,32], index: 1, kind: input, shape index: {}]   ;;  %s189_s2 = inlined_call_operand.vmem [shape: f32[1,32], index: 2, kind: input, shape index: {}]   ;;  %s190_s4 = inlined_call_operand.vmem [shape: f32[8,96], index: 4, kind: output, shape index: {}]  }
   0x1   :  { %v18_v0 = vld [vmem:[%s186_s0] sm:$0xff]  ;;  %124 = vmatprep.subr.bf16.mxu0 %v138_v8  ;;  %v135_v9 = vld [vmem:[%s187_s3 + $0x8] sm:$0xff]   ;;  %128 = vmatprep.mubr.msk.bf16.mxu0 %vm139_vm1, %v138_v8 }
   0x2   :  { %v22_v1 = vsel %vm21_vm0, %v18_v0, 0.0  ;;  %v134_v7 = vld [vmem:[%s187_s3] sm:$0xff]  }
   0x3   :  { %23 = vadd.xlane.f32.xlu0 %v22_v1  ;;  %125 = vmatpush3.bf16.msra.mxu0 %v134_v7  ;;  %v116_v14 = vld [vmem:[%s188_s1] ss:$0 sm:$0xff] }
   0x4   :  { %126 = vmatprep.subr.bf16.mxu0 %v138_v8  ;;  %v117_v16 = vld [vmem:[%s189_s2] ss:$0 sm:$0xff] }
   0x7   :  { %127 = vmatpush3.bf16.msra.mxu0 %v135_v9 }
  0x90   :  { %v24_v2 = vpop.xlane.xlu0 %23 }
  0x91   :  { %v26_v3 = vmul.f32 0.03125, %v24_v2 }
  0x93   :  { %v27_v4 = vsub.f32 %v18_v0, %v26_v3 }
  0x95   :  { %v28_v5 = vmul.f32 %v27_v4, %v27_v4 }
  0x97   :  { %v29_v6 = vsel %vm21_vm0, %v28_v5, 0.0 }
  0x98   :  { %30 = vadd.xlane.f32.xlu0 %v29_v6 }
 0x125   :  { %v31_v10 = vpop.xlane.xlu0 %30 }
 0x126   :  { %v32_v11 = vmul.f32 0.03125, %v31_v10 }
 0x128   :  { %v33_v12 = vadd.f32 1e-05, %v32_v11 }
 0x12a   :  { %136 = vrsqrt.f32 %v33_v12 }
 0x134   :  { %v137_v13 = vpop.eup %136 }
 0x135   :  { %v35_v15 = vmul.f32 %v137_v13, %v27_v4 }
 0x137   :  { %v42_v17 = vmul.f32 %v116_v14, %v35_v15 }
 0x139   :  { %v49_v18 = vadd.f32 %v117_v16, %v42_v17 }
 0x13b   :  { %v50_v19 = vpack.c.bf16 %v49_v18, %v49_v18 }
 0x13d   :  { %129 = vmatmul.mubr.msk.bf16.vlgmr.msra.gmra.mrb[0].mxu0 %vm21_vm0, %v50_v19 }
 0x210   :  { %v104_v20 = vpop.f32.mrb[0].mxu0 }
 0x211   :  { %111 = vst.msk [vmem:[%s190_s4] sm:$0xff] %vm110_vm2, %v104_v20  ;;  %v130_v21 = vpop.f32.mrb[1].mxu0 }
 0x212   :  { %v107_v22 = vpop.f32.mrb[2].mxu0 }
 0x213   :  { %v131_v23 = vpop.f32.mrb[3].mxu0 }

// kernel: cpvtv2_forward.29
= control target key start
LH: loop header
LB: loop body
LE: loop exit
PB: predicated region body
PF: predicated region fallthrough
CT: control target
= control target key end

     0   :  { %s660_s15 = smov 0   ;;  %s662_s16 = smov 0   ;;  %s740_s0 = inlined_call_operand.vmem [shape: f32[2,6,6,16], index: 0, kind: input, shape index: {}]   ;;  %s741_s1 = inlined_call_operand.vmem [shape: f32[3,3,16], index: 1, kind: input, shape index: {}]   ;;  %s742_s2 = inlined_call_operand.vmem [shape: f32[1,16], index: 2, kind: input, shape index: {}]   ;;  %s743_s3 = inlined_call_operand.vmem [shape: f32[2,4,4,16], index: 3, kind: input, shape index: {}]   ;;  %s744_s4 = inlined_call_operand.vmem [shape: f32[2,4,4,16], index: 4, kind: output, shape index: {}]  }
   0x1   :  { %s664_s17 = smov 0  }
   0x2 LB: > { %s26_s18 = sadd.s32 1, %s629_s16  ;;  %p575_p0 = scmp.ge.s32.totalorder %s633_s17, 1  ;;  %s633_s17 = sphi %s664_s17, %s14_s17   ;;  %s629_s16 = sphi %s662_s16, %s746_s16   ;;  %s625_s15 = sphi %s660_s15, %s745_s15  }
   0x3   : > { %p28_p1 = scmp.ge.s32.totalorder %s26_s18, 2  ;;  %p213_p2 = scmp.lt.s32.totalorder %s633_s17, 3 }
   0x5   : > { %s748_s18 = smov (%p28_p1, %s26_s18), 0  ;;  %p214_p3 = pnand %p575_p0, %p213_p2 }
   0x6   : > { %p260_p4 = scmp.lt.s32.totalorder (!%p214_p3), %s625_s15, 1  ;;  %v327_v0 = vlaneseq (!%p214_p3)  ;;  %v291_v2 = vld [vmem:[%s741_s1] sm:$0x7] (!%p214_p3)  ;;  %v292_v7 = vld [vmem:[%s741_s1 + $0x4] sm:$0x7] (!%p214_p3)  ;;  %vm435_vm0 = vcmask (!%p214_p3), 125952  }
   0x7   : > { %217 = sbr.rel (%p214_p3) target bundleno = 44 (0x2c), region = 36  ;;  %v581_v3 = vld [vmem:[%s742_s2] ss:$0 sm:$0xff] (!%p214_p3)  ;;  %v293_v38 = vld [vmem:[%s741_s1 + $0x8] sm:$0x7] (!%p214_p3) }
   0x8   : > { %v328_v1 = vshrl.u32 (!%p214_p3), %v327_v0, 7 }
   0xa   : > { %v329_v4 = vsub.s32 (!%p214_p3), 0, %v328_v1  ;;  %v341_v5 = vsub.s32 (!%p214_p3), 1, %v328_v1  ;;  %v353_v6 = vsub.s32 (!%p214_p3), 2, %v328_v1 }
   0xc   : > { %v330_v11 = vrot.slane (!%p214_p3), %v291_v2, %v329_v4  ;;  %v342_v12 = vrot.slane (!%p214_p3), %v291_v2, %v341_v5  ;;  %v354_v13 = vrot.slane (!%p214_p3), %v291_v2, %v353_v6  ;;  %v366_v24 = vrot.slane (!%p214_p3), %v292_v7, %v329_v4 }
   0xd   : > { %v378_v31 = vrot.slane (!%p214_p3), %v292_v7, %v341_v5  ;;  %v390_v45 = vrot.slane (!%p214_p3), %v292_v7, %v353_v6  ;;  %v402_v54 = vrot.slane (!%p214_p3), %v293_v38, %v329_v4  ;;  %v414_v59 = vrot.slane (!%p214_p3), %v293_v38, %v341_v5 }
   0xe   : > { %s750_s15 = smov (!%p260_p4, %s625_s15), 1  ;;  %v426_v1 = vrot.slane %v293_v38, %v353_v6 }
   0xf   : > { %s586_s23 = smul.u32 48, %s750_s15  ;;  %s584_s24 = sshll.u32 %s750_s15, 4 }
  0x10   : > { %s282_s27 = scalar_lea.vmem %s743_s3, %s584_s24  ;;  %s290_s11 = scalar_lea.vmem %s744_s4, %s584_s24 }
  0x11   : > { %s699_s6 = scalar_lea.vmem %s740_s0, %s586_s23  ;;  %v294_v8 = vld [vmem:[%s282_s27] sm:$0xf]  ;;  %v295_v9 = vld [vmem:[%s282_s27 + $0x4] sm:$0xf]  ;;  %v296_v10 = vld [vmem:[%s282_s27 + $0x8] sm:$0xf] }
  0x12   : > { %v305_v14 = vadd.f32 %v581_v3, %v294_v8  ;;  %v306_v15 = vadd.f32 %v581_v3, %v295_v9  ;;  %v307_v16 = vadd.f32 %v581_v3, %v296_v10  ;;  %v309_v17 = vld [vmem:[%s699_s6] sm:$0xf]  ;;  %v310_v18 = vld [vmem:[%s699_s6 + $0x8] sm:$0xf]  ;;  %v311_v19 = vld [vmem:[%s699_s6 + $0x10] sm:$0xf] }
  0x13   : > { %v315_v20 = vld [vmem:[%s699_s6 + $0x1] sm:$0xf]  ;;  %v316_v21 = vld [vmem:[%s699_s6 + $0x9] sm:$0xf]  ;;  %v331_v22 = vmul.f32 %v330_v11, %v309_v17  ;;  %v332_v23 = vmul.f32 %v330_v11, %v310_v18  ;;  %v317_v26 = vld [vmem:[%s699_s6 + $0x11] sm:$0xf]  ;;  %v333_v28 = vmul.f32 %v330_v11, %v311_v19  ;;  %v367_v44 = vmul.f32 %v366_v24, %v310_v18 }
  0x14   : > { %v297_v25 = vld [vmem:[%s282_s27 + $0xc] sm:$0xf]  ;;  %v321_v27 = vld [vmem:[%s699_s6 + $0x2] sm:$0xf]  ;;  %v343_v29 = vmul.f32 %v342_v12, %v315_v20  ;;  %v344_v30 = vmul.f32 %v342_v12, %v316_v21  ;;  %v323_v33 = vld [vmem:[%s699_s6 + $0x12] sm:$0xf]  ;;  %v345_v36 = vmul.f32 %v342_v12, %v317_v26  ;;  %v368_v49 = vmul.f32 %v366_v24, %v311_v19 }
  0x15   : > { %v322_v32 = vld [vmem:[%s699_s6 + $0xa] sm:$0xf]  ;;  %v335_v34 = vadd.f32 %v331_v22, %v305_v14  ;;  %v336_v35 = vadd.f32 %v332_v23, %v306_v15  ;;  %v355_v37 = vmul.f32 %v354_v13, %v321_v27  ;;  %v337_v39 = vadd.f32 %v333_v28, %v307_v16  ;;  %v312_v41 = vld [vmem:[%s699_s6 + $0x18] sm:$0xf]  ;;  %v313_v0 = vld [vmem:[%s699_s6 + $0x20] sm:$0xf] }
  0x16   : > { %v357_v40 = vmul.f32 %v354_v13, %v323_v33  ;;  %v308_v42 = vadd.f32 %v581_v3, %v297_v25  ;;  %v356_v48 = vmul.f32 %v354_v13, %v322_v32  ;;  %v318_v50 = vld [vmem:[%s699_s6 + $0x19] sm:$0xf]  ;;  %v379_v53 = vmul.f32 %v378_v31, %v316_v21  ;;  %v319_v8 = vld [vmem:[%s699_s6 + $0x21] sm:$0xf]  ;;  %v314_v25 = vld [vmem:[%s699_s6 + $0x28] sm:$0xf] }
  0x17   : > { %v347_v43 = vadd.f32 %v343_v29, %v335_v34  ;;  %v348_v46 = vadd.f32 %v344_v30, %v336_v35  ;;  %v349_v47 = vadd.f32 %v345_v36, %v337_v39  ;;  %v324_v51 = vld [vmem:[%s699_s6 + $0x1a] sm:$0xf]  ;;  %v334_v55 = vmul.f32 %v330_v11, %v312_v41  ;;  %v325_v16 = vld [vmem:[%s699_s6 + $0x22] sm:$0xf]  ;;  %v320_v35 = vld [vmem:[%s699_s6 + $0x29] sm:$0xf] }
  0x18   : > { %v380_v57 = vmul.f32 %v378_v31, %v317_v26  ;;  %v391_v58 = vmul.f32 %v390_v45, %v322_v32  ;;  %v346_v62 = vmul.f32 %v342_v12, %v318_v50  ;;  %v358_v63 = vmul.f32 %v354_v13, %v324_v51 }
  0x19   : > { %v359_v52 = vadd.f32 %v355_v37, %v347_v43  ;;  %v361_v56 = vadd.f32 %v357_v40, %v349_v47  ;;  %v338_v61 = vadd.f32 %v334_v55, %v308_v42  ;;  %v360_v2 = vadd.f32 %v356_v48, %v348_v46  ;;  %v326_v40 = vld [vmem:[%s699_s6 + $0x2a] sm:$0xf] }
  0x1a   : > { %v369_v3 = vmul.f32 %v366_v24, %v312_v41  ;;  %v381_v7 = vmul.f32 %v378_v31, %v318_v50  ;;  %v392_v10 = vmul.f32 %v390_v45, %v323_v33  ;;  %v403_v4 = vmul.f32 %v402_v54, %v311_v19 }
  0x1b   : > { %v371_v60 = vadd.f32 %v367_v44, %v359_v52  ;;  %v350_v11 = vadd.f32 %v346_v62, %v338_v61  ;;  %v372_v14 = vadd.f32 %v368_v49, %v360_v2  ;;  %v393_v15 = vmul.f32 %v390_v45, %v324_v51 }
  0x1c   : > { %v370_v5 = vmul.f32 %v366_v24, %v313_v0  ;;  %v373_v17 = vadd.f32 %v369_v3, %v361_v56  ;;  %v415_v20 = vmul.f32 %v414_v59, %v317_v26  ;;  %v382_v13 = vmul.f32 %v378_v31, %v319_v8 }
  0x1d   : > { %v383_v9 = vadd.f32 %v379_v53, %v371_v60  ;;  %v362_v12 = vadd.f32 %v358_v63, %v350_v11  ;;  %v384_v6 = vadd.f32 %v380_v57, %v372_v14  ;;  %v404_v21 = vmul.f32 %v402_v54, %v312_v41 }
  0x1e   : > { %v385_v22 = vadd.f32 %v381_v7, %v373_v17  ;;  %v405_v23 = vmul.f32 %v402_v54, %v313_v0  ;;  %v427_v28 = vmul.f32 %v426_v1, %v323_v33  ;;  %v394_v19 = vmul.f32 %v390_v45, %v325_v16 }
  0x1f   : > { %v395_v18 = vadd.f32 %v391_v58, %v383_v9  ;;  %v374_v29 = vadd.f32 %v370_v5, %v362_v12  ;;  %v396_v30 = vadd.f32 %v392_v10, %v384_v6  ;;  %v416_v32 = vmul.f32 %v414_v59, %v318_v50 }
  0x20   : > { %v397_v24 = vadd.f32 %v393_v15, %v385_v22  ;;  %v417_v34 = vmul.f32 %v414_v59, %v319_v8  ;;  %v406_v31 = vmul.f32 %v402_v54, %v314_v25  ;;  %v428_v38 = vmul.f32 %v426_v1, %v324_v51 }
  0x21   : > { %v407_v27 = vadd.f32 %v403_v4, %v395_v18  ;;  %v386_v36 = vadd.f32 %v382_v13, %v374_v29  ;;  %v408_v37 = vadd.f32 %v404_v21, %v396_v30  ;;  %v429_v39 = vmul.f32 %v426_v1, %v325_v16 }
  0x22   : > { %v409_v33 = vadd.f32 %v405_v23, %v397_v24  ;;  %v418_v43 = vmul.f32 %v414_v59, %v320_v35  ;;  %v430_v47 = vmul.f32 %v426_v1, %v326_v40 }
  0x23   : > { %v419_v26 = vadd.f32 %v415_v20, %v407_v27  ;;  %v398_v42 = vadd.f32 %v394_v19, %v386_v36  ;;  %v420_v44 = vadd.f32 %v416_v32, %v408_v37 }
  0x24   : > { %v421_v45 = vadd.f32 %v417_v34, %v409_v33 }
  0x25   : > { %v431_v41 = vadd.f32 %v427_v28, %v419_v26  ;;  %v410_v46 = vadd.f32 %v406_v31, %v398_v42  ;;  %v432_v48 = vadd.f32 %v428_v38, %v420_v44 }
  0x26   : > { %v433_v49 = vadd.f32 %v429_v39, %v421_v45 }
  0x27   : > { %436 = vst.msk [vmem:[%s290_s11] sm:$0xf] %vm435_vm0, %v431_v41  ;;  %v422_v50 = vadd.f32 %v418_v43, %v410_v46  ;;  %437 = vst.msk [vmem:[%s290_s11 + $0x4] sm:$0xf] %vm435_vm0, %v432_v48 }
  0x28   : > { %438 = vst.msk [vmem:[%s290_s11 + $0x8] sm:$0xf] %vm435_vm0, %v433_v49 }
  0x29   : > { %v434_v51 = vadd.f32 %v430_v47, %v422_v50 }
  0x2b   : > { %439 = vst.msk [vmem:[%s290_s11 + $0xc] sm:$0xf] %vm435_vm0, %v434_v51 }
  0x2c PF: > { %s14_s17 = sadd.s32 1, %s633_s17   ;;  %s745_s15 = smov %s629_s16 }
  0x2d   : > { %p11_p5 = scmp.ge.s32.totalorder %s14_s17, 4   ;;  %s746_s16 = smov %s748_s18 }
  0x2f   :  { %13 = sbr.rel (!%p11_p5) target bundleno = 2 (0x2), region = 75 }

// kernel: cpvtv2_forward.32
= control target key start
LH: loop header
LB: loop body
LE: loop exit
PB: predicated region body
PF: predicated region fallthrough
CT: control target
= control target key end

     0   :  { %s644_s9 = smov 0   ;;  %s646_s10 = smov 0   ;;  %s708_s0 = inlined_call_operand.vmem [shape: f32[2,4,96], index: 0, kind: input, shape index: {}, may-alias: {0,1}]   ;;  %s709_s1 = inlined_call_operand.vmem [shape: f32[2,4,96], index: 1, kind: input, shape index: {}, may-alias: {0,1}]   ;;  %s710_s2 = inlined_call_operand.vmem [shape: f32[2,4,32], index: 2, kind: output, shape index: {}]  }
   0x1   :  { %s648_s11 = smov 0  }
   0x2 LB: > { %s24_s12 = sadd.s32 1, %s615_s10  ;;  %p515_p0 = scmp.ge.s32.totalorder %s619_s11, 1  ;;  %s619_s11 = sphi %s648_s11, %s12_s11   ;;  %s615_s10 = sphi %s646_s10, %s712_s10   ;;  %s611_s9 = sphi %s644_s9, %s711_s9  }
   0x3   : > { %p26_p1 = scmp.ge.s32.totalorder %s24_s12, 2  ;;  %p139_p2 = scmp.lt.s32.totalorder %s619_s11, 3 }
   0x5   : > { %s714_s12 = smov (%p26_p1, %s24_s12), 0  ;;  %p140_p3 = pnand %p515_p0, %p139_p2 }
   0x6   : > { %p169_p4 = scmp.lt.s32.totalorder (!%p140_p3), %s611_s9, 1  ;;  %v621_v0 = vmov (!%p140_p3), 0.0   ;;  %vm622_vm0 = vmmov (!%p140_p3), 0   ;;  %s623_s17 = smov (!%p140_p3), 96   ;;  %vm195_vm1 = vcmask (!%p140_p3), 130048   ;;  %vm243_vm2 = vcmask (!%p140_p3), 27648  }
   0x7   : > { %143 = sbr.rel (%p140_p3) target bundleno = 1540 (0x604), region = 28  ;;  %533 = vmatprep.subr.bf16.mxu0 (!%p140_p3), %v621_v0  ;;  %535 = vmatprep.mubr.msk.bf16.mxu0 (!%p140_p3), %vm622_vm0, %v621_v0  ;;  %s624_s21 = smov (!%p140_p3), 64   ;;  %vm262_vm3 = vcmask (!%p140_p3), 1041408   ;;  %vm258_vm4 = vcmask (!%p140_p3), 31744   ;;  %vm423_vm5 = vcmask (!%p140_p3), 257024  }
   0x8   : > { %539 = vmatprep.subr.bf16.mxu1 (!%p140_p3), %v621_v0  ;;  %541 = vmatprep.mubr.msk.bf16.mxu1 (!%p140_p3), %vm622_vm0, %v621_v0  ;;  %s625_s22 = smov (!%p140_p3), 80   ;;  %s626_s23 = smov (!%p140_p3), 112  }
   0x9   : > { %s627_s24 = smov (!%p140_p3), 48   ;;  %s628_s25 = smov (!%p140_p3), 16  }
   0xe   : > { %s716_s9 = smov (!%p169_p4, %s611_s9), 1 }
   0xf   : > { %s664_s13 = sshll.u32 %s716_s9, 2 }
  0x10   : > { %s179_s16 = scalar_lea.vmem %s709_s1, %s664_s13  ;;  %s175_s20 = scalar_lea.vmem %s708_s0, %s664_s13 }
  0x11   : > { %v189_v1 = vld [vmem:[%s179_s16] sm:$0xf]  ;;  %s186_s28 = scalar_lea.vmem %s710_s2, %s664_s13 }
  0x12   : > { %v670_v2 = vpack.c.bf16 %v189_v1, %v189_v1  ;;  %v188_v5 = vld [vmem:[%s175_s20] sm:$0xf] }
  0x13   : > { %v190_v6 = vpack.c.bf16 %v188_v5, %v188_v5 }
  0x14   : > { %193 = vrot.lane.b32.xlu0 %v670_v2, %s623_s17  ;;  %256 = vrot.lane.b32.xlu1 %v670_v2, %s624_s21 }
  0x86   : > { %v194_v3 = vpop.permute.xlu0 %193  ;;  %v257_v13 = vpop.permute.xlu1 %256 }
  0x87   : > { %v200_v4 = vsel %vm195_vm1, %v194_v3, 0  ;;  %v264_v14 = vsel %vm262_vm3, %v257_v13, 0 }
  0x88   : > { %534 = vmatpush3.bf16.xpose.msra.mxu0 %v200_v4  ;;  %540 = vmatpush3.bf16.msra.mxu1 %v264_v14 }
  0x89   : > { %551 = vmatprep.subr.bf16.mxu0 %v621_v0  ;;  %545 = vmatprep.subr.bf16.mxu1 %v621_v0 }
  0x8f   : > { %536 = vmatmul.mubr.msk.bf16.vlgmr.msra.gmra.mrb[0].mxu0 %vm195_vm1, %v190_v6 }
  0x90   : > { %553 = vmatprep.mubr.msk.bf16.mxu0 %vm622_vm0, %v621_v0 }
 0x162   : > { %v236_v7 = vpop.f32.mrb[0].mxu0 }
 0x163   : > { %v242_v8 = vmul.f32 0.25, %v236_v7  ;;  %v537_v9 = vpop.f32.mrb[1].mxu0 }
 0x164   : > { %v239_v10 = vpop.f32.mrb[2].mxu0 }
 0x165   : > { %v538_v11 = vpop.f32.mrb[3].mxu0  ;;  %v244_v12 = vsel %vm243_vm2, %v242_v8, -inf }
 0x166   : > { %245 = vmax.xlane.f32.xlu0 %v244_v12 }
 0x1f3   : > { %v246_v15 = vpop.xlane.xlu0 %245 }
 0x1f4   : > { %v247_v16 = vsub.f32 %v242_v8, %v246_v15 }
 0x1f6   : > { %v248_v17 = vmul.f32 1.442695, %v247_v16 }
 0x1f8   : > { %589 = vpow2.f32 %v248_v17 }
 0x202   : > { %v590_v18 = vpop.eup %589 }
 0x203   : > { %v250_v19 = vsel %vm243_vm2, %v590_v18, 0.0 }
 0x204   : > { %251 = vadd.xlane.f32.xlu1 %v250_v19 }
 0x215   : > { %309 = vrot.lane.b32.xlu1 %v670_v2, %s625_s22 }
 0x219   : > { %307 = vrot.lane.b32.xlu1 %v190_v6, %s626_s23 }
 0x291   : > { %v252_v20 = vpop.xlane.xlu1 %251 }
 0x292   : > { %591 = vrcp.f32 %v252_v20 }
 0x295   : > { %v310_v22 = vpop.permute.xlu1 %309 }
 0x296   : > { %v315_v24 = vsel %vm195_vm1, %v310_v22, 0 }
 0x299   : > { %v308_v26 = vpop.permute.xlu1 %307 }
 0x29c   : > { %v592_v21 = vpop.eup %591 }
 0x29d   : > { %v254_v23 = vmul.f32 %v592_v21, %v590_v18 }
 0x29f   : > { %v255_v25 = vpack.c.bf16 %v254_v23, %v254_v23 }
 0x2a1   : > { %542 = vmatmul.mubr.msk.bf16.vlgmr.msra.gmra.mrb[0].mxu1 %vm258_vm4, %v255_v25 }
 0x2a2   : > { %546 = vmatpush3.bf16.xpose.msra.mxu1 %v315_v24  ;;  %547 = vmatprep.mubr.msk.bf16.mxu1 %vm622_vm0, %v621_v0 }
 0x2a9   : > { %548 = vmatmul.mubr.msk.bf16.vlgmr.msra.gmra.mrb[4].mxu1 %vm195_vm1, %v308_v26 }
 0x374   : > { %v300_v27 = vpop.f32.mrb[0].mxu1 }
 0x375   : > { %v543_v28 = vpop.f32.mrb[1].mxu1 }
 0x376   : > { %v303_v29 = vpop.f32.mrb[2].mxu1 }
 0x377   : > { %v544_v30 = vpop.f32.mrb[3].mxu1 }
 0x37c   : > { %v351_v31 = vpop.f32.mrb[4].mxu1 }
 0x37d   : > { %v357_v32 = vmul.f32 0.25, %v351_v31  ;;  %v549_v33 = vpop.f32.mrb[5].mxu1 }
 0x37e   : > { %v354_v34 = vpop.f32.mrb[6].mxu1 }
 0x37f   : > { %v550_v35 = vpop.f32.mrb[7].mxu1  ;;  %v358_v36 = vsel %vm243_vm2, %v357_v32, -inf }
 0x380   : > { %359 = vmax.xlane.f32.xlu1 %v358_v36 }
 0x40d   : > { %v360_v37 = vpop.xlane.xlu1 %359 }
 0x40e   : > { %v361_v38 = vsub.f32 %v357_v32, %v360_v37 }
 0x410   : > { %v362_v39 = vmul.f32 1.442695, %v361_v38 }
 0x412   : > { %593 = vpow2.f32 %v362_v39 }
 0x41c   : > { %v594_v40 = vpop.eup %593 }
 0x41d   : > { %v364_v41 = vsel %vm243_vm2, %v594_v40, 0.0 }
 0x41e   : > { %365 = vadd.xlane.f32.xlu0 %v364_v41 }
 0x434   : > { %370 = vrot.lane.b32.xlu0 %v670_v2, %s627_s24 }
 0x4ab   : > { %v366_v42 = vpop.xlane.xlu0 %365 }
 0x4ac   : > { %595 = vrcp.f32 %v366_v42 }
 0x4af   : > { %v371_v43 = vpop.permute.xlu0 %370 }
 0x4b0   : > { %v376_v44 = vsel %vm262_vm3, %v371_v43, 0 }
 0x4b1   : > { %552 = vmatpush3.bf16.msra.mxu0 %v376_v44 }
 0x4b6   : > { %v596_v45 = vpop.eup %595 }
 0x4b7   : > { %v368_v46 = vmul.f32 %v596_v45, %v594_v40 }
 0x4b9   : > { %v369_v47 = vpack.c.bf16 %v368_v46, %v368_v46 }
 0x4bb   : > { %554 = vmatmul.mubr.msk.bf16.vlgmr.msra.gmra.mrb[4].mxu0 %vm258_vm4, %v369_v47 }
 0x58e   : > { %v412_v48 = vpop.f32.mrb[4].mxu0 }
 0x58f   : > { %419 = vrot.lane.b32.xlu0 %v412_v48, %s628_s25  ;;  %v555_v49 = vpop.f32.mrb[5].mxu0 }
 0x590   : > { %v415_v50 = vpop.f32.mrb[6].mxu0 }
 0x591   : > { %v556_v51 = vpop.f32.mrb[7].mxu0 }
 0x601   : > { %v420_v52 = vpop.permute.xlu0 %419 }
 0x602   : > { %v422_v53 = vsel %vm195_vm1, %v300_v27, %v420_v52 }
 0x603   : > { %424 = vst.msk [vmem:[%s186_s28] sm:$0xf] %vm423_vm5, %v422_v53 }
 0x604 PF: > { %s12_s11 = sadd.s32 1, %s619_s11   ;;  %s711_s9 = smov %s615_s10 }
 0x605   : > { %p9_p5 = scmp.ge.s32.totalorder %s12_s11, 4   ;;  %s712_s10 = smov %s714_s12 }
 0x607   :  { %11 = sbr.rel (!%p9_p5) target bundleno = 2 (0x2), region = 61 }

// kernel: cpvtv2_forward.35
= control target key start
LH: loop header
LB: loop body
LE: loop exit
PB: predicated region body
PF: predicated region fallthrough
CT: control target
= control target key end

     0   :  { %v140_v0 = vmov 0.0   ;;  %vm141_vm0 = vmmov 0   ;;  %vm59_vm1 = vcmask 523264   ;;  %vm105_vm2 = vcmask 261120   ;;  %s191_s1 = inlined_call_operand.vmem [shape: bf16[64,32], index: 1, kind: input, shape index: {}]   ;;  %s192_s0 = inlined_call_operand.vmem [shape: f32[8,64], index: 0, kind: input, shape index: {}]   ;;  %s193_s2 = inlined_call_operand.vmem [shape: f32[1,32], index: 2, kind: input, shape index: {}]   ;;  %s194_s3 = inlined_call_operand.vmem [shape: f32[8,32], index: 3, kind: input, shape index: {}]   ;;  %s195_s4 = inlined_call_operand.vmem [shape: f32[8,32], index: 4, kind: output, shape index: {}]  }
   0x1   :  { %122 = vmatprep.subr.bf16.mxu0 %v140_v0  ;;  %v136_v1 = vld [vmem:[%s191_s1] sm:$0xff]   ;;  %130 = vmatprep.mubr.msk.bf16.mxu0 %vm141_vm0, %v140_v0  ;;  %v137_v2 = vld [vmem:[%s191_s1 + $0x8] sm:$0xff]   ;;  %v138_v3 = vld [vmem:[%s191_s1 + $0x10] sm:$0xff]  }
   0x2   :  { %123 = vmatpush3.bf16.msra.mxu0 %v136_v1  ;;  %v139_v4 = vld [vmem:[%s191_s1 + $0x18] sm:$0xff]   ;;  %v18_v5 = vld [vmem:[%s192_s0] sm:$0xff] }
   0x3   :  { %124 = vmatprep.subr.bf16.mxu0 %v140_v0  ;;  %v19_v6 = vpack.c.bf16 %v18_v5, %v18_v5  ;;  %v111_v7 = vld [vmem:[%s193_s2] ss:$0 sm:$0xff] }
   0x4   :  { %v103_v9 = vld [vmem:[%s194_s3] sm:$0xff] }
   0x6   :  { %125 = vmatpush3.bf16.msra.mxu0 %v137_v2 }
   0x7   :  { %126 = vmatprep.subr.bf16.mxu0 %v140_v0 }
   0xa   :  { %127 = vmatpush3.bf16.msra.mxu0 %v138_v3 }
   0xb   :  { %128 = vmatprep.subr.bf16.mxu0 %v140_v0 }
   0xe   :  { %129 = vmatpush3.bf16.msra.mxu0 %v139_v4 }
  0x11   :  { %131 = vmatmul.mubr.msk.bf16.vlgmr.msra.gmra.mrb[0].mxu0 %vm59_vm1, %v19_v6 }
  0xe4   :  { %v97_v8 = vpop.f32.mrb[0].mxu0 }
  0xe5   :  { %v98_v10 = vadd.f32 %v111_v7, %v97_v8  ;;  %v132_v11 = vpop.f32.mrb[1].mxu0 }
  0xe6   :  { %v100_v12 = vpop.f32.mrb[2].mxu0 }
  0xe7   :  { %v104_v13 = vadd.f32 %v103_v9, %v98_v10  ;;  %v133_v14 = vpop.f32.mrb[3].mxu0 }
  0xe9   :  { %106 = vst.msk [vmem:[%s195_s4] sm:$0xff] %vm105_vm2, %v104_v13 }

// kernel: cpvtv2_forward.34
= control target key start
LH: loop header
LB: loop body
LE: loop exit
PB: predicated region body
PF: predicated region fallthrough
CT: control target
= control target key end

     0   :  { %vm24_vm0 = vcmask 261120   ;;  %v160_v8 = vmov 0.0   ;;  %vm161_vm1 = vmmov 0   ;;  %vm129_vm2 = vcmask 523264   ;;  %s216_s0 = inlined_call_operand.vmem [shape: f32[8,32], index: 0, kind: input, shape index: {}]   ;;  %s217_s3 = inlined_call_operand.vmem [shape: bf16[32,64], index: 3, kind: input, shape index: {}]   ;;  %s218_s1 = inlined_call_operand.vmem [shape: f32[1,32], index: 1, kind: input, shape index: {}]   ;;  %s219_s2 = inlined_call_operand.vmem [shape: f32[1,32], index: 2, kind: input, shape index: {}]   ;;  %s220_s4 = inlined_call_operand.vmem [shape: f32[1,64], index: 4, kind: input, shape index: {}]   ;;  %s221_s5 = inlined_call_operand.vmem [shape: f32[8,64], index: 5, kind: output, shape index: {}]  }
   0x1   :  { %v21_v0 = vld [vmem:[%s216_s0] sm:$0xff]  ;;  %144 = vmatprep.subr.bf16.mxu0 %v160_v8  ;;  %v155_v9 = vld [vmem:[%s217_s3 + $0x8] sm:$0xff]   ;;  %148 = vmatprep.mubr.msk.bf16.mxu0 %vm161_vm1, %v160_v8 }
   0x2   :  { %v25_v1 = vsel %vm24_vm0, %v21_v0, 0.0  ;;  %v154_v7 = vld [vmem:[%s217_s3] sm:$0xff]  }
   0x3   :  { %26 = vadd.xlane.f32.xlu0 %v25_v1  ;;  %145 = vmatpush3.bf16.msra.mxu0 %v154_v7  ;;  %v135_v14 = vld [vmem:[%s218_s1] ss:$0 sm:$0xff] }
   0x4   :  { %146 = vmatprep.subr.bf16.mxu0 %v160_v8  ;;  %v136_v16 = vld [vmem:[%s219_s2] ss:$0 sm:$0xff] }
   0x5   :  { %v137_v20 = vld [vmem:[%s220_s4] ss:$0 sm:$0xff] }
   0x7   :  { %147 = vmatpush3.bf16.msra.mxu0 %v155_v9 }
  0x90   :  { %v27_v2 = vpop.xlane.xlu0 %26 }
  0x91   :  { %v29_v3 = vmul.f32 0.03125, %v27_v2 }
  0x93   :  { %v30_v4 = vsub.f32 %v21_v0, %v29_v3 }
  0x95   :  { %v31_v5 = vmul.f32 %v30_v4, %v30_v4 }
  0x97   :  { %v32_v6 = vsel %vm24_vm0, %v31_v5, 0.0 }
  0x98   :  { %33 = vadd.xlane.f32.xlu0 %v32_v6 }
 0x125   :  { %v34_v10 = vpop.xlane.xlu0 %33 }
 0x126   :  { %v35_v11 = vmul.f32 0.03125, %v34_v10 }
 0x128   :  { %v36_v12 = vadd.f32 1e-05, %v35_v11 }
 0x12a   :  { %156 = vrsqrt.f32 %v36_v12 }
 0x134   :  { %v157_v13 = vpop.eup %156 }
 0x135   :  { %v38_v15 = vmul.f32 %v157_v13, %v30_v4 }
 0x137   :  { %v45_v17 = vmul.f32 %v135_v14, %v38_v15 }
 0x139   :  { %v52_v18 = vadd.f32 %v136_v16, %v45_v17 }
 0x13b   :  { %v53_v19 = vpack.c.bf16 %v52_v18, %v52_v18 }
 0x13d   :  { %149 = vmatmul.mubr.msk.bf16.vlgmr.msra.gmra.mrb[0].mxu0 %vm24_vm0, %v53_v19 }
 0x210   :  { %v114_v21 = vpop.f32.mrb[0].mxu0 }
 0x211   :  { %v115_v22 = vadd.f32 %v137_v20, %v114_v21  ;;  %v150_v23 = vpop.f32.mrb[1].mxu0 }
 0x212   :  { %v117_v24 = vpop.f32.mrb[2].mxu0 }
 0x213   :  { %v121_v25 = vmul.f32 0.044715, %v115_v22  ;;  %v151_v26 = vpop.f32.mrb[3].mxu0  ;;  %v120_v32 = vmul.f32 0.5, %v115_v22 }
 0x215   :  { %v122_v27 = vmul.f32 %v121_v25, %v115_v22 }
 0x217   :  { %v123_v28 = vmul.f32 %v122_v27, %v115_v22 }
 0x219   :  { %v124_v29 = vadd.f32 %v123_v28, %v115_v22 }
 0x21b   :  { %v125_v30 = vmul.f32 0.7978846, %v124_v29 }
 0x21d   :  { %158 = vtanh.f32 %v125_v30 }
 0x227   :  { %v159_v31 = vpop.eup %158 }
 0x228   :  { %v127_v33 = vadd.f32 1.0, %v159_v31 }
 0x22a   :  { %v128_v34 = vmul.f32 %v127_v33, %v120_v32 }
 0x22c   :  { %130 = vst.msk [vmem:[%s221_s5] sm:$0xff] %vm129_vm2, %v128_v34 }

// kernel: cpvtv2_forward.33
= control target key start
LH: loop header
LB: loop body
LE: loop exit
PB: predicated region body
PF: predicated region fallthrough
CT: control target
= control target key end

     0   :  { %v113_v0 = vmov 0.0   ;;  %vm114_vm0 = vmmov 0   ;;  %vm43_vm1 = vcmask 261120   ;;  %s158_s1 = inlined_call_operand.vmem [shape: bf16[32,32], index: 1, kind: input, shape index: {}]   ;;  %s159_s0 = inlined_call_operand.vmem [shape: f32[8,32], index: 0, kind: input, shape index: {}]   ;;  %s160_s2 = inlined_call_operand.vmem [shape: f32[1,32], index: 2, kind: input, shape index: {}]   ;;  %s161_s3 = inlined_call_operand.vmem [shape: f32[8,32], index: 3, kind: input, shape index: {}]   ;;  %s162_s4 = inlined_call_operand.vmem [shape: f32[8,32], index: 4, kind: output, shape index: {}]  }
   0x1   :  { %101 = vmatprep.subr.bf16.mxu0 %v113_v0  ;;  %v111_v1 = vld [vmem:[%s158_s1] sm:$0xff]   ;;  %105 = vmatprep.mubr.msk.bf16.mxu0 %vm114_vm0, %v113_v0  ;;  %v112_v2 = vld [vmem:[%s158_s1 + $0x8] sm:$0xff]  }
   0x2   :  { %102 = vmatpush3.bf16.msra.mxu0 %v111_v1  ;;  %v18_v3 = vld [vmem:[%s159_s0] sm:$0xff] }
   0x3   :  { %103 = vmatprep.subr.bf16.mxu0 %v113_v0  ;;  %v19_v4 = vpack.c.bf16 %v18_v3, %v18_v3  ;;  %v94_v5 = vld [vmem:[%s160_s2] ss:$0 sm:$0xff] }
   0x4   :  { %v87_v7 = vld [vmem:[%s161_s3] sm:$0xff] }
   0x6   :  { %104 = vmatpush3.bf16.msra.mxu0 %v112_v2 }
   0x9   :  { %106 = vmatmul.mubr.msk.bf16.vlgmr.msra.gmra.mrb[0].mxu0 %vm43_vm1, %v19_v4 }
  0xdc   :  { %v81_v6 = vpop.f32.mrb[0].mxu0 }
  0xdd   :  { %v82_v8 = vadd.f32 %v94_v5, %v81_v6  ;;  %v107_v9 = vpop.f32.mrb[1].mxu0 }
  0xde   :  { %v84_v10 = vpop.f32.mrb[2].mxu0 }
  0xdf   :  { %v88_v11 = vadd.f32 %v87_v7, %v82_v8  ;;  %v108_v12 = vpop.f32.mrb[3].mxu0 }
  0xe1   :  { %89 = vst.msk [vmem:[%s162_s4] sm:$0xff] %vm43_vm1, %v88_v11 }

// kernel: cpvtv2_forward.36
= control target key start
LH: loop header
LB: loop body
LE: loop exit
PB: predicated region body
PF: predicated region fallthrough
CT: control target
= control target key end

     0   :  { %s613_s15 = smov 0   ;;  %s615_s16 = smov 0   ;;  %s683_s0 = inlined_call_operand.vmem [shape: f32[2,4,4,32], index: 0, kind: input, shape index: {}]   ;;  %s684_s1 = inlined_call_operand.vmem [shape: f32[3,3,32], index: 1, kind: input, shape index: {}]   ;;  %s685_s2 = inlined_call_operand.vmem [shape: f32[1,32], index: 2, kind: input, shape index: {}]   ;;  %s686_s3 = inlined_call_operand.vmem [shape: f32[2,2,2,32], index: 3, kind: input, shape index: {}]   ;;  %s687_s4 = inlined_call_operand.vmem [shape: f32[2,2,2,32], index: 4, kind: output, shape index: {}]  }
   0x1   :  { %s617_s17 = smov 0  }
   0x2 LB: > { %s26_s18 = sadd.s32 1, %s582_s16  ;;  %p527_p0 = scmp.ge.s32.totalorder %s586_s17, 1  ;;  %s586_s17 = sphi %s617_s17, %s14_s17   ;;  %s582_s16 = sphi %s615_s16, %s689_s16   ;;  %s578_s15 = sphi %s613_s15, %s688_s15  }
   0x3   : > { %p28_p1 = scmp.ge.s32.totalorder %s26_s18, 2  ;;  %p213_p2 = scmp.lt.s32.totalorder %s586_s17, 3 }
   0x5   : > { %s691_s18 = smov (%p28_p1, %s26_s18), 0  ;;  %p214_p3 = pnand %p527_p0, %p213_p2 }
   0x6   : > { %p260_p4 = scmp.lt.s32.totalorder (!%p214_p3), %s578_s15, 1  ;;  %v317_v0 = vlaneseq (!%p214_p3)  ;;  %v291_v2 = vld [vmem:[%s684_s1] sm:$0x7] (!%p214_p3)  ;;  %v292_v7 = vld [vmem:[%s684_s1 + $0x4] sm:$0x7] (!%p214_p3)  ;;  %vm389_vm0 = vcmask (!%p214_p3), 254976  }
   0x7   : > { %217 = sbr.rel (%p214_p3) target bundleno = 40 (0x28), region = 36  ;;  %v534_v3 = vld [vmem:[%s685_s2] ss:$0 sm:$0xff] (!%p214_p3)  ;;  %v293_v32 = vld [vmem:[%s684_s1 + $0x8] sm:$0x7] (!%p214_p3) }
   0x8   : > { %v318_v1 = vshrl.u32 (!%p214_p3), %v317_v0, 7 }
   0xa   : > { %v319_v4 = vsub.s32 (!%p214_p3), 0, %v318_v1  ;;  %v327_v5 = vsub.s32 (!%p214_p3), 1, %v318_v1  ;;  %v335_v6 = vsub.s32 (!%p214_p3), 2, %v318_v1 }
   0xc   : > { %v320_v11 = vrot.slane (!%p214_p3), %v291_v2, %v319_v4  ;;  %v328_v12 = vrot.slane (!%p214_p3), %v291_v2, %v327_v5  ;;  %v336_v13 = vrot.slane (!%p214_p3), %v291_v2, %v335_v6  ;;  %v344_v23 = vrot.slane (!%p214_p3), %v292_v7, %v319_v4 }
   0xd   : > { %v352_v27 = vrot.slane (!%p214_p3), %v292_v7, %v327_v5  ;;  %v360_v34 = vrot.slane (!%p214_p3), %v292_v7, %v335_v6  ;;  %v368_v44 = vrot.slane (!%p214_p3), %v293_v32, %v319_v4  ;;  %v376_v50 = vrot.slane (!%p214_p3), %v293_v32, %v327_v5 }
   0xe   : > { %s693_s15 = smov (!%p260_p4, %s578_s15), 1  ;;  %v384_v51 = vrot.slane %v293_v32, %v335_v6 }
   0xf   : > { %s537_s23 = sshll.u32 %s693_s15, 4  ;;  %s538_s24 = sshll.u32 %s693_s15, 2 }
  0x10   : > { %s644_s27 = scalar_lea.vmem %s683_s0, %s537_s23  ;;  %s282_s30 = scalar_lea.vmem %s686_s3, %s538_s24 }
  0x11   : > { %v294_v8 = vld [vmem:[%s282_s30] sm:$0x3]  ;;  %v295_v9 = vld [vmem:[%s282_s30 + $0x2] sm:$0x3]  ;;  %v306_v16 = vld [vmem:[%s644_s27 + $0x4] sm:$0x3]  ;;  %s290_s11 = scalar_lea.vmem %s687_s4, %s538_s24 }
  0x12   : > { %v305_v10 = vld [vmem:[%s644_s27] sm:$0x3]  ;;  %v303_v14 = vadd.f32 %v534_v3, %v294_v8  ;;  %v304_v15 = vadd.f32 %v534_v3, %v295_v9  ;;  %v310_v18 = vld [vmem:[%s644_s27 + $0x5] sm:$0x3]  ;;  %v313_v19 = vld [vmem:[%s644_s27 + $0x2] sm:$0x3]  ;;  %v322_v21 = vmul.f32 %v320_v11, %v306_v16  ;;  %v345_v37 = vmul.f32 %v344_v23, %v306_v16 }
  0x13   : > { %v309_v17 = vld [vmem:[%s644_s27 + $0x1] sm:$0x3]  ;;  %v321_v20 = vmul.f32 %v320_v11, %v305_v10  ;;  %v307_v24 = vld [vmem:[%s644_s27 + $0x8] sm:$0x3]  ;;  %v314_v25 = vld [vmem:[%s644_s27 + $0x6] sm:$0x3]  ;;  %v330_v26 = vmul.f32 %v328_v12, %v310_v18  ;;  %v337_v30 = vmul.f32 %v336_v13, %v313_v19  ;;  %v353_v40 = vmul.f32 %v352_v27, %v310_v18 }
  0x14   : > { %v329_v22 = vmul.f32 %v328_v12, %v309_v17  ;;  %v324_v29 = vadd.f32 %v322_v21, %v304_v15  ;;  %v338_v31 = vmul.f32 %v336_v13, %v314_v25  ;;  %v311_v33 = vld [vmem:[%s644_s27 + $0x9] sm:$0x3]  ;;  %v346_v38 = vmul.f32 %v344_v23, %v307_v24  ;;  %v308_v46 = vld [vmem:[%s644_s27 + $0xc] sm:$0x3]  ;;  %v316_v57 = vld [vmem:[%s644_s27 + $0xe] sm:$0x3] }
  0x15   : > { %v323_v28 = vadd.f32 %v321_v20, %v303_v14  ;;  %v315_v39 = vld [vmem:[%s644_s27 + $0xa] sm:$0x3]  ;;  %v354_v43 = vmul.f32 %v352_v27, %v311_v33  ;;  %v361_v45 = vmul.f32 %v360_v34, %v314_v25  ;;  %v312_v52 = vld [vmem:[%s644_s27 + $0xd] sm:$0x3]  ;;  %v369_v54 = vmul.f32 %v368_v44, %v307_v24 }
  0x16   : > { %v332_v36 = vadd.f32 %v330_v26, %v324_v29  ;;  %v362_v49 = vmul.f32 %v360_v34, %v315_v39  ;;  %v370_v56 = vmul.f32 %v368_v44, %v308_v46  ;;  %v377_v59 = vmul.f32 %v376_v50, %v311_v33 }
  0x17   : > { %v331_v35 = vadd.f32 %v329_v22, %v323_v28  ;;  %v378_v61 = vmul.f32 %v376_v50, %v312_v52  ;;  %v385_v63 = vmul.f32 %v384_v51, %v315_v39  ;;  %v386_v1 = vmul.f32 %v384_v51, %v316_v57 }
  0x18   : > { %v340_v42 = vadd.f32 %v338_v31, %v332_v36 }
  0x19   : > { %v339_v41 = vadd.f32 %v337_v30, %v331_v35 }
  0x1a   : > { %v348_v48 = vadd.f32 %v346_v38, %v340_v42 }
  0x1b   : > { %v347_v47 = vadd.f32 %v345_v37, %v339_v41 }
  0x1c   : > { %v356_v55 = vadd.f32 %v354_v43, %v348_v48 }
  0x1d   : > { %v355_v53 = vadd.f32 %v353_v40, %v347_v47 }
  0x1e   : > { %v364_v60 = vadd.f32 %v362_v49, %v356_v55 }
  0x1f   : > { %v363_v58 = vadd.f32 %v361_v45, %v355_v53 }
  0x20   : > { %v372_v0 = vadd.f32 %v370_v56, %v364_v60 }
  0x21   : > { %v371_v62 = vadd.f32 %v369_v54, %v363_v58 }
  0x22   : > { %v380_v3 = vadd.f32 %v378_v61, %v372_v0 }
  0x23   : > { %v379_v2 = vadd.f32 %v377_v59, %v371_v62 }
  0x24   : > { %v388_v5 = vadd.f32 %v386_v1, %v380_v3 }
  0x25   : > { %v387_v4 = vadd.f32 %v385_v63, %v379_v2 }
  0x26   : > { %391 = vst.msk [vmem:[%s290_s11 + $0x2] sm:$0x3] %vm389_vm0, %v388_v5 }
  0x27   : > { %390 = vst.msk [vmem:[%s290_s11] sm:$0x3] %vm389_vm0, %v387_v4 }
  0x28 PF: > { %s14_s17 = sadd.s32 1, %s586_s17   ;;  %s688_s15 = smov %s582_s16 }
  0x29   : > { %p11_p5 = scmp.ge.s32.totalorder %s14_s17, 4   ;;  %s689_s16 = smov %s691_s18 }
  0x2b   :  { %13 = sbr.rel (!%p11_p5) target bundleno = 2 (0x2), region = 75 }

// kernel: cpvtv2_forward.41
= control target key start
LH: loop header
LB: loop body
LE: loop exit
PB: predicated region body
PF: predicated region fallthrough
CT: control target
= control target key end

     0   :  { %v176_v1 = vmov 0.0   ;;  %vm177_vm0 = vmmov 0   ;;  %s237_s0 = inlined_call_operand.vmem [shape: f32[8,64], index: 0, kind: input, shape index: {}]   ;;  %s238_s1 = inlined_call_operand.vmem [shape: bf16[64,32], index: 1, kind: input, shape index: {}]   ;;  %s239_s2 = inlined_call_operand.vmem [shape: f32[1,32], index: 2, kind: input, shape index: {}]   ;;  %s240_s3 = inlined_call_operand.vmem [shape: f32[8,32], index: 3, kind: input, shape index: {}]   ;;  %s241_s4 = inlined_call_operand.hbm [shape: f32[8,32], index: 4, kind: output, shape index: {}]  }
   0x1   :  { %v148_v0 = vld [vmem:[%s238_s1] sm:$0xff]   ;;  %133 = vmatprep.subr.bf16.mxu0 %v176_v1  ;;  %v149_v2 = vld [vmem:[%s238_s1 + $0x8] sm:$0xff]   ;;  %141 = vmatprep.mubr.msk.bf16.mxu0 %vm177_vm0, %v176_v1 }
   0x2   :  { %134 = vmatpush3.bf16.msra.mxu0 %v148_v0 }
   0x3   :  { %135 = vmatprep.subr.bf16.mxu0 %v176_v1 }
   0x4   :  { %9 = vsyncpa [#allocation3], 0  ;;  %v150_v3 = vld [vmem:[%s238_s1 + $0x10] sm:$0xff]   ;;  %v151_v4 = vld [vmem:[%s238_s1 + $0x18] sm:$0xff]   ;;  %vm60_vm1 = vcmask 523264   ;;  %s178_s29 = smov [#allocation2]  }
   0x5   :  { %v19_v5 = vld [vmem:[%s237_s0] sm:$0xff]  ;;  %s114_s1 = sshll.u32 %s178_s29, 4  ;;  %vm106_vm2 = vcmask 261120   ;;  %s115_s1 = int_to_ptr.vmem [resolvable:$true] %s114_s1 }
   0x6   :  { %136 = vmatpush3.bf16.msra.mxu0 %v149_v2  ;;  %v20_v6 = vpack.c.bf16 %v19_v5, %v19_v5  ;;  %v122_v7 = vld [vmem:[%s239_s2] ss:$0 sm:$0xff]  ;;  %s152_s0 = scalar_lea.vmem %s115_s1, 128  ;;  %p157_p1 = scmp.lt.s32.totalorder %s115_s1, %s115_s1 }
   0x7   :  { %137 = vmatprep.subr.bf16.mxu0 %v176_v1  ;;  %v104_v9 = vld [vmem:[%s240_s3] sm:$0xff]  ;;  %p153_p0 = scmp.ne.s32.totalorder %s115_s1, %s152_s0  ;;  %p158_p2 = scmp.lt.s32.totalorder %s152_s0, %s152_s0 }
   0x9   :  { %p159_p3 = por %p158_p2, %p157_p1 }
   0xa   :  { %138 = vmatpush3.bf16.msra.mxu0 %v150_v3 }
   0xb   :  { %139 = vmatprep.subr.bf16.mxu0 %v176_v1  ;;  %p160_p4 = pnand %p159_p3, %p153_p0 }
   0xe   :  { %140 = vmatpush3.bf16.msra.mxu0 %v151_v4 }
  0x11   :  { %142 = vmatmul.mubr.msk.bf16.vlgmr.msra.gmra.mrb[0].mxu0 %vm60_vm1, %v20_v6 }
  0xe4   :  { %v98_v8 = vpop.f32.mrb[0].mxu0 }
  0xe5   :  { %v99_v10 = vadd.f32 %v122_v7, %v98_v8  ;;  %v143_v11 = vpop.f32.mrb[1].mxu0 }
  0xe6   :  { %v101_v12 = vpop.f32.mrb[2].mxu0 }
  0xe7   :  { %v105_v13 = vadd.f32 %v104_v9, %v99_v10  ;;  %v144_v14 = vpop.f32.mrb[3].mxu0 }
  0xe9   :  { %107 = vst.msk [vmem:[#allocation2] sm:$0xff] %vm106_vm2, %v105_v13 }
  0xea   :  { %163 = shalt.err (!%p160_p4)
}
  0xeb   :  { %s164_s3 = scalar_lea.hbm %s241_s4, 128 }
  0xec   :  { %p165_p5 = scmp.ne.s32.totalorder %s241_s4, %s164_s3  ;;  %p168_p6 = scmp.lt.u32.totalorder %s164_s3, %s241_s4 }
  0xee   :  { %p170_p7 = pnand %p168_p6, %p165_p5 }
  0xf0   :  { %173 = shalt.err (!%p170_p7)
}
  0xf1   :  { %117 = dma.vmem_to_hbm [thread:$0]  %s115_s1, 128, %s241_s4, [#allocation3]  }
  0xf2   :  { %174 = dma.done.wait [#allocation3], 128  }
  0xf3   :  { %175 = vsyncadd [#allocation3], 4294967168 }
  0xf4   :  { %121 = vsyncpa [#allocation3], 1 }

</bundles_post_ra>
